<compile_context>
chip_gen: v7x
topology: tpu7x:2x2x1
jax: 0.10.0
libtpu: 0.0.40
codegen_flags: <defaults>
</compile_context>

<pallas_src>
from functools import partial

import jax
import jax.numpy as jnp
from jax.experimental import pallas as pl
from jax.experimental.pallas import tpu as pltpu

# ----------------------------- tiny T5 config --------------------------------
CFG_V = 64        # vocab size
CFG_D = 32        # d_model
CFG_H = 2         # num heads
CFG_DK = 16       # d_kv (head dim)
CFG_FF = 64       # d_ff
CFG_L = 2         # num layers (encoder and decoder each)
CFG_NB = 8        # relative_attention_num_buckets
CFG_MD = 16       # relative_attention_max_distance
CFG_EPS = 1e-6    # T5 LayerNorm eps
INNER = CFG_H * CFG_DK

NEG_BIG = -1e9    # large-but-safe mask constant (avoids -inf / NaN)


# --------------------------- in-kernel helpers --------------------------------
def _rms(x, gamma):
    # T5LayerNorm: no mean subtraction, variance in fp32, scale by weight.
    var = jnp.mean(x * x, axis=-1, keepdims=True)
    return x * jax.lax.rsqrt(var + CFG_EPS) * gamma


def _softmax_rows(s):
    m = jnp.max(s, axis=-1, keepdims=True)
    p = jnp.exp(s - m)
    denom = jnp.maximum(jnp.sum(p, axis=-1, keepdims=True), 1e-9)  # fully-masked-row guard
    return p * pl.reciprocal(denom, approx=True)


def _mhsa(x_bf, wqkv, wo, rel_bias, add_bias, bt, s):
    # x_bf: [bt*s, D] bf16 ; wqkv: [D, 3*INNER] bf16 ; wo: [INNER, D] bf16
    # rel_bias: [H, s, s] fp32 ; add_bias: [bt, 1, s] fp32 or None
    qkv = jnp.dot(x_bf, wqkv, preferred_element_type=jnp.float32).astype(jnp.bfloat16)
    qkv = qkv.reshape(bt, s, 3 * INNER)
    ctx_heads = []
    for h in range(CFG_H):
        q = qkv[:, :, h * CFG_DK:(h + 1) * CFG_DK]
        k = qkv[:, :, INNER + h * CFG_DK:INNER + (h + 1) * CFG_DK]
        v = qkv[:, :, 2 * INNER + h * CFG_DK:2 * INNER + (h + 1) * CFG_DK]
        # contraction on last dims -> no explicit transpose of k
        sc = jnp.einsum('bqd,bkd->bqk', q, k, preferred_element_type=jnp.float32)
        sc = sc + rel_bias[h][None]                 # T5: no 1/sqrt(d) scaling
        if add_bias is not None:
            sc = sc + add_bias
        p = _softmax_rows(sc).astype(jnp.bfloat16)
        ctx_heads.append(jnp.einsum('bqk,bkd->bqd', p, v,
                                    preferred_element_type=jnp.float32))
    ctx = jnp.concatenate(ctx_heads, axis=-1).reshape(bt * s, INNER).astype(jnp.bfloat16)
    return jnp.dot(ctx, wo, preferred_element_type=jnp.float32)      # [bt*s, D] fp32


def _mhca(x_bf, mem_bf, wq, wkv, wo, add_bias, bt, sd, se):
    # x_bf: [bt*sd, D] bf16 ; mem_bf: [bt*se, D] bf16
    q_all = jnp.dot(x_bf, wq, preferred_element_type=jnp.float32).astype(jnp.bfloat16)
    q_all = q_all.reshape(bt, sd, INNER)
    kv_all = jnp.dot(mem_bf, wkv, preferred_element_type=jnp.float32).astype(jnp.bfloat16)
    kv_all = kv_all.reshape(bt, se, 2 * INNER)
    ctx_heads = []
    for h in range(CFG_H):
        q = q_all[:, :, h * CFG_DK:(h + 1) * CFG_DK]
        k = kv_all[:, :, h * CFG_DK:(h + 1) * CFG_DK]
        v = kv_all[:, :, INNER + h * CFG_DK:INNER + (h + 1) * CFG_DK]
        sc = jnp.einsum('bqd,bkd->bqk', q, k, preferred_element_type=jnp.float32)
        sc = sc + add_bias                          # encoder padding mask bias
        p = _softmax_rows(sc).astype(jnp.bfloat16)
        ctx_heads.append(jnp.einsum('bqk,bkd->bqd', p, v,
                                    preferred_element_type=jnp.float32))
    ctx = jnp.concatenate(ctx_heads, axis=-1).reshape(bt * sd, INNER).astype(jnp.bfloat16)
    return jnp.dot(ctx, wo, preferred_element_type=jnp.float32)      # [bt*sd, D] fp32


def _ffn(x_bf, wi, wff):
    h = jnp.dot(x_bf, wi, preferred_element_type=jnp.float32)
    h_bf = jnp.maximum(h, 0.0).astype(jnp.bfloat16)                  # ReLU fp32, cast once
    return jnp.dot(h_bf, wff, preferred_element_type=jnp.float32)


# --------------------------- the single fused kernel ---------------------------
def fused_t5_kernel(
    enc_emb_ref, dec_emb_ref, labels_ref, key_bias_ref,
    enc_rel_ref, dec_rel_ref, shared_t_ref,
    enc_wA_ref, enc_wB_ref, enc_ln_ref,
    dec_wA_ref, dec_wB_ref, dec_ln_ref,
    out_ref,
):
    # One grid step == Bt batch elements; every activation of the forward pass
    # lives in VMEM / vector registers. Weights are resident (constant index_map).
    bt, se, d = enc_emb_ref.shape
    _, sd, _ = dec_emb_ref.shape

    key_bias = key_bias_ref[...]                     # [bt, 1, se] fp32 (0 / -1e9)
    enc_rel = enc_rel_ref[...]                       # [H, se, se] fp32
    dec_rel = dec_rel_ref[...]                       # [H, sd, sd] fp32 (rel + causal)
    enc_ln = enc_ln_ref[...]                         # [2L+1, D] fp32
    dec_ln = dec_ln_ref[...]                         # [3L+1, D] fp32
    enc_wA = enc_wA_ref[...]                         # [L, D, 3I+FF]  bf16
    enc_wB = enc_wB_ref[...]                         # [L, I+FF, D]   bf16
    dec_wA = dec_wA_ref[...]                         # [L, D, 6I+FF]  bf16
    dec_wB = dec_wB_ref[...]                         # [L, 2I+FF, D]  bf16

    # ------------------------- encoder stack -------------------------
    h = enc_emb_ref[...].reshape(bt * se, d).astype(jnp.float32)
    for l in range(CFG_L):
        x = _rms(h, enc_ln[2 * l:2 * l + 1]).astype(jnp.bfloat16)
        h = h + _mhsa(x, enc_wA[l, :, :3 * INNER], enc_wB[l, :INNER, :],
                      enc_rel, key_bias, bt, se)
        x = _rms(h, enc_ln[2 * l + 1:2 * l + 2]).astype(jnp.bfloat16)
        h = h + _ffn(x, enc_wA[l, :, 3 * INNER:], enc_wB[l, INNER:, :])
    enc_h_bf = _rms(h, enc_ln[2 * CFG_L:2 * CFG_L + 1]).astype(jnp.bfloat16)  # [bt*se, D]

    # ------------------------- decoder stack -------------------------
    h = dec_emb_ref[...].reshape(bt * sd, d).astype(jnp.float32)
    for l in range(CFG_L):
        x = _rms(h, dec_ln[3 * l:3 * l + 1]).astype(jnp.bfloat16)
        h = h + _mhsa(x, dec_wA[l, :, :3 * INNER], dec_wB[l, :INNER, :],
                      dec_rel, None, bt, sd)
        x = _rms(h, dec_ln[3 * l + 1:3 * l + 2]).astype(jnp.bfloat16)
        h = h + _mhca(x, enc_h_bf,
                      dec_wA[l, :, 3 * INNER:4 * INNER],
                      dec_wA[l, :, 4 * INNER:6 * INNER],
                      dec_wB[l, INNER:2 * INNER, :],
                      key_bias, bt, sd, se)
        x = _rms(h, dec_ln[3 * l + 2:3 * l + 3]).astype(jnp.bfloat16)
        h = h + _ffn(x, dec_wA[l, :, 6 * INNER:], dec_wB[l, 2 * INNER:, :])
    dec_h = _rms(h, dec_ln[3 * CFG_L:3 * CFG_L + 1])                  # [bt*sd, D] fp32

    # ------------- tied LM head + cross-entropy (fused, no HBM logits) --------
    seq_bf = (dec_h * (CFG_D ** -0.5)).astype(jnp.bfloat16)          # tied-embedding rescale
    logits = jnp.dot(seq_bf, shared_t_ref[...],
                     preferred_element_type=jnp.float32)              # [bt*sd, V] fp32
    labels = labels_ref[...]                                          # [bt*sd, 1] int32
    m = jnp.max(logits, axis=-1, keepdims=True)
    lse = jnp.log(jnp.sum(jnp.exp(logits - m), axis=-1, keepdims=True)) + m
    vocab_ids = jax.lax.broadcasted_iota(jnp.int32, logits.shape, 1)
    onehot = (vocab_ids == labels).astype(jnp.float32)
    tgt = jnp.sum(logits * onehot, axis=-1, keepdims=True)
    valid = (labels != -100).astype(jnp.float32)
    nll = (lse - tgt) * valid
    out_ref[...] = jnp.concatenate(
        [jnp.sum(nll).reshape(1, 1, 1), jnp.sum(valid).reshape(1, 1, 1)], axis=2)


# ------------------------- T5 glue (plain JAX, not hot path) -------------------
def relative_position_bucket(relative_position, bidirectional, num_buckets, max_distance):
    relative_buckets = jnp.zeros_like(relative_position)
    if bidirectional:
        num_buckets //= 2
        relative_buckets += (relative_position > 0).astype(jnp.int32) * num_buckets
        relative_position = jnp.abs(relative_position)
    else:
        relative_position = -jnp.minimum(relative_position, 0)
    max_exact = num_buckets // 2
    is_small = relative_position < max_exact
    rel_f = jnp.maximum(relative_position.astype(jnp.float32), 1.0)
    rel_if_large = max_exact + (
        jnp.log(rel_f / max_exact) / jnp.log(max_distance / max_exact)
        * (num_buckets - max_exact)
    ).astype(jnp.int32)
    rel_if_large = jnp.minimum(rel_if_large, num_buckets - 1)
    relative_buckets += jnp.where(is_small, relative_position, rel_if_large)
    return relative_buckets


def compute_rel_bias(q_len, k_len, bidirectional, rel_emb):
    ctx = jnp.arange(q_len, dtype=jnp.int32)[:, None]
    mem = jnp.arange(k_len, dtype=jnp.int32)[None, :]
    buckets = relative_position_bucket(mem - ctx, bidirectional, CFG_NB, CFG_MD)
    values = rel_emb[buckets]                               # [q, k, H]
    return jnp.transpose(values, (2, 0, 1))                 # [H, q, k]


def shift_right(labels):
    shifted = jnp.zeros_like(labels)
    shifted = shifted.at[:, 1:].set(labels[:, :-1])
    shifted = shifted.at[:, 0].set(0)                       # decoder_start = pad = 0
    return jnp.where(shifted == -100, 0, shifted)


def _resident_spec(a):
    zeros = (0,) * a.ndim
    return pl.BlockSpec(a.shape, lambda b: zeros)


# --------------------- weight packing (once, outside the jit) ------------------
def pack_weights(params):
    """Stack per-layer weights into a few contiguous bf16 slabs; done once."""
    bf16 = lambda w: w.astype(jnp.bfloat16)

    enc_wA = jnp.stack([jnp.concatenate(
        [p["self_attn"]["q"], p["self_attn"]["k"], p["self_attn"]["v"], p["wi"]],
        axis=1) for p in params["enc_blocks"]], axis=0)                 # [L, D, 3I+FF]
    enc_wB = jnp.stack([jnp.concatenate([p["self_attn"]["o"], p["wo"]], axis=0)
                        for p in params["enc_blocks"]], axis=0)          # [L, I+FF, D]
    enc_ln_rows = []
    for p in params["enc_blocks"]:
        enc_ln_rows += [p["ln_self"], p["ln_ff"]]
    enc_ln_rows.append(params["enc_final_ln"])
    enc_ln = jnp.stack(enc_ln_rows, axis=0)                              # [2L+1, D]

    dec_wA = jnp.stack([jnp.concatenate(
        [p["self_attn"]["q"], p["self_attn"]["k"], p["self_attn"]["v"],
         p["cross_attn"]["q"], p["cross_attn"]["k"], p["cross_attn"]["v"],
         p["wi"]], axis=1) for p in params["dec_blocks"]], axis=0)       # [L, D, 6I+FF]
    dec_wB = jnp.stack([jnp.concatenate(
        [p["self_attn"]["o"], p["cross_attn"]["o"], p["wo"]], axis=0)
        for p in params["dec_blocks"]], axis=0)                          # [L, 2I+FF, D]
    dec_ln_rows = []
    for p in params["dec_blocks"]:
        dec_ln_rows += [p["ln_self"], p["ln_cross"], p["ln_ff"]]
    dec_ln_rows.append(params["dec_final_ln"])
    dec_ln = jnp.stack(dec_ln_rows, axis=0)                              # [3L+1, D]

    return {
        "shared": params["shared"],                                      # [V, D] fp32
        "shared_T": bf16(params["shared"].T),                            # [D, V] bf16
        "enc_rel": params["enc_rel"], "dec_rel": params["dec_rel"],
        "enc_wA": bf16(enc_wA), "enc_wB": bf16(enc_wB), "enc_ln": enc_ln,
        "dec_wA": bf16(dec_wA), "dec_wB": bf16(dec_wB), "dec_ln": dec_ln,
    }


# ------------------------------- jitted forward --------------------------------
@partial(jax.jit, static_argnames=("block_batch",))
def t5_generation_forward(packed, input_ids, input_masks, labels, *, block_batch=2):
    """Equivalent of T5GenerationModel.forward(input_ids, input_masks, labels)."""
    B, Se = input_ids.shape
    Sd = labels.shape[1]
    Bt = block_batch if (block_batch > 0 and B % block_batch == 0) else 1
    G = B // Bt                                            # grid length (>= 2 on v7x)

    shared = packed["shared"]
    enc_emb = shared[input_ids]                            # [B, Se, D]
    dec_emb = shared[shift_right(labels)]                  # [B, Sd, D]

    # small per-batch / per-shape glue (rel tables + key mask); broadcast happens in-kernel
    key_bias = ((1.0 - input_masks.astype(jnp.float32)) * NEG_BIG)[:, None, :]   # [B,1,Se]
    enc_rel_b = compute_rel_bias(Se, Se, True, packed["enc_rel"])                # [H,Se,Se]
    causal = jnp.tril(jnp.ones((Sd, Sd), jnp.float32))
    dec_rel_b = compute_rel_bias(Sd, Sd, False, packed["dec_rel"]) \
        + (1.0 - causal)[None] * NEG_BIG                                         # [H,Sd,Sd]
    labels2 = labels.astype(jnp.int32).reshape(B * Sd, 1)

    in_specs = [
        pl.BlockSpec((Bt, Se, CFG_D), lambda b: (b, 0, 0)),      # enc_emb   (batched)
        pl.BlockSpec((Bt, Sd, CFG_D), lambda b: (b, 0, 0)),      # dec_emb   (batched)
        pl.BlockSpec((Bt * Sd, 1), lambda b: (b, 0)),            # labels    (batched)
        pl.BlockSpec((Bt, 1, Se), lambda b: (b, 0, 0)),          # key bias  (batched)
    ]
    resident = (enc_rel_b, dec_rel_b, packed["shared_T"],
                packed["enc_wA"], packed["enc_wB"], packed["enc_ln"],
                packed["dec_wA"], packed["dec_wB"], packed["dec_ln"])
    for w in resident:
        in_specs.append(_resident_spec(w))

    sums = pl.pallas_call(
        fused_t5_kernel,
        out_shape=jax.ShapeDtypeStruct((G, 1, 2), jnp.float32),
        grid=(G,),
        in_specs=in_specs,
        out_specs=pl.BlockSpec((1, 1, 2), lambda b: (b, 0, 0)),
        compiler_params=pltpu.CompilerParams(dimension_semantics=("parallel",)),
    )(enc_emb, dec_emb, labels2, key_bias, *resident)

    # CrossEntropyLoss(ignore_index=-100), mean over non-ignored tokens.
    return jnp.sum(sums[:, 0, 0]) / jnp.sum(sums[:, 0, 1])


# ----------------------------- parameter init ---------------------------------
def init_params(key):
    def nrm(k, shape, scale=0.02):
        return scale * jax.random.normal(k, shape, dtype=jnp.float32)

    keys = iter(jax.random.split(key, 256))
    D, H, Dk, F, V = CFG_D, CFG_H, CFG_DK, CFG_FF, CFG_V
    inner = H * Dk

    def attn_params():
        return {
            "q": nrm(next(keys), (D, inner)),
            "k": nrm(next(keys), (D, inner)),
            "v": nrm(next(keys), (D, inner)),
            "o": nrm(next(keys), (inner, D)),
        }

    def block_params(is_decoder):
        p = {
            "ln_self": jnp.ones((D,), jnp.float32),
            "self_attn": attn_params(),
            "ln_ff": jnp.ones((D,), jnp.float32),
            "wi": nrm(next(keys), (D, F)),
            "wo": nrm(next(keys), (F, D)),
        }
        if is_decoder:
            p["ln_cross"] = jnp.ones((D,), jnp.float32)
            p["cross_attn"] = attn_params()
        return p

    return {
        "shared": nrm(next(keys), (V, D), scale=1.0),
        "enc_rel": nrm(next(keys), (CFG_NB, H)),
        "dec_rel": nrm(next(keys), (CFG_NB, H)),
        "enc_blocks": [block_params(False) for _ in range(CFG_L)],
        "dec_blocks": [block_params(True) for _ in range(CFG_L)],
        "enc_final_ln": jnp.ones((D,), jnp.float32),
        "dec_final_ln": jnp.ones((D,), jnp.float32),
    }


# ---------------------------------- main ---------------------------------------
if __name__ == "__main__":
    key = jax.random.PRNGKey(0)
    kp, ki, kl = jax.random.split(key, 3)

    params = init_params(kp)
    packed = pack_weights(params)          # weight packing hoisted out of the hot path

    B, S = 4, 8                            # Bt=2 -> grid=(2,), Bt*S=16 (sublane multiple)
    input_ids = jax.random.randint(ki, (B, S), 1, CFG_V, dtype=jnp.int32)
    input_masks = jnp.ones((B, S), jnp.int32)
    input_masks = input_masks.at[1, S - 2:].set(0).at[3, S - 3:].set(0)
    labels = jax.random.randint(kl, (B, S), 1, CFG_V, dtype=jnp.int32)
    labels = labels.at[1, S - 2:].set(-100).at[2, S - 1:].set(-100)   # ignore_index

    loss = t5_generation_forward(packed, input_ids, input_masks, labels, block_batch=2)
    loss = jax.block_until_ready(loss)
    assert loss.shape == () and bool(jnp.isfinite(loss))
    print("KERNEL_OK")
</pallas_src>

<mosaic_0001>
module attributes {stable_mosaic.version = 11 : i64} {
  func.func @fused_t5_kernel(%arg0: i32, %arg1: memref<2x8x32xf32, #tpu.memory_space<vmem>>, %arg2: memref<2x8x32xf32, #tpu.memory_space<vmem>>, %arg3: memref<16x1xi32, #tpu.memory_space<vmem>>, %arg4: memref<2x1x8xf32, #tpu.memory_space<vmem>>, %arg5: memref<2x8x8xf32, #tpu.memory_space<vmem>>, %arg6: memref<2x8x8xf32, #tpu.memory_space<vmem>>, %arg7: memref<32x64xbf16, #tpu.memory_space<vmem>>, %arg8: memref<2x32x160xbf16, #tpu.memory_space<vmem>>, %arg9: memref<2x96x32xbf16, #tpu.memory_space<vmem>>, %arg10: memref<5x32xf32, #tpu.memory_space<vmem>>, %arg11: memref<2x32x256xbf16, #tpu.memory_space<vmem>>, %arg12: memref<2x128x32xbf16, #tpu.memory_space<vmem>>, %arg13: memref<7x32xf32, #tpu.memory_space<vmem>>, %arg14: memref<1x1x2xf32, #tpu.memory_space<vmem>>) attributes {dimension_semantics = [#tpu.dimension_semantics<parallel>], iteration_bounds = array<i64: 2>, scalar_prefetch = 0 : i64, scratch_operands = 0 : i64, tpu.core_type = #tpu.core_type<tc>, window_params = [{transform_indices = @transform_0, window_bounds = array<i64: 2, 8, 32>}, {transform_indices = @transform_1, window_bounds = array<i64: 2, 8, 32>}, {transform_indices = @transform_2, window_bounds = array<i64: 16, 1>}, {transform_indices = @transform_3, window_bounds = array<i64: 2, 1, 8>}, {pipeline_mode = #tpu.pipeline_mode<synchronous>, transform_indices = @transform_4, window_bounds = array<i64: 2, 8, 8>}, {pipeline_mode = #tpu.pipeline_mode<synchronous>, transform_indices = @transform_5, window_bounds = array<i64: 2, 8, 8>}, {pipeline_mode = #tpu.pipeline_mode<synchronous>, transform_indices = @transform_6, window_bounds = array<i64: 32, 64>}, {pipeline_mode = #tpu.pipeline_mode<synchronous>, transform_indices = @transform_7, window_bounds = array<i64: 2, 32, 160>}, {pipeline_mode = #tpu.pipeline_mode<synchronous>, transform_indices = @transform_8, window_bounds = array<i64: 2, 96, 32>}, {pipeline_mode = #tpu.pipeline_mode<synchronous>, transform_indices = @transform_9, window_bounds = array<i64: 5, 32>}, {pipeline_mode = #tpu.pipeline_mode<synchronous>, transform_indices = @transform_10, window_bounds = array<i64: 2, 32, 256>}, {pipeline_mode = #tpu.pipeline_mode<synchronous>, transform_indices = @transform_11, window_bounds = array<i64: 2, 128, 32>}, {pipeline_mode = #tpu.pipeline_mode<synchronous>, transform_indices = @transform_12, window_bounds = array<i64: 7, 32>}, {transform_indices = @transform_13, window_bounds = array<i64: 1, 1, 2>}]} {
    %c0 = arith.constant 0 : index
    %c0_0 = arith.constant 0 : index
    %c0_1 = arith.constant 0 : index
    %0 = vector.load %arg4[%c0, %c0_0, %c0_1] : memref<2x1x8xf32, #tpu.memory_space<vmem>>, vector<2x1x8xf32>
    %c0_2 = arith.constant 0 : index
    %c0_3 = arith.constant 0 : index
    %c0_4 = arith.constant 0 : index
    %1 = vector.load %arg5[%c0_2, %c0_3, %c0_4] : memref<2x8x8xf32, #tpu.memory_space<vmem>>, vector<2x8x8xf32>
    %c0_5 = arith.constant 0 : index
    %c0_6 = arith.constant 0 : index
    %c0_7 = arith.constant 0 : index
    %2 = vector.load %arg6[%c0_5, %c0_6, %c0_7] : memref<2x8x8xf32, #tpu.memory_space<vmem>>, vector<2x8x8xf32>
    %c0_8 = arith.constant 0 : index
    %c0_9 = arith.constant 0 : index
    %3 = vector.load %arg10[%c0_8, %c0_9] : memref<5x32xf32, #tpu.memory_space<vmem>>, vector<5x32xf32>
    %c0_10 = arith.constant 0 : index
    %c0_11 = arith.constant 0 : index
    %4 = vector.load %arg13[%c0_10, %c0_11] : memref<7x32xf32, #tpu.memory_space<vmem>>, vector<7x32xf32>
    %c0_12 = arith.constant 0 : index
    %c0_13 = arith.constant 0 : index
    %c0_14 = arith.constant 0 : index
    %5 = vector.load %arg8[%c0_12, %c0_13, %c0_14] : memref<2x32x160xbf16, #tpu.memory_space<vmem>>, vector<2x32x160xbf16>
    %c0_15 = arith.constant 0 : index
    %c0_16 = arith.constant 0 : index
    %c0_17 = arith.constant 0 : index
    %6 = vector.load %arg9[%c0_15, %c0_16, %c0_17] : memref<2x96x32xbf16, #tpu.memory_space<vmem>>, vector<2x96x32xbf16>
    %c0_18 = arith.constant 0 : index
    %c0_19 = arith.constant 0 : index
    %c0_20 = arith.constant 0 : index
    %7 = vector.load %arg11[%c0_18, %c0_19, %c0_20] : memref<2x32x256xbf16, #tpu.memory_space<vmem>>, vector<2x32x256xbf16>
    %c0_21 = arith.constant 0 : index
    %c0_22 = arith.constant 0 : index
    %c0_23 = arith.constant 0 : index
    %8 = vector.load %arg12[%c0_21, %c0_22, %c0_23] : memref<2x128x32xbf16, #tpu.memory_space<vmem>>, vector<2x128x32xbf16>
    %c0_24 = arith.constant 0 : index
    %c0_25 = arith.constant 0 : index
    %c0_26 = arith.constant 0 : index
    %9 = vector.load %arg1[%c0_24, %c0_25, %c0_26] : memref<2x8x32xf32, #tpu.memory_space<vmem>>, vector<2x8x32xf32>
    %10 = vector.shape_cast %9 : vector<2x8x32xf32> to vector<16x32xf32>
    %11 = vector.extract_strided_slice %3 {offsets = [0, 0], sizes = [1, 32], strides = [1, 1]} : vector<5x32xf32> to vector<1x32xf32>
    %12 = arith.mulf %10, %10 : vector<16x32xf32>
    %cst = arith.constant dense<0.000000e+00> : vector<16xf32>
    %13 = vector.multi_reduction <add>, %12, %cst [1] : vector<16x32xf32> to vector<16xf32>
    %14 = vector.shape_cast %13 : vector<16xf32> to vector<16x1xf32>
    %cst_27 = arith.constant 3.200000e+01 : f32
    %15 = vector.broadcast %cst_27 : f32 to vector<16x1xf32>
    %16 = arith.divf %14, %15 : vector<16x1xf32>
    %cst_28 = arith.constant 9.99999997E-7 : f32
    %17 = vector.broadcast %cst_28 : f32 to vector<16x1xf32>
    %18 = arith.addf %16, %17 : vector<16x1xf32>
    %19 = math.rsqrt %18 : vector<16x1xf32>
    %20 = vector.broadcast %19 : vector<16x1xf32> to vector<16x32xf32>
    %21 = arith.mulf %10, %20 : vector<16x32xf32>
    %22 = vector.broadcast %11 : vector<1x32xf32> to vector<16x32xf32>
    %23 = arith.mulf %21, %22 : vector<16x32xf32>
    %24 = arith.truncf %23 : vector<16x32xf32> to vector<16x32xbf16>
    %25 = vector.extract_strided_slice %5 {offsets = [0, 0, 0], sizes = [1, 32, 96], strides = [1, 1, 1]} : vector<2x32x160xbf16> to vector<1x32x96xbf16>
    %26 = vector.shape_cast %25 : vector<1x32x96xbf16> to vector<32x96xbf16>
    %27 = vector.extract_strided_slice %6 {offsets = [0, 0, 0], sizes = [1, 32, 32], strides = [1, 1, 1]} : vector<2x96x32xbf16> to vector<1x32x32xbf16>
    %28 = vector.shape_cast %27 : vector<1x32x32xbf16> to vector<32x32xbf16>
    %cst_29 = arith.constant dense<0.000000e+00> : vector<16x96xf32>
    %29 = tpu.matmul %24, %26, %cst_29 {dimension_numbers = #tpu.dot_dimension_numbers<[1], [0], [0], [1], [0, 0, 1, 1], [], []>} : vector<16x32xbf16>, vector<32x96xbf16>, vector<16x96xf32> -> vector<16x96xf32>
    %30 = arith.truncf %29 : vector<16x96xf32> to vector<16x96xbf16>
    %31 = vector.shape_cast %30 : vector<16x96xbf16> to vector<2x8x96xbf16>
    %32 = vector.extract_strided_slice %31 {offsets = [0, 0, 0], sizes = [2, 8, 16], strides = [1, 1, 1]} : vector<2x8x96xbf16> to vector<2x8x16xbf16>
    %33 = vector.extract_strided_slice %31 {offsets = [0, 0, 32], sizes = [2, 8, 16], strides = [1, 1, 1]} : vector<2x8x96xbf16> to vector<2x8x16xbf16>
    %34 = vector.extract_strided_slice %31 {offsets = [0, 0, 64], sizes = [2, 8, 16], strides = [1, 1, 1]} : vector<2x8x96xbf16> to vector<2x8x16xbf16>
    "tpu.trace_start"() <{level = 10 : i32, message = "bqd,bkd->bqk"}> : () -> ()
    %cst_30 = arith.constant dense<0.000000e+00> : vector<2x8x8xf32>
    %35 = tpu.matmul %32, %33, %cst_30 {dimension_numbers = #tpu.dot_dimension_numbers<[2], [2], [1], [1], [0, 0, 0, 1, 1, 1], [0], [0]>} : vector<2x8x16xbf16>, vector<2x8x16xbf16>, vector<2x8x8xf32> -> vector<2x8x8xf32>
    "tpu.trace_stop"() : () -> ()
    %36 = vector.extract_strided_slice %1 {offsets = [0, 0, 0], sizes = [1, 8, 8], strides = [1, 1, 1]} : vector<2x8x8xf32> to vector<1x8x8xf32>
    %37 = vector.shape_cast %36 : vector<1x8x8xf32> to vector<8x8xf32>
    %38 = vector.shape_cast %37 : vector<8x8xf32> to vector<1x8x8xf32>
    %39 = vector.broadcast %38 : vector<1x8x8xf32> to vector<2x8x8xf32>
    %40 = arith.addf %35, %39 : vector<2x8x8xf32>
    %41 = vector.broadcast %0 : vector<2x1x8xf32> to vector<2x8x8xf32>
    %42 = arith.addf %40, %41 : vector<2x8x8xf32>
    %cst_31 = arith.constant dense<0xFF800000> : vector<2x8xf32>
    %43 = vector.multi_reduction <maximumf>, %42, %cst_31 [2] : vector<2x8x8xf32> to vector<2x8xf32>
    %44 = vector.shape_cast %43 : vector<2x8xf32> to vector<2x8x1xf32>
    %45 = vector.broadcast %44 : vector<2x8x1xf32> to vector<2x8x8xf32>
    %46 = arith.subf %42, %45 : vector<2x8x8xf32>
    %47 = math.exp %46 : vector<2x8x8xf32>
    %cst_32 = arith.constant dense<0.000000e+00> : vector<2x8xf32>
    %48 = vector.multi_reduction <add>, %47, %cst_32 [2] : vector<2x8x8xf32> to vector<2x8xf32>
    %49 = vector.shape_cast %48 : vector<2x8xf32> to vector<2x8x1xf32>
    %cst_33 = arith.constant 9.99999971E-10 : f32
    %50 = vector.broadcast %cst_33 : f32 to vector<2x8x1xf32>
    %51 = arith.maximumf %49, %50 : vector<2x8x1xf32>
    %52 = tpu.reciprocal %51 {approx = true} : vector<2x8x1xf32> -> vector<2x8x1xf32>
    %53 = vector.broadcast %52 : vector<2x8x1xf32> to vector<2x8x8xf32>
    %54 = arith.mulf %47, %53 : vector<2x8x8xf32>
    %55 = arith.truncf %54 : vector<2x8x8xf32> to vector<2x8x8xbf16>
    "tpu.trace_start"() <{level = 10 : i32, message = "bqk,bkd->bqd"}> : () -> ()
    %cst_34 = arith.constant dense<0.000000e+00> : vector<2x8x16xf32>
    %56 = tpu.matmul %55, %34, %cst_34 {dimension_numbers = #tpu.dot_dimension_numbers<[2], [1], [1], [2], [0, 0, 0, 1, 1, 2], [0], [0]>} : vector<2x8x8xbf16>, vector<2x8x16xbf16>, vector<2x8x16xf32> -> vector<2x8x16xf32>
    "tpu.trace_stop"() : () -> ()
    %57 = vector.extract_strided_slice %31 {offsets = [0, 0, 16], sizes = [2, 8, 16], strides = [1, 1, 1]} : vector<2x8x96xbf16> to vector<2x8x16xbf16>
    %58 = vector.extract_strided_slice %31 {offsets = [0, 0, 48], sizes = [2, 8, 16], strides = [1, 1, 1]} : vector<2x8x96xbf16> to vector<2x8x16xbf16>
    %59 = vector.extract_strided_slice %31 {offsets = [0, 0, 80], sizes = [2, 8, 16], strides = [1, 1, 1]} : vector<2x8x96xbf16> to vector<2x8x16xbf16>
    "tpu.trace_start"() <{level = 10 : i32, message = "bqd,bkd->bqk"}> : () -> ()
    %cst_35 = arith.constant dense<0.000000e+00> : vector<2x8x8xf32>
    %60 = tpu.matmul %57, %58, %cst_35 {dimension_numbers = #tpu.dot_dimension_numbers<[2], [2], [1], [1], [0, 0, 0, 1, 1, 1], [0], [0]>} : vector<2x8x16xbf16>, vector<2x8x16xbf16>, vector<2x8x8xf32> -> vector<2x8x8xf32>
    "tpu.trace_stop"() : () -> ()
    %61 = vector.extract_strided_slice %1 {offsets = [1, 0, 0], sizes = [1, 8, 8], strides = [1, 1, 1]} : vector<2x8x8xf32> to vector<1x8x8xf32>
    %62 = vector.shape_cast %61 : vector<1x8x8xf32> to vector<8x8xf32>
    %63 = vector.shape_cast %62 : vector<8x8xf32> to vector<1x8x8xf32>
    %64 = vector.broadcast %63 : vector<1x8x8xf32> to vector<2x8x8xf32>
    %65 = arith.addf %60, %64 : vector<2x8x8xf32>
    %66 = vector.broadcast %0 : vector<2x1x8xf32> to vector<2x8x8xf32>
    %67 = arith.addf %65, %66 : vector<2x8x8xf32>
    %cst_36 = arith.constant dense<0xFF800000> : vector<2x8xf32>
    %68 = vector.multi_reduction <maximumf>, %67, %cst_36 [2] : vector<2x8x8xf32> to vector<2x8xf32>
    %69 = vector.shape_cast %68 : vector<2x8xf32> to vector<2x8x1xf32>
    %70 = vector.broadcast %69 : vector<2x8x1xf32> to vector<2x8x8xf32>
    %71 = arith.subf %67, %70 : vector<2x8x8xf32>
    %72 = math.exp %71 : vector<2x8x8xf32>
    %cst_37 = arith.constant dense<0.000000e+00> : vector<2x8xf32>
    %73 = vector.multi_reduction <add>, %72, %cst_37 [2] : vector<2x8x8xf32> to vector<2x8xf32>
    %74 = vector.shape_cast %73 : vector<2x8xf32> to vector<2x8x1xf32>
    %cst_38 = arith.constant 9.99999971E-10 : f32
    %75 = vector.broadcast %cst_38 : f32 to vector<2x8x1xf32>
    %76 = arith.maximumf %74, %75 : vector<2x8x1xf32>
    %77 = tpu.reciprocal %76 {approx = true} : vector<2x8x1xf32> -> vector<2x8x1xf32>
    %78 = vector.broadcast %77 : vector<2x8x1xf32> to vector<2x8x8xf32>
    %79 = arith.mulf %72, %78 : vector<2x8x8xf32>
    %80 = arith.truncf %79 : vector<2x8x8xf32> to vector<2x8x8xbf16>
    "tpu.trace_start"() <{level = 10 : i32, message = "bqk,bkd->bqd"}> : () -> ()
    %cst_39 = arith.constant dense<0.000000e+00> : vector<2x8x16xf32>
    %81 = tpu.matmul %80, %59, %cst_39 {dimension_numbers = #tpu.dot_dimension_numbers<[2], [1], [1], [2], [0, 0, 0, 1, 1, 2], [0], [0]>} : vector<2x8x8xbf16>, vector<2x8x16xbf16>, vector<2x8x16xf32> -> vector<2x8x16xf32>
    "tpu.trace_stop"() : () -> ()
    %82 = tpu.concatenate %56, %81 in 2 : vector<2x8x16xf32>, vector<2x8x16xf32> -> vector<2x8x32xf32>
    %83 = vector.shape_cast %82 : vector<2x8x32xf32> to vector<16x32xf32>
    %84 = arith.truncf %83 : vector<16x32xf32> to vector<16x32xbf16>
    %cst_40 = arith.constant dense<0.000000e+00> : vector<16x32xf32>
    %85 = tpu.matmul %84, %28, %cst_40 {dimension_numbers = #tpu.dot_dimension_numbers<[1], [0], [0], [1], [0, 0, 1, 1], [], []>} : vector<16x32xbf16>, vector<32x32xbf16>, vector<16x32xf32> -> vector<16x32xf32>
    %86 = arith.addf %10, %85 : vector<16x32xf32>
    %87 = vector.extract_strided_slice %3 {offsets = [1, 0], sizes = [1, 32], strides = [1, 1]} : vector<5x32xf32> to vector<1x32xf32>
    %88 = arith.mulf %86, %86 : vector<16x32xf32>
    %cst_41 = arith.constant dense<0.000000e+00> : vector<16xf32>
    %89 = vector.multi_reduction <add>, %88, %cst_41 [1] : vector<16x32xf32> to vector<16xf32>
    %90 = vector.shape_cast %89 : vector<16xf32> to vector<16x1xf32>
    %cst_42 = arith.constant 3.200000e+01 : f32
    %91 = vector.broadcast %cst_42 : f32 to vector<16x1xf32>
    %92 = arith.divf %90, %91 : vector<16x1xf32>
    %cst_43 = arith.constant 9.99999997E-7 : f32
    %93 = vector.broadcast %cst_43 : f32 to vector<16x1xf32>
    %94 = arith.addf %92, %93 : vector<16x1xf32>
    %95 = math.rsqrt %94 : vector<16x1xf32>
    %96 = vector.broadcast %95 : vector<16x1xf32> to vector<16x32xf32>
    %97 = arith.mulf %86, %96 : vector<16x32xf32>
    %98 = vector.broadcast %87 : vector<1x32xf32> to vector<16x32xf32>
    %99 = arith.mulf %97, %98 : vector<16x32xf32>
    %100 = arith.truncf %99 : vector<16x32xf32> to vector<16x32xbf16>
    %101 = vector.extract_strided_slice %5 {offsets = [0, 0, 96], sizes = [1, 32, 64], strides = [1, 1, 1]} : vector<2x32x160xbf16> to vector<1x32x64xbf16>
    %102 = vector.shape_cast %101 : vector<1x32x64xbf16> to vector<32x64xbf16>
    %103 = vector.extract_strided_slice %6 {offsets = [0, 32, 0], sizes = [1, 64, 32], strides = [1, 1, 1]} : vector<2x96x32xbf16> to vector<1x64x32xbf16>
    %104 = vector.shape_cast %103 : vector<1x64x32xbf16> to vector<64x32xbf16>
    %cst_44 = arith.constant dense<0.000000e+00> : vector<16x64xf32>
    %105 = tpu.matmul %100, %102, %cst_44 {dimension_numbers = #tpu.dot_dimension_numbers<[1], [0], [0], [1], [0, 0, 1, 1], [], []>} : vector<16x32xbf16>, vector<32x64xbf16>, vector<16x64xf32> -> vector<16x64xf32>
    %cst_45 = arith.constant 0.000000e+00 : f32
    %106 = vector.broadcast %cst_45 : f32 to vector<16x64xf32>
    %107 = arith.maximumf %105, %106 : vector<16x64xf32>
    %108 = arith.truncf %107 : vector<16x64xf32> to vector<16x64xbf16>
    %cst_46 = arith.constant dense<0.000000e+00> : vector<16x32xf32>
    %109 = tpu.matmul %108, %104, %cst_46 {dimension_numbers = #tpu.dot_dimension_numbers<[1], [0], [0], [1], [0, 0, 1, 1], [], []>} : vector<16x64xbf16>, vector<64x32xbf16>, vector<16x32xf32> -> vector<16x32xf32>
    %110 = arith.addf %86, %109 : vector<16x32xf32>
    %111 = vector.extract_strided_slice %3 {offsets = [2, 0], sizes = [1, 32], strides = [1, 1]} : vector<5x32xf32> to vector<1x32xf32>
    %112 = arith.mulf %110, %110 : vector<16x32xf32>
    %cst_47 = arith.constant dense<0.000000e+00> : vector<16xf32>
    %113 = vector.multi_reduction <add>, %112, %cst_47 [1] : vector<16x32xf32> to vector<16xf32>
    %114 = vector.shape_cast %113 : vector<16xf32> to vector<16x1xf32>
    %cst_48 = arith.constant 3.200000e+01 : f32
    %115 = vector.broadcast %cst_48 : f32 to vector<16x1xf32>
    %116 = arith.divf %114, %115 : vector<16x1xf32>
    %cst_49 = arith.constant 9.99999997E-7 : f32
    %117 = vector.broadcast %cst_49 : f32 to vector<16x1xf32>
    %118 = arith.addf %116, %117 : vector<16x1xf32>
    %119 = math.rsqrt %118 : vector<16x1xf32>
    %120 = vector.broadcast %119 : vector<16x1xf32> to vector<16x32xf32>
    %121 = arith.mulf %110, %120 : vector<16x32xf32>
    %122 = vector.broadcast %111 : vector<1x32xf32> to vector<16x32xf32>
    %123 = arith.mulf %121, %122 : vector<16x32xf32>
    %124 = arith.truncf %123 : vector<16x32xf32> to vector<16x32xbf16>
    %125 = vector.extract_strided_slice %5 {offsets = [1, 0, 0], sizes = [1, 32, 96], strides = [1, 1, 1]} : vector<2x32x160xbf16> to vector<1x32x96xbf16>
    %126 = vector.shape_cast %125 : vector<1x32x96xbf16> to vector<32x96xbf16>
    %127 = vector.extract_strided_slice %6 {offsets = [1, 0, 0], sizes = [1, 32, 32], strides = [1, 1, 1]} : vector<2x96x32xbf16> to vector<1x32x32xbf16>
    %128 = vector.shape_cast %127 : vector<1x32x32xbf16> to vector<32x32xbf16>
    %cst_50 = arith.constant dense<0.000000e+00> : vector<16x96xf32>
    %129 = tpu.matmul %124, %126, %cst_50 {dimension_numbers = #tpu.dot_dimension_numbers<[1], [0], [0], [1], [0, 0, 1, 1], [], []>} : vector<16x32xbf16>, vector<32x96xbf16>, vector<16x96xf32> -> vector<16x96xf32>
    %130 = arith.truncf %129 : vector<16x96xf32> to vector<16x96xbf16>
    %131 = vector.shape_cast %130 : vector<16x96xbf16> to vector<2x8x96xbf16>
    %132 = vector.extract_strided_slice %131 {offsets = [0, 0, 0], sizes = [2, 8, 16], strides = [1, 1, 1]} : vector<2x8x96xbf16> to vector<2x8x16xbf16>
    %133 = vector.extract_strided_slice %131 {offsets = [0, 0, 32], sizes = [2, 8, 16], strides = [1, 1, 1]} : vector<2x8x96xbf16> to vector<2x8x16xbf16>
    %134 = vector.extract_strided_slice %131 {offsets = [0, 0, 64], sizes = [2, 8, 16], strides = [1, 1, 1]} : vector<2x8x96xbf16> to vector<2x8x16xbf16>
    "tpu.trace_start"() <{level = 10 : i32, message = "bqd,bkd->bqk"}> : () -> ()
    %cst_51 = arith.constant dense<0.000000e+00> : vector<2x8x8xf32>
    %135 = tpu.matmul %132, %133, %cst_51 {dimension_numbers = #tpu.dot_dimension_numbers<[2], [2], [1], [1], [0, 0, 0, 1, 1, 1], [0], [0]>} : vector<2x8x16xbf16>, vector<2x8x16xbf16>, vector<2x8x8xf32> -> vector<2x8x8xf32>
    "tpu.trace_stop"() : () -> ()
    %136 = vector.extract_strided_slice %1 {offsets = [0, 0, 0], sizes = [1, 8, 8], strides = [1, 1, 1]} : vector<2x8x8xf32> to vector<1x8x8xf32>
    %137 = vector.shape_cast %136 : vector<1x8x8xf32> to vector<8x8xf32>
    %138 = vector.shape_cast %137 : vector<8x8xf32> to vector<1x8x8xf32>
    %139 = vector.broadcast %138 : vector<1x8x8xf32> to vector<2x8x8xf32>
    %140 = arith.addf %135, %139 : vector<2x8x8xf32>
    %141 = vector.broadcast %0 : vector<2x1x8xf32> to vector<2x8x8xf32>
    %142 = arith.addf %140, %141 : vector<2x8x8xf32>
    %cst_52 = arith.constant dense<0xFF800000> : vector<2x8xf32>
    %143 = vector.multi_reduction <maximumf>, %142, %cst_52 [2] : vector<2x8x8xf32> to vector<2x8xf32>
    %144 = vector.shape_cast %143 : vector<2x8xf32> to vector<2x8x1xf32>
    %145 = vector.broadcast %144 : vector<2x8x1xf32> to vector<2x8x8xf32>
    %146 = arith.subf %142, %145 : vector<2x8x8xf32>
    %147 = math.exp %146 : vector<2x8x8xf32>
    %cst_53 = arith.constant dense<0.000000e+00> : vector<2x8xf32>
    %148 = vector.multi_reduction <add>, %147, %cst_53 [2] : vector<2x8x8xf32> to vector<2x8xf32>
    %149 = vector.shape_cast %148 : vector<2x8xf32> to vector<2x8x1xf32>
    %cst_54 = arith.constant 9.99999971E-10 : f32
    %150 = vector.broadcast %cst_54 : f32 to vector<2x8x1xf32>
    %151 = arith.maximumf %149, %150 : vector<2x8x1xf32>
    %152 = tpu.reciprocal %151 {approx = true} : vector<2x8x1xf32> -> vector<2x8x1xf32>
    %153 = vector.broadcast %152 : vector<2x8x1xf32> to vector<2x8x8xf32>
    %154 = arith.mulf %147, %153 : vector<2x8x8xf32>
    %155 = arith.truncf %154 : vector<2x8x8xf32> to vector<2x8x8xbf16>
    "tpu.trace_start"() <{level = 10 : i32, message = "bqk,bkd->bqd"}> : () -> ()
    %cst_55 = arith.constant dense<0.000000e+00> : vector<2x8x16xf32>
    %156 = tpu.matmul %155, %134, %cst_55 {dimension_numbers = #tpu.dot_dimension_numbers<[2], [1], [1], [2], [0, 0, 0, 1, 1, 2], [0], [0]>} : vector<2x8x8xbf16>, vector<2x8x16xbf16>, vector<2x8x16xf32> -> vector<2x8x16xf32>
    "tpu.trace_stop"() : () -> ()
    %157 = vector.extract_strided_slice %131 {offsets = [0, 0, 16], sizes = [2, 8, 16], strides = [1, 1, 1]} : vector<2x8x96xbf16> to vector<2x8x16xbf16>
    %158 = vector.extract_strided_slice %131 {offsets = [0, 0, 48], sizes = [2, 8, 16], strides = [1, 1, 1]} : vector<2x8x96xbf16> to vector<2x8x16xbf16>
    %159 = vector.extract_strided_slice %131 {offsets = [0, 0, 80], sizes = [2, 8, 16], strides = [1, 1, 1]} : vector<2x8x96xbf16> to vector<2x8x16xbf16>
    "tpu.trace_start"() <{level = 10 : i32, message = "bqd,bkd->bqk"}> : () -> ()
    %cst_56 = arith.constant dense<0.000000e+00> : vector<2x8x8xf32>
    %160 = tpu.matmul %157, %158, %cst_56 {dimension_numbers = #tpu.dot_dimension_numbers<[2], [2], [1], [1], [0, 0, 0, 1, 1, 1], [0], [0]>} : vector<2x8x16xbf16>, vector<2x8x16xbf16>, vector<2x8x8xf32> -> vector<2x8x8xf32>
    "tpu.trace_stop"() : () -> ()
    %161 = vector.extract_strided_slice %1 {offsets = [1, 0, 0], sizes = [1, 8, 8], strides = [1, 1, 1]} : vector<2x8x8xf32> to vector<1x8x8xf32>
    %162 = vector.shape_cast %161 : vector<1x8x8xf32> to vector<8x8xf32>
    %163 = vector.shape_cast %162 : vector<8x8xf32> to vector<1x8x8xf32>
    %164 = vector.broadcast %163 : vector<1x8x8xf32> to vector<2x8x8xf32>
    %165 = arith.addf %160, %164 : vector<2x8x8xf32>
    %166 = vector.broadcast %0 : vector<2x1x8xf32> to vector<2x8x8xf32>
    %167 = arith.addf %165, %166 : vector<2x8x8xf32>
    %cst_57 = arith.constant dense<0xFF800000> : vector<2x8xf32>
    %168 = vector.multi_reduction <maximumf>, %167, %cst_57 [2] : vector<2x8x8xf32> to vector<2x8xf32>
    %169 = vector.shape_cast %168 : vector<2x8xf32> to vector<2x8x1xf32>
    %170 = vector.broadcast %169 : vector<2x8x1xf32> to vector<2x8x8xf32>
    %171 = arith.subf %167, %170 : vector<2x8x8xf32>
    %172 = math.exp %171 : vector<2x8x8xf32>
    %cst_58 = arith.constant dense<0.000000e+00> : vector<2x8xf32>
    %173 = vector.multi_reduction <add>, %172, %cst_58 [2] : vector<2x8x8xf32> to vector<2x8xf32>
    %174 = vector.shape_cast %173 : vector<2x8xf32> to vector<2x8x1xf32>
    %cst_59 = arith.constant 9.99999971E-10 : f32
    %175 = vector.broadcast %cst_59 : f32 to vector<2x8x1xf32>
    %176 = arith.maximumf %174, %175 : vector<2x8x1xf32>
    %177 = tpu.reciprocal %176 {approx = true} : vector<2x8x1xf32> -> vector<2x8x1xf32>
    %178 = vector.broadcast %177 : vector<2x8x1xf32> to vector<2x8x8xf32>
    %179 = arith.mulf %172, %178 : vector<2x8x8xf32>
    %180 = arith.truncf %179 : vector<2x8x8xf32> to vector<2x8x8xbf16>
    "tpu.trace_start"() <{level = 10 : i32, message = "bqk,bkd->bqd"}> : () -> ()
    %cst_60 = arith.constant dense<0.000000e+00> : vector<2x8x16xf32>
    %181 = tpu.matmul %180, %159, %cst_60 {dimension_numbers = #tpu.dot_dimension_numbers<[2], [1], [1], [2], [0, 0, 0, 1, 1, 2], [0], [0]>} : vector<2x8x8xbf16>, vector<2x8x16xbf16>, vector<2x8x16xf32> -> vector<2x8x16xf32>
    "tpu.trace_stop"() : () -> ()
    %182 = tpu.concatenate %156, %181 in 2 : vector<2x8x16xf32>, vector<2x8x16xf32> -> vector<2x8x32xf32>
    %183 = vector.shape_cast %182 : vector<2x8x32xf32> to vector<16x32xf32>
    %184 = arith.truncf %183 : vector<16x32xf32> to vector<16x32xbf16>
    %cst_61 = arith.constant dense<0.000000e+00> : vector<16x32xf32>
    %185 = tpu.matmul %184, %128, %cst_61 {dimension_numbers = #tpu.dot_dimension_numbers<[1], [0], [0], [1], [0, 0, 1, 1], [], []>} : vector<16x32xbf16>, vector<32x32xbf16>, vector<16x32xf32> -> vector<16x32xf32>
    %186 = arith.addf %110, %185 : vector<16x32xf32>
    %187 = vector.extract_strided_slice %3 {offsets = [3, 0], sizes = [1, 32], strides = [1, 1]} : vector<5x32xf32> to vector<1x32xf32>
    %188 = arith.mulf %186, %186 : vector<16x32xf32>
    %cst_62 = arith.constant dense<0.000000e+00> : vector<16xf32>
    %189 = vector.multi_reduction <add>, %188, %cst_62 [1] : vector<16x32xf32> to vector<16xf32>
    %190 = vector.shape_cast %189 : vector<16xf32> to vector<16x1xf32>
    %cst_63 = arith.constant 3.200000e+01 : f32
    %191 = vector.broadcast %cst_63 : f32 to vector<16x1xf32>
    %192 = arith.divf %190, %191 : vector<16x1xf32>
    %cst_64 = arith.constant 9.99999997E-7 : f32
    %193 = vector.broadcast %cst_64 : f32 to vector<16x1xf32>
    %194 = arith.addf %192, %193 : vector<16x1xf32>
    %195 = math.rsqrt %194 : vector<16x1xf32>
    %196 = vector.broadcast %195 : vector<16x1xf32> to vector<16x32xf32>
    %197 = arith.mulf %186, %196 : vector<16x32xf32>
    %198 = vector.broadcast %187 : vector<1x32xf32> to vector<16x32xf32>
    %199 = arith.mulf %197, %198 : vector<16x32xf32>
    %200 = arith.truncf %199 : vector<16x32xf32> to vector<16x32xbf16>
    %201 = vector.extract_strided_slice %5 {offsets = [1, 0, 96], sizes = [1, 32, 64], strides = [1, 1, 1]} : vector<2x32x160xbf16> to vector<1x32x64xbf16>
    %202 = vector.shape_cast %201 : vector<1x32x64xbf16> to vector<32x64xbf16>
    %203 = vector.extract_strided_slice %6 {offsets = [1, 32, 0], sizes = [1, 64, 32], strides = [1, 1, 1]} : vector<2x96x32xbf16> to vector<1x64x32xbf16>
    %204 = vector.shape_cast %203 : vector<1x64x32xbf16> to vector<64x32xbf16>
    %cst_65 = arith.constant dense<0.000000e+00> : vector<16x64xf32>
    %205 = tpu.matmul %200, %202, %cst_65 {dimension_numbers = #tpu.dot_dimension_numbers<[1], [0], [0], [1], [0, 0, 1, 1], [], []>} : vector<16x32xbf16>, vector<32x64xbf16>, vector<16x64xf32> -> vector<16x64xf32>
    %cst_66 = arith.constant 0.000000e+00 : f32
    %206 = vector.broadcast %cst_66 : f32 to vector<16x64xf32>
    %207 = arith.maximumf %205, %206 : vector<16x64xf32>
    %208 = arith.truncf %207 : vector<16x64xf32> to vector<16x64xbf16>
    %cst_67 = arith.constant dense<0.000000e+00> : vector<16x32xf32>
    %209 = tpu.matmul %208, %204, %cst_67 {dimension_numbers = #tpu.dot_dimension_numbers<[1], [0], [0], [1], [0, 0, 1, 1], [], []>} : vector<16x64xbf16>, vector<64x32xbf16>, vector<16x32xf32> -> vector<16x32xf32>
    %210 = arith.addf %186, %209 : vector<16x32xf32>
    %211 = vector.extract_strided_slice %3 {offsets = [4, 0], sizes = [1, 32], strides = [1, 1]} : vector<5x32xf32> to vector<1x32xf32>
    %212 = arith.mulf %210, %210 : vector<16x32xf32>
    %cst_68 = arith.constant dense<0.000000e+00> : vector<16xf32>
    %213 = vector.multi_reduction <add>, %212, %cst_68 [1] : vector<16x32xf32> to vector<16xf32>
    %214 = vector.shape_cast %213 : vector<16xf32> to vector<16x1xf32>
    %cst_69 = arith.constant 3.200000e+01 : f32
    %215 = vector.broadcast %cst_69 : f32 to vector<16x1xf32>
    %216 = arith.divf %214, %215 : vector<16x1xf32>
    %cst_70 = arith.constant 9.99999997E-7 : f32
    %217 = vector.broadcast %cst_70 : f32 to vector<16x1xf32>
    %218 = arith.addf %216, %217 : vector<16x1xf32>
    %219 = math.rsqrt %218 : vector<16x1xf32>
    %220 = vector.broadcast %219 : vector<16x1xf32> to vector<16x32xf32>
    %221 = arith.mulf %210, %220 : vector<16x32xf32>
    %222 = vector.broadcast %211 : vector<1x32xf32> to vector<16x32xf32>
    %223 = arith.mulf %221, %222 : vector<16x32xf32>
    %224 = arith.truncf %223 : vector<16x32xf32> to vector<16x32xbf16>
    %c0_71 = arith.constant 0 : index
    %c0_72 = arith.constant 0 : index
    %c0_73 = arith.constant 0 : index
    %225 = vector.load %arg2[%c0_71, %c0_72, %c0_73] : memref<2x8x32xf32, #tpu.memory_space<vmem>>, vector<2x8x32xf32>
    %226 = vector.shape_cast %225 : vector<2x8x32xf32> to vector<16x32xf32>
    %227 = vector.extract_strided_slice %4 {offsets = [0, 0], sizes = [1, 32], strides = [1, 1]} : vector<7x32xf32> to vector<1x32xf32>
    %228 = arith.mulf %226, %226 : vector<16x32xf32>
    %cst_74 = arith.constant dense<0.000000e+00> : vector<16xf32>
    %229 = vector.multi_reduction <add>, %228, %cst_74 [1] : vector<16x32xf32> to vector<16xf32>
    %230 = vector.shape_cast %229 : vector<16xf32> to vector<16x1xf32>
    %cst_75 = arith.constant 3.200000e+01 : f32
    %231 = vector.broadcast %cst_75 : f32 to vector<16x1xf32>
    %232 = arith.divf %230, %231 : vector<16x1xf32>
    %cst_76 = arith.constant 9.99999997E-7 : f32
    %233 = vector.broadcast %cst_76 : f32 to vector<16x1xf32>
    %234 = arith.addf %232, %233 : vector<16x1xf32>
    %235 = math.rsqrt %234 : vector<16x1xf32>
    %236 = vector.broadcast %235 : vector<16x1xf32> to vector<16x32xf32>
    %237 = arith.mulf %226, %236 : vector<16x32xf32>
    %238 = vector.broadcast %227 : vector<1x32xf32> to vector<16x32xf32>
    %239 = arith.mulf %237, %238 : vector<16x32xf32>
    %240 = arith.truncf %239 : vector<16x32xf32> to vector<16x32xbf16>
    %241 = vector.extract_strided_slice %7 {offsets = [0, 0, 0], sizes = [1, 32, 96], strides = [1, 1, 1]} : vector<2x32x256xbf16> to vector<1x32x96xbf16>
    %242 = vector.shape_cast %241 : vector<1x32x96xbf16> to vector<32x96xbf16>
    %243 = vector.extract_strided_slice %8 {offsets = [0, 0, 0], sizes = [1, 32, 32], strides = [1, 1, 1]} : vector<2x128x32xbf16> to vector<1x32x32xbf16>
    %244 = vector.shape_cast %243 : vector<1x32x32xbf16> to vector<32x32xbf16>
    %cst_77 = arith.constant dense<0.000000e+00> : vector<16x96xf32>
    %245 = tpu.matmul %240, %242, %cst_77 {dimension_numbers = #tpu.dot_dimension_numbers<[1], [0], [0], [1], [0, 0, 1, 1], [], []>} : vector<16x32xbf16>, vector<32x96xbf16>, vector<16x96xf32> -> vector<16x96xf32>
    %246 = arith.truncf %245 : vector<16x96xf32> to vector<16x96xbf16>
    %247 = vector.shape_cast %246 : vector<16x96xbf16> to vector<2x8x96xbf16>
    %248 = vector.extract_strided_slice %247 {offsets = [0, 0, 0], sizes = [2, 8, 16], strides = [1, 1, 1]} : vector<2x8x96xbf16> to vector<2x8x16xbf16>
    %249 = vector.extract_strided_slice %247 {offsets = [0, 0, 32], sizes = [2, 8, 16], strides = [1, 1, 1]} : vector<2x8x96xbf16> to vector<2x8x16xbf16>
    %250 = vector.extract_strided_slice %247 {offsets = [0, 0, 64], sizes = [2, 8, 16], strides = [1, 1, 1]} : vector<2x8x96xbf16> to vector<2x8x16xbf16>
    "tpu.trace_start"() <{level = 10 : i32, message = "bqd,bkd->bqk"}> : () -> ()
    %cst_78 = arith.constant dense<0.000000e+00> : vector<2x8x8xf32>
    %251 = tpu.matmul %248, %249, %cst_78 {dimension_numbers = #tpu.dot_dimension_numbers<[2], [2], [1], [1], [0, 0, 0, 1, 1, 1], [0], [0]>} : vector<2x8x16xbf16>, vector<2x8x16xbf16>, vector<2x8x8xf32> -> vector<2x8x8xf32>
    "tpu.trace_stop"() : () -> ()
    %252 = vector.extract_strided_slice %2 {offsets = [0, 0, 0], sizes = [1, 8, 8], strides = [1, 1, 1]} : vector<2x8x8xf32> to vector<1x8x8xf32>
    %253 = vector.shape_cast %252 : vector<1x8x8xf32> to vector<8x8xf32>
    %254 = vector.shape_cast %253 : vector<8x8xf32> to vector<1x8x8xf32>
    %255 = vector.broadcast %254 : vector<1x8x8xf32> to vector<2x8x8xf32>
    %256 = arith.addf %251, %255 : vector<2x8x8xf32>
    %cst_79 = arith.constant dense<0xFF800000> : vector<2x8xf32>
    %257 = vector.multi_reduction <maximumf>, %256, %cst_79 [2] : vector<2x8x8xf32> to vector<2x8xf32>
    %258 = vector.shape_cast %257 : vector<2x8xf32> to vector<2x8x1xf32>
    %259 = vector.broadcast %258 : vector<2x8x1xf32> to vector<2x8x8xf32>
    %260 = arith.subf %256, %259 : vector<2x8x8xf32>
    %261 = math.exp %260 : vector<2x8x8xf32>
    %cst_80 = arith.constant dense<0.000000e+00> : vector<2x8xf32>
    %262 = vector.multi_reduction <add>, %261, %cst_80 [2] : vector<2x8x8xf32> to vector<2x8xf32>
    %263 = vector.shape_cast %262 : vector<2x8xf32> to vector<2x8x1xf32>
    %cst_81 = arith.constant 9.99999971E-10 : f32
    %264 = vector.broadcast %cst_81 : f32 to vector<2x8x1xf32>
    %265 = arith.maximumf %263, %264 : vector<2x8x1xf32>
    %266 = tpu.reciprocal %265 {approx = true} : vector<2x8x1xf32> -> vector<2x8x1xf32>
    %267 = vector.broadcast %266 : vector<2x8x1xf32> to vector<2x8x8xf32>
    %268 = arith.mulf %261, %267 : vector<2x8x8xf32>
    %269 = arith.truncf %268 : vector<2x8x8xf32> to vector<2x8x8xbf16>
    "tpu.trace_start"() <{level = 10 : i32, message = "bqk,bkd->bqd"}> : () -> ()
    %cst_82 = arith.constant dense<0.000000e+00> : vector<2x8x16xf32>
    %270 = tpu.matmul %269, %250, %cst_82 {dimension_numbers = #tpu.dot_dimension_numbers<[2], [1], [1], [2], [0, 0, 0, 1, 1, 2], [0], [0]>} : vector<2x8x8xbf16>, vector<2x8x16xbf16>, vector<2x8x16xf32> -> vector<2x8x16xf32>
    "tpu.trace_stop"() : () -> ()
    %271 = vector.extract_strided_slice %247 {offsets = [0, 0, 16], sizes = [2, 8, 16], strides = [1, 1, 1]} : vector<2x8x96xbf16> to vector<2x8x16xbf16>
    %272 = vector.extract_strided_slice %247 {offsets = [0, 0, 48], sizes = [2, 8, 16], strides = [1, 1, 1]} : vector<2x8x96xbf16> to vector<2x8x16xbf16>
    %273 = vector.extract_strided_slice %247 {offsets = [0, 0, 80], sizes = [2, 8, 16], strides = [1, 1, 1]} : vector<2x8x96xbf16> to vector<2x8x16xbf16>
    "tpu.trace_start"() <{level = 10 : i32, message = "bqd,bkd->bqk"}> : () -> ()
    %cst_83 = arith.constant dense<0.000000e+00> : vector<2x8x8xf32>
    %274 = tpu.matmul %271, %272, %cst_83 {dimension_numbers = #tpu.dot_dimension_numbers<[2], [2], [1], [1], [0, 0, 0, 1, 1, 1], [0], [0]>} : vector<2x8x16xbf16>, vector<2x8x16xbf16>, vector<2x8x8xf32> -> vector<2x8x8xf32>
    "tpu.trace_stop"() : () -> ()
    %275 = vector.extract_strided_slice %2 {offsets = [1, 0, 0], sizes = [1, 8, 8], strides = [1, 1, 1]} : vector<2x8x8xf32> to vector<1x8x8xf32>
    %276 = vector.shape_cast %275 : vector<1x8x8xf32> to vector<8x8xf32>
    %277 = vector.shape_cast %276 : vector<8x8xf32> to vector<1x8x8xf32>
    %278 = vector.broadcast %277 : vector<1x8x8xf32> to vector<2x8x8xf32>
    %279 = arith.addf %274, %278 : vector<2x8x8xf32>
    %cst_84 = arith.constant dense<0xFF800000> : vector<2x8xf32>
    %280 = vector.multi_reduction <maximumf>, %279, %cst_84 [2] : vector<2x8x8xf32> to vector<2x8xf32>
    %281 = vector.shape_cast %280 : vector<2x8xf32> to vector<2x8x1xf32>
    %282 = vector.broadcast %281 : vector<2x8x1xf32> to vector<2x8x8xf32>
    %283 = arith.subf %279, %282 : vector<2x8x8xf32>
    %284 = math.exp %283 : vector<2x8x8xf32>
    %cst_85 = arith.constant dense<0.000000e+00> : vector<2x8xf32>
    %285 = vector.multi_reduction <add>, %284, %cst_85 [2] : vector<2x8x8xf32> to vector<2x8xf32>
    %286 = vector.shape_cast %285 : vector<2x8xf32> to vector<2x8x1xf32>
    %cst_86 = arith.constant 9.99999971E-10 : f32
    %287 = vector.broadcast %cst_86 : f32 to vector<2x8x1xf32>
    %288 = arith.maximumf %286, %287 : vector<2x8x1xf32>
    %289 = tpu.reciprocal %288 {approx = true} : vector<2x8x1xf32> -> vector<2x8x1xf32>
    %290 = vector.broadcast %289 : vector<2x8x1xf32> to vector<2x8x8xf32>
    %291 = arith.mulf %284, %290 : vector<2x8x8xf32>
    %292 = arith.truncf %291 : vector<2x8x8xf32> to vector<2x8x8xbf16>
    "tpu.trace_start"() <{level = 10 : i32, message = "bqk,bkd->bqd"}> : () -> ()
    %cst_87 = arith.constant dense<0.000000e+00> : vector<2x8x16xf32>
    %293 = tpu.matmul %292, %273, %cst_87 {dimension_numbers = #tpu.dot_dimension_numbers<[2], [1], [1], [2], [0, 0, 0, 1, 1, 2], [0], [0]>} : vector<2x8x8xbf16>, vector<2x8x16xbf16>, vector<2x8x16xf32> -> vector<2x8x16xf32>
    "tpu.trace_stop"() : () -> ()
    %294 = tpu.concatenate %270, %293 in 2 : vector<2x8x16xf32>, vector<2x8x16xf32> -> vector<2x8x32xf32>
    %295 = vector.shape_cast %294 : vector<2x8x32xf32> to vector<16x32xf32>
    %296 = arith.truncf %295 : vector<16x32xf32> to vector<16x32xbf16>
    %cst_88 = arith.constant dense<0.000000e+00> : vector<16x32xf32>
    %297 = tpu.matmul %296, %244, %cst_88 {dimension_numbers = #tpu.dot_dimension_numbers<[1], [0], [0], [1], [0, 0, 1, 1], [], []>} : vector<16x32xbf16>, vector<32x32xbf16>, vector<16x32xf32> -> vector<16x32xf32>
    %298 = arith.addf %226, %297 : vector<16x32xf32>
    %299 = vector.extract_strided_slice %4 {offsets = [1, 0], sizes = [1, 32], strides = [1, 1]} : vector<7x32xf32> to vector<1x32xf32>
    %300 = arith.mulf %298, %298 : vector<16x32xf32>
    %cst_89 = arith.constant dense<0.000000e+00> : vector<16xf32>
    %301 = vector.multi_reduction <add>, %300, %cst_89 [1] : vector<16x32xf32> to vector<16xf32>
    %302 = vector.shape_cast %301 : vector<16xf32> to vector<16x1xf32>
    %cst_90 = arith.constant 3.200000e+01 : f32
    %303 = vector.broadcast %cst_90 : f32 to vector<16x1xf32>
    %304 = arith.divf %302, %303 : vector<16x1xf32>
    %cst_91 = arith.constant 9.99999997E-7 : f32
    %305 = vector.broadcast %cst_91 : f32 to vector<16x1xf32>
    %306 = arith.addf %304, %305 : vector<16x1xf32>
    %307 = math.rsqrt %306 : vector<16x1xf32>
    %308 = vector.broadcast %307 : vector<16x1xf32> to vector<16x32xf32>
    %309 = arith.mulf %298, %308 : vector<16x32xf32>
    %310 = vector.broadcast %299 : vector<1x32xf32> to vector<16x32xf32>
    %311 = arith.mulf %309, %310 : vector<16x32xf32>
    %312 = arith.truncf %311 : vector<16x32xf32> to vector<16x32xbf16>
    %313 = vector.extract_strided_slice %7 {offsets = [0, 0, 96], sizes = [1, 32, 32], strides = [1, 1, 1]} : vector<2x32x256xbf16> to vector<1x32x32xbf16>
    %314 = vector.shape_cast %313 : vector<1x32x32xbf16> to vector<32x32xbf16>
    %315 = vector.extract_strided_slice %7 {offsets = [0, 0, 128], sizes = [1, 32, 64], strides = [1, 1, 1]} : vector<2x32x256xbf16> to vector<1x32x64xbf16>
    %316 = vector.shape_cast %315 : vector<1x32x64xbf16> to vector<32x64xbf16>
    %317 = vector.extract_strided_slice %8 {offsets = [0, 32, 0], sizes = [1, 32, 32], strides = [1, 1, 1]} : vector<2x128x32xbf16> to vector<1x32x32xbf16>
    %318 = vector.shape_cast %317 : vector<1x32x32xbf16> to vector<32x32xbf16>
    %cst_92 = arith.constant dense<0.000000e+00> : vector<16x32xf32>
    %319 = tpu.matmul %312, %314, %cst_92 {dimension_numbers = #tpu.dot_dimension_numbers<[1], [0], [0], [1], [0, 0, 1, 1], [], []>} : vector<16x32xbf16>, vector<32x32xbf16>, vector<16x32xf32> -> vector<16x32xf32>
    %320 = arith.truncf %319 : vector<16x32xf32> to vector<16x32xbf16>
    %321 = vector.shape_cast %320 : vector<16x32xbf16> to vector<2x8x32xbf16>
    %cst_93 = arith.constant dense<0.000000e+00> : vector<16x64xf32>
    %322 = tpu.matmul %224, %316, %cst_93 {dimension_numbers = #tpu.dot_dimension_numbers<[1], [0], [0], [1], [0, 0, 1, 1], [], []>} : vector<16x32xbf16>, vector<32x64xbf16>, vector<16x64xf32> -> vector<16x64xf32>
    %323 = arith.truncf %322 : vector<16x64xf32> to vector<16x64xbf16>
    %324 = vector.shape_cast %323 : vector<16x64xbf16> to vector<2x8x64xbf16>
    %325 = vector.extract_strided_slice %321 {offsets = [0, 0, 0], sizes = [2, 8, 16], strides = [1, 1, 1]} : vector<2x8x32xbf16> to vector<2x8x16xbf16>
    %326 = vector.extract_strided_slice %324 {offsets = [0, 0, 0], sizes = [2, 8, 16], strides = [1, 1, 1]} : vector<2x8x64xbf16> to vector<2x8x16xbf16>
    %327 = vector.extract_strided_slice %324 {offsets = [0, 0, 32], sizes = [2, 8, 16], strides = [1, 1, 1]} : vector<2x8x64xbf16> to vector<2x8x16xbf16>
    "tpu.trace_start"() <{level = 10 : i32, message = "bqd,bkd->bqk"}> : () -> ()
    %cst_94 = arith.constant dense<0.000000e+00> : vector<2x8x8xf32>
    %328 = tpu.matmul %325, %326, %cst_94 {dimension_numbers = #tpu.dot_dimension_numbers<[2], [2], [1], [1], [0, 0, 0, 1, 1, 1], [0], [0]>} : vector<2x8x16xbf16>, vector<2x8x16xbf16>, vector<2x8x8xf32> -> vector<2x8x8xf32>
    "tpu.trace_stop"() : () -> ()
    %329 = vector.broadcast %0 : vector<2x1x8xf32> to vector<2x8x8xf32>
    %330 = arith.addf %328, %329 : vector<2x8x8xf32>
    %cst_95 = arith.constant dense<0xFF800000> : vector<2x8xf32>
    %331 = vector.multi_reduction <maximumf>, %330, %cst_95 [2] : vector<2x8x8xf32> to vector<2x8xf32>
    %332 = vector.shape_cast %331 : vector<2x8xf32> to vector<2x8x1xf32>
    %333 = vector.broadcast %332 : vector<2x8x1xf32> to vector<2x8x8xf32>
    %334 = arith.subf %330, %333 : vector<2x8x8xf32>
    %335 = math.exp %334 : vector<2x8x8xf32>
    %cst_96 = arith.constant dense<0.000000e+00> : vector<2x8xf32>
    %336 = vector.multi_reduction <add>, %335, %cst_96 [2] : vector<2x8x8xf32> to vector<2x8xf32>
    %337 = vector.shape_cast %336 : vector<2x8xf32> to vector<2x8x1xf32>
    %cst_97 = arith.constant 9.99999971E-10 : f32
    %338 = vector.broadcast %cst_97 : f32 to vector<2x8x1xf32>
    %339 = arith.maximumf %337, %338 : vector<2x8x1xf32>
    %340 = tpu.reciprocal %339 {approx = true} : vector<2x8x1xf32> -> vector<2x8x1xf32>
    %341 = vector.broadcast %340 : vector<2x8x1xf32> to vector<2x8x8xf32>
    %342 = arith.mulf %335, %341 : vector<2x8x8xf32>
    %343 = arith.truncf %342 : vector<2x8x8xf32> to vector<2x8x8xbf16>
    "tpu.trace_start"() <{level = 10 : i32, message = "bqk,bkd->bqd"}> : () -> ()
    %cst_98 = arith.constant dense<0.000000e+00> : vector<2x8x16xf32>
    %344 = tpu.matmul %343, %327, %cst_98 {dimension_numbers = #tpu.dot_dimension_numbers<[2], [1], [1], [2], [0, 0, 0, 1, 1, 2], [0], [0]>} : vector<2x8x8xbf16>, vector<2x8x16xbf16>, vector<2x8x16xf32> -> vector<2x8x16xf32>
    "tpu.trace_stop"() : () -> ()
    %345 = vector.extract_strided_slice %321 {offsets = [0, 0, 16], sizes = [2, 8, 16], strides = [1, 1, 1]} : vector<2x8x32xbf16> to vector<2x8x16xbf16>
    %346 = vector.extract_strided_slice %324 {offsets = [0, 0, 16], sizes = [2, 8, 16], strides = [1, 1, 1]} : vector<2x8x64xbf16> to vector<2x8x16xbf16>
    %347 = vector.extract_strided_slice %324 {offsets = [0, 0, 48], sizes = [2, 8, 16], strides = [1, 1, 1]} : vector<2x8x64xbf16> to vector<2x8x16xbf16>
    "tpu.trace_start"() <{level = 10 : i32, message = "bqd,bkd->bqk"}> : () -> ()
    %cst_99 = arith.constant dense<0.000000e+00> : vector<2x8x8xf32>
    %348 = tpu.matmul %345, %346, %cst_99 {dimension_numbers = #tpu.dot_dimension_numbers<[2], [2], [1], [1], [0, 0, 0, 1, 1, 1], [0], [0]>} : vector<2x8x16xbf16>, vector<2x8x16xbf16>, vector<2x8x8xf32> -> vector<2x8x8xf32>
    "tpu.trace_stop"() : () -> ()
    %349 = vector.broadcast %0 : vector<2x1x8xf32> to vector<2x8x8xf32>
    %350 = arith.addf %348, %349 : vector<2x8x8xf32>
    %cst_100 = arith.constant dense<0xFF800000> : vector<2x8xf32>
    %351 = vector.multi_reduction <maximumf>, %350, %cst_100 [2] : vector<2x8x8xf32> to vector<2x8xf32>
    %352 = vector.shape_cast %351 : vector<2x8xf32> to vector<2x8x1xf32>
    %353 = vector.broadcast %352 : vector<2x8x1xf32> to vector<2x8x8xf32>
    %354 = arith.subf %350, %353 : vector<2x8x8xf32>
    %355 = math.exp %354 : vector<2x8x8xf32>
    %cst_101 = arith.constant dense<0.000000e+00> : vector<2x8xf32>
    %356 = vector.multi_reduction <add>, %355, %cst_101 [2] : vector<2x8x8xf32> to vector<2x8xf32>
    %357 = vector.shape_cast %356 : vector<2x8xf32> to vector<2x8x1xf32>
    %cst_102 = arith.constant 9.99999971E-10 : f32
    %358 = vector.broadcast %cst_102 : f32 to vector<2x8x1xf32>
    %359 = arith.maximumf %357, %358 : vector<2x8x1xf32>
    %360 = tpu.reciprocal %359 {approx = true} : vector<2x8x1xf32> -> vector<2x8x1xf32>
    %361 = vector.broadcast %360 : vector<2x8x1xf32> to vector<2x8x8xf32>
    %362 = arith.mulf %355, %361 : vector<2x8x8xf32>
    %363 = arith.truncf %362 : vector<2x8x8xf32> to vector<2x8x8xbf16>
    "tpu.trace_start"() <{level = 10 : i32, message = "bqk,bkd->bqd"}> : () -> ()
    %cst_103 = arith.constant dense<0.000000e+00> : vector<2x8x16xf32>
    %364 = tpu.matmul %363, %347, %cst_103 {dimension_numbers = #tpu.dot_dimension_numbers<[2], [1], [1], [2], [0, 0, 0, 1, 1, 2], [0], [0]>} : vector<2x8x8xbf16>, vector<2x8x16xbf16>, vector<2x8x16xf32> -> vector<2x8x16xf32>
    "tpu.trace_stop"() : () -> ()
    %365 = tpu.concatenate %344, %364 in 2 : vector<2x8x16xf32>, vector<2x8x16xf32> -> vector<2x8x32xf32>
    %366 = vector.shape_cast %365 : vector<2x8x32xf32> to vector<16x32xf32>
    %367 = arith.truncf %366 : vector<16x32xf32> to vector<16x32xbf16>
    %cst_104 = arith.constant dense<0.000000e+00> : vector<16x32xf32>
    %368 = tpu.matmul %367, %318, %cst_104 {dimension_numbers = #tpu.dot_dimension_numbers<[1], [0], [0], [1], [0, 0, 1, 1], [], []>} : vector<16x32xbf16>, vector<32x32xbf16>, vector<16x32xf32> -> vector<16x32xf32>
    %369 = arith.addf %298, %368 : vector<16x32xf32>
    %370 = vector.extract_strided_slice %4 {offsets = [2, 0], sizes = [1, 32], strides = [1, 1]} : vector<7x32xf32> to vector<1x32xf32>
    %371 = arith.mulf %369, %369 : vector<16x32xf32>
    %cst_105 = arith.constant dense<0.000000e+00> : vector<16xf32>
    %372 = vector.multi_reduction <add>, %371, %cst_105 [1] : vector<16x32xf32> to vector<16xf32>
    %373 = vector.shape_cast %372 : vector<16xf32> to vector<16x1xf32>
    %cst_106 = arith.constant 3.200000e+01 : f32
    %374 = vector.broadcast %cst_106 : f32 to vector<16x1xf32>
    %375 = arith.divf %373, %374 : vector<16x1xf32>
    %cst_107 = arith.constant 9.99999997E-7 : f32
    %376 = vector.broadcast %cst_107 : f32 to vector<16x1xf32>
    %377 = arith.addf %375, %376 : vector<16x1xf32>
    %378 = math.rsqrt %377 : vector<16x1xf32>
    %379 = vector.broadcast %378 : vector<16x1xf32> to vector<16x32xf32>
    %380 = arith.mulf %369, %379 : vector<16x32xf32>
    %381 = vector.broadcast %370 : vector<1x32xf32> to vector<16x32xf32>
    %382 = arith.mulf %380, %381 : vector<16x32xf32>
    %383 = arith.truncf %382 : vector<16x32xf32> to vector<16x32xbf16>
    %384 = vector.extract_strided_slice %7 {offsets = [0, 0, 192], sizes = [1, 32, 64], strides = [1, 1, 1]} : vector<2x32x256xbf16> to vector<1x32x64xbf16>
    %385 = vector.shape_cast %384 : vector<1x32x64xbf16> to vector<32x64xbf16>
    %386 = vector.extract_strided_slice %8 {offsets = [0, 64, 0], sizes = [1, 64, 32], strides = [1, 1, 1]} : vector<2x128x32xbf16> to vector<1x64x32xbf16>
    %387 = vector.shape_cast %386 : vector<1x64x32xbf16> to vector<64x32xbf16>
    %cst_108 = arith.constant dense<0.000000e+00> : vector<16x64xf32>
    %388 = tpu.matmul %383, %385, %cst_108 {dimension_numbers = #tpu.dot_dimension_numbers<[1], [0], [0], [1], [0, 0, 1, 1], [], []>} : vector<16x32xbf16>, vector<32x64xbf16>, vector<16x64xf32> -> vector<16x64xf32>
    %cst_109 = arith.constant 0.000000e+00 : f32
    %389 = vector.broadcast %cst_109 : f32 to vector<16x64xf32>
    %390 = arith.maximumf %388, %389 : vector<16x64xf32>
    %391 = arith.truncf %390 : vector<16x64xf32> to vector<16x64xbf16>
    %cst_110 = arith.constant dense<0.000000e+00> : vector<16x32xf32>
    %392 = tpu.matmul %391, %387, %cst_110 {dimension_numbers = #tpu.dot_dimension_numbers<[1], [0], [0], [1], [0, 0, 1, 1], [], []>} : vector<16x64xbf16>, vector<64x32xbf16>, vector<16x32xf32> -> vector<16x32xf32>
    %393 = arith.addf %369, %392 : vector<16x32xf32>
    %394 = vector.extract_strided_slice %4 {offsets = [3, 0], sizes = [1, 32], strides = [1, 1]} : vector<7x32xf32> to vector<1x32xf32>
    %395 = arith.mulf %393, %393 : vector<16x32xf32>
    %cst_111 = arith.constant dense<0.000000e+00> : vector<16xf32>
    %396 = vector.multi_reduction <add>, %395, %cst_111 [1] : vector<16x32xf32> to vector<16xf32>
    %397 = vector.shape_cast %396 : vector<16xf32> to vector<16x1xf32>
    %cst_112 = arith.constant 3.200000e+01 : f32
    %398 = vector.broadcast %cst_112 : f32 to vector<16x1xf32>
    %399 = arith.divf %397, %398 : vector<16x1xf32>
    %cst_113 = arith.constant 9.99999997E-7 : f32
    %400 = vector.broadcast %cst_113 : f32 to vector<16x1xf32>
    %401 = arith.addf %399, %400 : vector<16x1xf32>
    %402 = math.rsqrt %401 : vector<16x1xf32>
    %403 = vector.broadcast %402 : vector<16x1xf32> to vector<16x32xf32>
    %404 = arith.mulf %393, %403 : vector<16x32xf32>
    %405 = vector.broadcast %394 : vector<1x32xf32> to vector<16x32xf32>
    %406 = arith.mulf %404, %405 : vector<16x32xf32>
    %407 = arith.truncf %406 : vector<16x32xf32> to vector<16x32xbf16>
    %408 = vector.extract_strided_slice %7 {offsets = [1, 0, 0], sizes = [1, 32, 96], strides = [1, 1, 1]} : vector<2x32x256xbf16> to vector<1x32x96xbf16>
    %409 = vector.shape_cast %408 : vector<1x32x96xbf16> to vector<32x96xbf16>
    %410 = vector.extract_strided_slice %8 {offsets = [1, 0, 0], sizes = [1, 32, 32], strides = [1, 1, 1]} : vector<2x128x32xbf16> to vector<1x32x32xbf16>
    %411 = vector.shape_cast %410 : vector<1x32x32xbf16> to vector<32x32xbf16>
    %cst_114 = arith.constant dense<0.000000e+00> : vector<16x96xf32>
    %412 = tpu.matmul %407, %409, %cst_114 {dimension_numbers = #tpu.dot_dimension_numbers<[1], [0], [0], [1], [0, 0, 1, 1], [], []>} : vector<16x32xbf16>, vector<32x96xbf16>, vector<16x96xf32> -> vector<16x96xf32>
    %413 = arith.truncf %412 : vector<16x96xf32> to vector<16x96xbf16>
    %414 = vector.shape_cast %413 : vector<16x96xbf16> to vector<2x8x96xbf16>
    %415 = vector.extract_strided_slice %414 {offsets = [0, 0, 0], sizes = [2, 8, 16], strides = [1, 1, 1]} : vector<2x8x96xbf16> to vector<2x8x16xbf16>
    %416 = vector.extract_strided_slice %414 {offsets = [0, 0, 32], sizes = [2, 8, 16], strides = [1, 1, 1]} : vector<2x8x96xbf16> to vector<2x8x16xbf16>
    %417 = vector.extract_strided_slice %414 {offsets = [0, 0, 64], sizes = [2, 8, 16], strides = [1, 1, 1]} : vector<2x8x96xbf16> to vector<2x8x16xbf16>
    "tpu.trace_start"() <{level = 10 : i32, message = "bqd,bkd->bqk"}> : () -> ()
    %cst_115 = arith.constant dense<0.000000e+00> : vector<2x8x8xf32>
    %418 = tpu.matmul %415, %416, %cst_115 {dimension_numbers = #tpu.dot_dimension_numbers<[2], [2], [1], [1], [0, 0, 0, 1, 1, 1], [0], [0]>} : vector<2x8x16xbf16>, vector<2x8x16xbf16>, vector<2x8x8xf32> -> vector<2x8x8xf32>
    "tpu.trace_stop"() : () -> ()
    %419 = vector.extract_strided_slice %2 {offsets = [0, 0, 0], sizes = [1, 8, 8], strides = [1, 1, 1]} : vector<2x8x8xf32> to vector<1x8x8xf32>
    %420 = vector.shape_cast %419 : vector<1x8x8xf32> to vector<8x8xf32>
    %421 = vector.shape_cast %420 : vector<8x8xf32> to vector<1x8x8xf32>
    %422 = vector.broadcast %421 : vector<1x8x8xf32> to vector<2x8x8xf32>
    %423 = arith.addf %418, %422 : vector<2x8x8xf32>
    %cst_116 = arith.constant dense<0xFF800000> : vector<2x8xf32>
    %424 = vector.multi_reduction <maximumf>, %423, %cst_116 [2] : vector<2x8x8xf32> to vector<2x8xf32>
    %425 = vector.shape_cast %424 : vector<2x8xf32> to vector<2x8x1xf32>
    %426 = vector.broadcast %425 : vector<2x8x1xf32> to vector<2x8x8xf32>
    %427 = arith.subf %423, %426 : vector<2x8x8xf32>
    %428 = math.exp %427 : vector<2x8x8xf32>
    %cst_117 = arith.constant dense<0.000000e+00> : vector<2x8xf32>
    %429 = vector.multi_reduction <add>, %428, %cst_117 [2] : vector<2x8x8xf32> to vector<2x8xf32>
    %430 = vector.shape_cast %429 : vector<2x8xf32> to vector<2x8x1xf32>
    %cst_118 = arith.constant 9.99999971E-10 : f32
    %431 = vector.broadcast %cst_118 : f32 to vector<2x8x1xf32>
    %432 = arith.maximumf %430, %431 : vector<2x8x1xf32>
    %433 = tpu.reciprocal %432 {approx = true} : vector<2x8x1xf32> -> vector<2x8x1xf32>
    %434 = vector.broadcast %433 : vector<2x8x1xf32> to vector<2x8x8xf32>
    %435 = arith.mulf %428, %434 : vector<2x8x8xf32>
    %436 = arith.truncf %435 : vector<2x8x8xf32> to vector<2x8x8xbf16>
    "tpu.trace_start"() <{level = 10 : i32, message = "bqk,bkd->bqd"}> : () -> ()
    %cst_119 = arith.constant dense<0.000000e+00> : vector<2x8x16xf32>
    %437 = tpu.matmul %436, %417, %cst_119 {dimension_numbers = #tpu.dot_dimension_numbers<[2], [1], [1], [2], [0, 0, 0, 1, 1, 2], [0], [0]>} : vector<2x8x8xbf16>, vector<2x8x16xbf16>, vector<2x8x16xf32> -> vector<2x8x16xf32>
    "tpu.trace_stop"() : () -> ()
    %438 = vector.extract_strided_slice %414 {offsets = [0, 0, 16], sizes = [2, 8, 16], strides = [1, 1, 1]} : vector<2x8x96xbf16> to vector<2x8x16xbf16>
    %439 = vector.extract_strided_slice %414 {offsets = [0, 0, 48], sizes = [2, 8, 16], strides = [1, 1, 1]} : vector<2x8x96xbf16> to vector<2x8x16xbf16>
    %440 = vector.extract_strided_slice %414 {offsets = [0, 0, 80], sizes = [2, 8, 16], strides = [1, 1, 1]} : vector<2x8x96xbf16> to vector<2x8x16xbf16>
    "tpu.trace_start"() <{level = 10 : i32, message = "bqd,bkd->bqk"}> : () -> ()
    %cst_120 = arith.constant dense<0.000000e+00> : vector<2x8x8xf32>
    %441 = tpu.matmul %438, %439, %cst_120 {dimension_numbers = #tpu.dot_dimension_numbers<[2], [2], [1], [1], [0, 0, 0, 1, 1, 1], [0], [0]>} : vector<2x8x16xbf16>, vector<2x8x16xbf16>, vector<2x8x8xf32> -> vector<2x8x8xf32>
    "tpu.trace_stop"() : () -> ()
    %442 = vector.extract_strided_slice %2 {offsets = [1, 0, 0], sizes = [1, 8, 8], strides = [1, 1, 1]} : vector<2x8x8xf32> to vector<1x8x8xf32>
    %443 = vector.shape_cast %442 : vector<1x8x8xf32> to vector<8x8xf32>
    %444 = vector.shape_cast %443 : vector<8x8xf32> to vector<1x8x8xf32>
    %445 = vector.broadcast %444 : vector<1x8x8xf32> to vector<2x8x8xf32>
    %446 = arith.addf %441, %445 : vector<2x8x8xf32>
    %cst_121 = arith.constant dense<0xFF800000> : vector<2x8xf32>
    %447 = vector.multi_reduction <maximumf>, %446, %cst_121 [2] : vector<2x8x8xf32> to vector<2x8xf32>
    %448 = vector.shape_cast %447 : vector<2x8xf32> to vector<2x8x1xf32>
    %449 = vector.broadcast %448 : vector<2x8x1xf32> to vector<2x8x8xf32>
    %450 = arith.subf %446, %449 : vector<2x8x8xf32>
    %451 = math.exp %450 : vector<2x8x8xf32>
    %cst_122 = arith.constant dense<0.000000e+00> : vector<2x8xf32>
    %452 = vector.multi_reduction <add>, %451, %cst_122 [2] : vector<2x8x8xf32> to vector<2x8xf32>
    %453 = vector.shape_cast %452 : vector<2x8xf32> to vector<2x8x1xf32>
    %cst_123 = arith.constant 9.99999971E-10 : f32
    %454 = vector.broadcast %cst_123 : f32 to vector<2x8x1xf32>
    %455 = arith.maximumf %453, %454 : vector<2x8x1xf32>
    %456 = tpu.reciprocal %455 {approx = true} : vector<2x8x1xf32> -> vector<2x8x1xf32>
    %457 = vector.broadcast %456 : vector<2x8x1xf32> to vector<2x8x8xf32>
    %458 = arith.mulf %451, %457 : vector<2x8x8xf32>
    %459 = arith.truncf %458 : vector<2x8x8xf32> to vector<2x8x8xbf16>
    "tpu.trace_start"() <{level = 10 : i32, message = "bqk,bkd->bqd"}> : () -> ()
    %cst_124 = arith.constant dense<0.000000e+00> : vector<2x8x16xf32>
    %460 = tpu.matmul %459, %440, %cst_124 {dimension_numbers = #tpu.dot_dimension_numbers<[2], [1], [1], [2], [0, 0, 0, 1, 1, 2], [0], [0]>} : vector<2x8x8xbf16>, vector<2x8x16xbf16>, vector<2x8x16xf32> -> vector<2x8x16xf32>
    "tpu.trace_stop"() : () -> ()
    %461 = tpu.concatenate %437, %460 in 2 : vector<2x8x16xf32>, vector<2x8x16xf32> -> vector<2x8x32xf32>
    %462 = vector.shape_cast %461 : vector<2x8x32xf32> to vector<16x32xf32>
    %463 = arith.truncf %462 : vector<16x32xf32> to vector<16x32xbf16>
    %cst_125 = arith.constant dense<0.000000e+00> : vector<16x32xf32>
    %464 = tpu.matmul %463, %411, %cst_125 {dimension_numbers = #tpu.dot_dimension_numbers<[1], [0], [0], [1], [0, 0, 1, 1], [], []>} : vector<16x32xbf16>, vector<32x32xbf16>, vector<16x32xf32> -> vector<16x32xf32>
    %465 = arith.addf %393, %464 : vector<16x32xf32>
    %466 = vector.extract_strided_slice %4 {offsets = [4, 0], sizes = [1, 32], strides = [1, 1]} : vector<7x32xf32> to vector<1x32xf32>
    %467 = arith.mulf %465, %465 : vector<16x32xf32>
    %cst_126 = arith.constant dense<0.000000e+00> : vector<16xf32>
    %468 = vector.multi_reduction <add>, %467, %cst_126 [1] : vector<16x32xf32> to vector<16xf32>
    %469 = vector.shape_cast %468 : vector<16xf32> to vector<16x1xf32>
    %cst_127 = arith.constant 3.200000e+01 : f32
    %470 = vector.broadcast %cst_127 : f32 to vector<16x1xf32>
    %471 = arith.divf %469, %470 : vector<16x1xf32>
    %cst_128 = arith.constant 9.99999997E-7 : f32
    %472 = vector.broadcast %cst_128 : f32 to vector<16x1xf32>
    %473 = arith.addf %471, %472 : vector<16x1xf32>
    %474 = math.rsqrt %473 : vector<16x1xf32>
    %475 = vector.broadcast %474 : vector<16x1xf32> to vector<16x32xf32>
    %476 = arith.mulf %465, %475 : vector<16x32xf32>
    %477 = vector.broadcast %466 : vector<1x32xf32> to vector<16x32xf32>
    %478 = arith.mulf %476, %477 : vector<16x32xf32>
    %479 = arith.truncf %478 : vector<16x32xf32> to vector<16x32xbf16>
    %480 = vector.extract_strided_slice %7 {offsets = [1, 0, 96], sizes = [1, 32, 32], strides = [1, 1, 1]} : vector<2x32x256xbf16> to vector<1x32x32xbf16>
    %481 = vector.shape_cast %480 : vector<1x32x32xbf16> to vector<32x32xbf16>
    %482 = vector.extract_strided_slice %7 {offsets = [1, 0, 128], sizes = [1, 32, 64], strides = [1, 1, 1]} : vector<2x32x256xbf16> to vector<1x32x64xbf16>
    %483 = vector.shape_cast %482 : vector<1x32x64xbf16> to vector<32x64xbf16>
    %484 = vector.extract_strided_slice %8 {offsets = [1, 32, 0], sizes = [1, 32, 32], strides = [1, 1, 1]} : vector<2x128x32xbf16> to vector<1x32x32xbf16>
    %485 = vector.shape_cast %484 : vector<1x32x32xbf16> to vector<32x32xbf16>
    %cst_129 = arith.constant dense<0.000000e+00> : vector<16x32xf32>
    %486 = tpu.matmul %479, %481, %cst_129 {dimension_numbers = #tpu.dot_dimension_numbers<[1], [0], [0], [1], [0, 0, 1, 1], [], []>} : vector<16x32xbf16>, vector<32x32xbf16>, vector<16x32xf32> -> vector<16x32xf32>
    %487 = arith.truncf %486 : vector<16x32xf32> to vector<16x32xbf16>
    %488 = vector.shape_cast %487 : vector<16x32xbf16> to vector<2x8x32xbf16>
    %cst_130 = arith.constant dense<0.000000e+00> : vector<16x64xf32>
    %489 = tpu.matmul %224, %483, %cst_130 {dimension_numbers = #tpu.dot_dimension_numbers<[1], [0], [0], [1], [0, 0, 1, 1], [], []>} : vector<16x32xbf16>, vector<32x64xbf16>, vector<16x64xf32> -> vector<16x64xf32>
    %490 = arith.truncf %489 : vector<16x64xf32> to vector<16x64xbf16>
    %491 = vector.shape_cast %490 : vector<16x64xbf16> to vector<2x8x64xbf16>
    %492 = vector.extract_strided_slice %488 {offsets = [0, 0, 0], sizes = [2, 8, 16], strides = [1, 1, 1]} : vector<2x8x32xbf16> to vector<2x8x16xbf16>
    %493 = vector.extract_strided_slice %491 {offsets = [0, 0, 0], sizes = [2, 8, 16], strides = [1, 1, 1]} : vector<2x8x64xbf16> to vector<2x8x16xbf16>
    %494 = vector.extract_strided_slice %491 {offsets = [0, 0, 32], sizes = [2, 8, 16], strides = [1, 1, 1]} : vector<2x8x64xbf16> to vector<2x8x16xbf16>
    "tpu.trace_start"() <{level = 10 : i32, message = "bqd,bkd->bqk"}> : () -> ()
    %cst_131 = arith.constant dense<0.000000e+00> : vector<2x8x8xf32>
    %495 = tpu.matmul %492, %493, %cst_131 {dimension_numbers = #tpu.dot_dimension_numbers<[2], [2], [1], [1], [0, 0, 0, 1, 1, 1], [0], [0]>} : vector<2x8x16xbf16>, vector<2x8x16xbf16>, vector<2x8x8xf32> -> vector<2x8x8xf32>
    "tpu.trace_stop"() : () -> ()
    %496 = vector.broadcast %0 : vector<2x1x8xf32> to vector<2x8x8xf32>
    %497 = arith.addf %495, %496 : vector<2x8x8xf32>
    %cst_132 = arith.constant dense<0xFF800000> : vector<2x8xf32>
    %498 = vector.multi_reduction <maximumf>, %497, %cst_132 [2] : vector<2x8x8xf32> to vector<2x8xf32>
    %499 = vector.shape_cast %498 : vector<2x8xf32> to vector<2x8x1xf32>
    %500 = vector.broadcast %499 : vector<2x8x1xf32> to vector<2x8x8xf32>
    %501 = arith.subf %497, %500 : vector<2x8x8xf32>
    %502 = math.exp %501 : vector<2x8x8xf32>
    %cst_133 = arith.constant dense<0.000000e+00> : vector<2x8xf32>
    %503 = vector.multi_reduction <add>, %502, %cst_133 [2] : vector<2x8x8xf32> to vector<2x8xf32>
    %504 = vector.shape_cast %503 : vector<2x8xf32> to vector<2x8x1xf32>
    %cst_134 = arith.constant 9.99999971E-10 : f32
    %505 = vector.broadcast %cst_134 : f32 to vector<2x8x1xf32>
    %506 = arith.maximumf %504, %505 : vector<2x8x1xf32>
    %507 = tpu.reciprocal %506 {approx = true} : vector<2x8x1xf32> -> vector<2x8x1xf32>
    %508 = vector.broadcast %507 : vector<2x8x1xf32> to vector<2x8x8xf32>
    %509 = arith.mulf %502, %508 : vector<2x8x8xf32>
    %510 = arith.truncf %509 : vector<2x8x8xf32> to vector<2x8x8xbf16>
    "tpu.trace_start"() <{level = 10 : i32, message = "bqk,bkd->bqd"}> : () -> ()
    %cst_135 = arith.constant dense<0.000000e+00> : vector<2x8x16xf32>
    %511 = tpu.matmul %510, %494, %cst_135 {dimension_numbers = #tpu.dot_dimension_numbers<[2], [1], [1], [2], [0, 0, 0, 1, 1, 2], [0], [0]>} : vector<2x8x8xbf16>, vector<2x8x16xbf16>, vector<2x8x16xf32> -> vector<2x8x16xf32>
    "tpu.trace_stop"() : () -> ()
    %512 = vector.extract_strided_slice %488 {offsets = [0, 0, 16], sizes = [2, 8, 16], strides = [1, 1, 1]} : vector<2x8x32xbf16> to vector<2x8x16xbf16>
    %513 = vector.extract_strided_slice %491 {offsets = [0, 0, 16], sizes = [2, 8, 16], strides = [1, 1, 1]} : vector<2x8x64xbf16> to vector<2x8x16xbf16>
    %514 = vector.extract_strided_slice %491 {offsets = [0, 0, 48], sizes = [2, 8, 16], strides = [1, 1, 1]} : vector<2x8x64xbf16> to vector<2x8x16xbf16>
    "tpu.trace_start"() <{level = 10 : i32, message = "bqd,bkd->bqk"}> : () -> ()
    %cst_136 = arith.constant dense<0.000000e+00> : vector<2x8x8xf32>
    %515 = tpu.matmul %512, %513, %cst_136 {dimension_numbers = #tpu.dot_dimension_numbers<[2], [2], [1], [1], [0, 0, 0, 1, 1, 1], [0], [0]>} : vector<2x8x16xbf16>, vector<2x8x16xbf16>, vector<2x8x8xf32> -> vector<2x8x8xf32>
    "tpu.trace_stop"() : () -> ()
    %516 = vector.broadcast %0 : vector<2x1x8xf32> to vector<2x8x8xf32>
    %517 = arith.addf %515, %516 : vector<2x8x8xf32>
    %cst_137 = arith.constant dense<0xFF800000> : vector<2x8xf32>
    %518 = vector.multi_reduction <maximumf>, %517, %cst_137 [2] : vector<2x8x8xf32> to vector<2x8xf32>
    %519 = vector.shape_cast %518 : vector<2x8xf32> to vector<2x8x1xf32>
    %520 = vector.broadcast %519 : vector<2x8x1xf32> to vector<2x8x8xf32>
    %521 = arith.subf %517, %520 : vector<2x8x8xf32>
    %522 = math.exp %521 : vector<2x8x8xf32>
    %cst_138 = arith.constant dense<0.000000e+00> : vector<2x8xf32>
    %523 = vector.multi_reduction <add>, %522, %cst_138 [2] : vector<2x8x8xf32> to vector<2x8xf32>
    %524 = vector.shape_cast %523 : vector<2x8xf32> to vector<2x8x1xf32>
    %cst_139 = arith.constant 9.99999971E-10 : f32
    %525 = vector.broadcast %cst_139 : f32 to vector<2x8x1xf32>
    %526 = arith.maximumf %524, %525 : vector<2x8x1xf32>
    %527 = tpu.reciprocal %526 {approx = true} : vector<2x8x1xf32> -> vector<2x8x1xf32>
    %528 = vector.broadcast %527 : vector<2x8x1xf32> to vector<2x8x8xf32>
    %529 = arith.mulf %522, %528 : vector<2x8x8xf32>
    %530 = arith.truncf %529 : vector<2x8x8xf32> to vector<2x8x8xbf16>
    "tpu.trace_start"() <{level = 10 : i32, message = "bqk,bkd->bqd"}> : () -> ()
    %cst_140 = arith.constant dense<0.000000e+00> : vector<2x8x16xf32>
    %531 = tpu.matmul %530, %514, %cst_140 {dimension_numbers = #tpu.dot_dimension_numbers<[2], [1], [1], [2], [0, 0, 0, 1, 1, 2], [0], [0]>} : vector<2x8x8xbf16>, vector<2x8x16xbf16>, vector<2x8x16xf32> -> vector<2x8x16xf32>
    "tpu.trace_stop"() : () -> ()
    %532 = tpu.concatenate %511, %531 in 2 : vector<2x8x16xf32>, vector<2x8x16xf32> -> vector<2x8x32xf32>
    %533 = vector.shape_cast %532 : vector<2x8x32xf32> to vector<16x32xf32>
    %534 = arith.truncf %533 : vector<16x32xf32> to vector<16x32xbf16>
    %cst_141 = arith.constant dense<0.000000e+00> : vector<16x32xf32>
    %535 = tpu.matmul %534, %485, %cst_141 {dimension_numbers = #tpu.dot_dimension_numbers<[1], [0], [0], [1], [0, 0, 1, 1], [], []>} : vector<16x32xbf16>, vector<32x32xbf16>, vector<16x32xf32> -> vector<16x32xf32>
    %536 = arith.addf %465, %535 : vector<16x32xf32>
    %537 = vector.extract_strided_slice %4 {offsets = [5, 0], sizes = [1, 32], strides = [1, 1]} : vector<7x32xf32> to vector<1x32xf32>
    %538 = arith.mulf %536, %536 : vector<16x32xf32>
    %cst_142 = arith.constant dense<0.000000e+00> : vector<16xf32>
    %539 = vector.multi_reduction <add>, %538, %cst_142 [1] : vector<16x32xf32> to vector<16xf32>
    %540 = vector.shape_cast %539 : vector<16xf32> to vector<16x1xf32>
    %cst_143 = arith.constant 3.200000e+01 : f32
    %541 = vector.broadcast %cst_143 : f32 to vector<16x1xf32>
    %542 = arith.divf %540, %541 : vector<16x1xf32>
    %cst_144 = arith.constant 9.99999997E-7 : f32
    %543 = vector.broadcast %cst_144 : f32 to vector<16x1xf32>
    %544 = arith.addf %542, %543 : vector<16x1xf32>
    %545 = math.rsqrt %544 : vector<16x1xf32>
    %546 = vector.broadcast %545 : vector<16x1xf32> to vector<16x32xf32>
    %547 = arith.mulf %536, %546 : vector<16x32xf32>
    %548 = vector.broadcast %537 : vector<1x32xf32> to vector<16x32xf32>
    %549 = arith.mulf %547, %548 : vector<16x32xf32>
    %550 = arith.truncf %549 : vector<16x32xf32> to vector<16x32xbf16>
    %551 = vector.extract_strided_slice %7 {offsets = [1, 0, 192], sizes = [1, 32, 64], strides = [1, 1, 1]} : vector<2x32x256xbf16> to vector<1x32x64xbf16>
    %552 = vector.shape_cast %551 : vector<1x32x64xbf16> to vector<32x64xbf16>
    %553 = vector.extract_strided_slice %8 {offsets = [1, 64, 0], sizes = [1, 64, 32], strides = [1, 1, 1]} : vector<2x128x32xbf16> to vector<1x64x32xbf16>
    %554 = vector.shape_cast %553 : vector<1x64x32xbf16> to vector<64x32xbf16>
    %cst_145 = arith.constant dense<0.000000e+00> : vector<16x64xf32>
    %555 = tpu.matmul %550, %552, %cst_145 {dimension_numbers = #tpu.dot_dimension_numbers<[1], [0], [0], [1], [0, 0, 1, 1], [], []>} : vector<16x32xbf16>, vector<32x64xbf16>, vector<16x64xf32> -> vector<16x64xf32>
    %cst_146 = arith.constant 0.000000e+00 : f32
    %556 = vector.broadcast %cst_146 : f32 to vector<16x64xf32>
    %557 = arith.maximumf %555, %556 : vector<16x64xf32>
    %558 = arith.truncf %557 : vector<16x64xf32> to vector<16x64xbf16>
    %cst_147 = arith.constant dense<0.000000e+00> : vector<16x32xf32>
    %559 = tpu.matmul %558, %554, %cst_147 {dimension_numbers = #tpu.dot_dimension_numbers<[1], [0], [0], [1], [0, 0, 1, 1], [], []>} : vector<16x64xbf16>, vector<64x32xbf16>, vector<16x32xf32> -> vector<16x32xf32>
    %560 = arith.addf %536, %559 : vector<16x32xf32>
    %561 = vector.extract_strided_slice %4 {offsets = [6, 0], sizes = [1, 32], strides = [1, 1]} : vector<7x32xf32> to vector<1x32xf32>
    %562 = arith.mulf %560, %560 : vector<16x32xf32>
    %cst_148 = arith.constant dense<0.000000e+00> : vector<16xf32>
    %563 = vector.multi_reduction <add>, %562, %cst_148 [1] : vector<16x32xf32> to vector<16xf32>
    %564 = vector.shape_cast %563 : vector<16xf32> to vector<16x1xf32>
    %cst_149 = arith.constant 3.200000e+01 : f32
    %565 = vector.broadcast %cst_149 : f32 to vector<16x1xf32>
    %566 = arith.divf %564, %565 : vector<16x1xf32>
    %cst_150 = arith.constant 9.99999997E-7 : f32
    %567 = vector.broadcast %cst_150 : f32 to vector<16x1xf32>
    %568 = arith.addf %566, %567 : vector<16x1xf32>
    %569 = math.rsqrt %568 : vector<16x1xf32>
    %570 = vector.broadcast %569 : vector<16x1xf32> to vector<16x32xf32>
    %571 = arith.mulf %560, %570 : vector<16x32xf32>
    %572 = vector.broadcast %561 : vector<1x32xf32> to vector<16x32xf32>
    %573 = arith.mulf %571, %572 : vector<16x32xf32>
    %cst_151 = arith.constant 0.176776692 : f32
    %574 = vector.broadcast %cst_151 : f32 to vector<16x32xf32>
    %575 = arith.mulf %573, %574 : vector<16x32xf32>
    %576 = arith.truncf %575 : vector<16x32xf32> to vector<16x32xbf16>
    %c0_152 = arith.constant 0 : index
    %c0_153 = arith.constant 0 : index
    %577 = vector.load %arg7[%c0_152, %c0_153] : memref<32x64xbf16, #tpu.memory_space<vmem>>, vector<32x64xbf16>
    %cst_154 = arith.constant dense<0.000000e+00> : vector<16x64xf32>
    %578 = tpu.matmul %576, %577, %cst_154 {dimension_numbers = #tpu.dot_dimension_numbers<[1], [0], [0], [1], [0, 0, 1, 1], [], []>} : vector<16x32xbf16>, vector<32x64xbf16>, vector<16x64xf32> -> vector<16x64xf32>
    %c0_155 = arith.constant 0 : index
    %c0_156 = arith.constant 0 : index
    %579 = vector.load %arg3[%c0_155, %c0_156] : memref<16x1xi32, #tpu.memory_space<vmem>>, vector<16x1xi32>
    %cst_157 = arith.constant dense<0xFF800000> : vector<16xf32>
    %580 = vector.multi_reduction <maximumf>, %578, %cst_157 [1] : vector<16x64xf32> to vector<16xf32>
    %581 = vector.shape_cast %580 : vector<16xf32> to vector<16x1xf32>
    %582 = vector.broadcast %581 : vector<16x1xf32> to vector<16x64xf32>
    %583 = arith.subf %578, %582 : vector<16x64xf32>
    %584 = math.exp %583 : vector<16x64xf32>
    %cst_158 = arith.constant dense<0.000000e+00> : vector<16xf32>
    %585 = vector.multi_reduction <add>, %584, %cst_158 [1] : vector<16x64xf32> to vector<16xf32>
    %586 = vector.shape_cast %585 : vector<16xf32> to vector<16x1xf32>
    %587 = math.log %586 : vector<16x1xf32>
    %588 = arith.addf %587, %581 : vector<16x1xf32>
    %589 = tpu.iota {dimensions = array<i32: 1>} : vector<16x64xi32>
    %590 = vector.broadcast %579 : vector<16x1xi32> to vector<16x64xi32>
    %591 = arith.cmpi eq, %589, %590 : vector<16x64xi32>
    %592 = arith.extui %591 : vector<16x64xi1> to vector<16x64xi32>
    %593 = arith.sitofp %592 : vector<16x64xi32> to vector<16x64xf32>
    %594 = arith.mulf %578, %593 : vector<16x64xf32>
    %cst_159 = arith.constant dense<0.000000e+00> : vector<16xf32>
    %595 = vector.multi_reduction <add>, %594, %cst_159 [1] : vector<16x64xf32> to vector<16xf32>
    %596 = vector.shape_cast %595 : vector<16xf32> to vector<16x1xf32>
    %c-100_i32 = arith.constant -100 : i32
    %597 = vector.broadcast %c-100_i32 : i32 to vector<16x1xi32>
    %598 = arith.cmpi ne, %579, %597 : vector<16x1xi32>
    %599 = arith.extui %598 : vector<16x1xi1> to vector<16x1xi32>
    %600 = arith.sitofp %599 : vector<16x1xi32> to vector<16x1xf32>
    %601 = arith.subf %588, %596 : vector<16x1xf32>
    %602 = arith.mulf %601, %600 : vector<16x1xf32>
    %603 = vector.shape_cast %602 : vector<16x1xf32> to vector<1x16x1xf32>
    %cst_160 = arith.constant dense<0.000000e+00> : vector<1xf32>
    %604 = vector.multi_reduction <add>, %603, %cst_160 [1, 2] : vector<1x16x1xf32> to vector<1xf32>
    %605 = vector.shape_cast %604 : vector<1xf32> to vector<1x1x1xf32>
    %606 = vector.extract %605[0, 0, 0] : f32 from vector<1x1x1xf32>
    %607 = vector.broadcast %606 : f32 to vector<1x1x1xf32>
    %608 = vector.shape_cast %600 : vector<16x1xf32> to vector<1x16x1xf32>
    %cst_161 = arith.constant dense<0.000000e+00> : vector<1xf32>
    %609 = vector.multi_reduction <add>, %608, %cst_161 [1, 2] : vector<1x16x1xf32> to vector<1xf32>
    %610 = vector.shape_cast %609 : vector<1xf32> to vector<1x1x1xf32>
    %611 = vector.extract %610[0, 0, 0] : f32 from vector<1x1x1xf32>
    %612 = vector.broadcast %611 : f32 to vector<1x1x1xf32>
    %613 = tpu.concatenate %607, %612 in 2 : vector<1x1x1xf32>, vector<1x1x1xf32> -> vector<1x1x2xf32>
    %c0_162 = arith.constant 0 : index
    %c0_163 = arith.constant 0 : index
    %c0_164 = arith.constant 0 : index
    %614 = vector.load %arg14[%c0_162, %c0_163, %c0_164] : memref<1x1x2xf32, #tpu.memory_space<vmem>>, vector<1x1x2xf32>
    tpu.vector_store %arg14[%c0_162, %c0_163, %c0_164], %613 {strides = array<i32>} : memref<1x1x2xf32, #tpu.memory_space<vmem>>, vector<1x1x2xf32>,
    return
  }
  func.func @transform_0(%arg0: i32) -> (i32, i32, i32) {
    %c0_i32 = arith.constant 0 : i32
    %c0_i32_0 = arith.constant 0 : i32
    %c0_i32_1 = arith.constant 0 : i32
    return %arg0, %c0_i32, %c0_i32_0 : i32, i32, i32
  }
  func.func @transform_1(%arg0: i32) -> (i32, i32, i32) {
    %c0_i32 = arith.constant 0 : i32
    %c0_i32_0 = arith.constant 0 : i32
    %c0_i32_1 = arith.constant 0 : i32
    return %arg0, %c0_i32, %c0_i32_0 : i32, i32, i32
  }
  func.func @transform_2(%arg0: i32) -> (i32, i32) {
    %c0_i32 = arith.constant 0 : i32
    %c0_i32_0 = arith.constant 0 : i32
    return %arg0, %c0_i32 : i32, i32
  }
  func.func @transform_3(%arg0: i32) -> (i32, i32, i32) {
    %c0_i32 = arith.constant 0 : i32
    %c0_i32_0 = arith.constant 0 : i32
    %c0_i32_1 = arith.constant 0 : i32
    return %arg0, %c0_i32, %c0_i32_0 : i32, i32, i32
  }
  func.func @transform_4(%arg0: i32) -> (i32, i32, i32) {
    %c0_i32 = arith.constant 0 : i32
    %c0_i32_0 = arith.constant 0 : i32
    %c0_i32_1 = arith.constant 0 : i32
    %c0_i32_2 = arith.constant 0 : i32
    return %c0_i32, %c0_i32_0, %c0_i32_1 : i32, i32, i32
  }
  func.func @transform_5(%arg0: i32) -> (i32, i32, i32) {
    %c0_i32 = arith.constant 0 : i32
    %c0_i32_0 = arith.constant 0 : i32
    %c0_i32_1 = arith.constant 0 : i32
    %c0_i32_2 = arith.constant 0 : i32
    return %c0_i32, %c0_i32_0, %c0_i32_1 : i32, i32, i32
  }
  func.func @transform_6(%arg0: i32) -> (i32, i32) {
    %c0_i32 = arith.constant 0 : i32
    %c0_i32_0 = arith.constant 0 : i32
    %c0_i32_1 = arith.constant 0 : i32
    return %c0_i32, %c0_i32_0 : i32, i32
  }
  func.func @transform_7(%arg0: i32) -> (i32, i32, i32) {
    %c0_i32 = arith.constant 0 : i32
    %c0_i32_0 = arith.constant 0 : i32
    %c0_i32_1 = arith.constant 0 : i32
    %c0_i32_2 = arith.constant 0 : i32
    return %c0_i32, %c0_i32_0, %c0_i32_1 : i32, i32, i32
  }
  func.func @transform_8(%arg0: i32) -> (i32, i32, i32) {
    %c0_i32 = arith.constant 0 : i32
    %c0_i32_0 = arith.constant 0 : i32
    %c0_i32_1 = arith.constant 0 : i32
    %c0_i32_2 = arith.constant 0 : i32
    return %c0_i32, %c0_i32_0, %c0_i32_1 : i32, i32, i32
  }
  func.func @transform_9(%arg0: i32) -> (i32, i32) {
    %c0_i32 = arith.constant 0 : i32
    %c0_i32_0 = arith.constant 0 : i32
    %c0_i32_1 = arith.constant 0 : i32
    return %c0_i32, %c0_i32_0 : i32, i32
  }
  func.func @transform_10(%arg0: i32) -> (i32, i32, i32) {
    %c0_i32 = arith.constant 0 : i32
    %c0_i32_0 = arith.constant 0 : i32
    %c0_i32_1 = arith.constant 0 : i32
    %c0_i32_2 = arith.constant 0 : i32
    return %c0_i32, %c0_i32_0, %c0_i32_1 : i32, i32, i32
  }
  func.func @transform_11(%arg0: i32) -> (i32, i32, i32) {
    %c0_i32 = arith.constant 0 : i32
    %c0_i32_0 = arith.constant 0 : i32
    %c0_i32_1 = arith.constant 0 : i32
    %c0_i32_2 = arith.constant 0 : i32
    return %c0_i32, %c0_i32_0, %c0_i32_1 : i32, i32, i32
  }
  func.func @transform_12(%arg0: i32) -> (i32, i32) {
    %c0_i32 = arith.constant 0 : i32
    %c0_i32_0 = arith.constant 0 : i32
    %c0_i32_1 = arith.constant 0 : i32
    return %c0_i32, %c0_i32_0 : i32, i32
  }
  func.func @transform_13(%arg0: i32) -> (i32, i32, i32) {
    %c0_i32 = arith.constant 0 : i32
    %c0_i32_0 = arith.constant 0 : i32
    %c0_i32_1 = arith.constant 0 : i32
    return %arg0, %c0_i32, %c0_i32_0 : i32, i32, i32
  }
}

</mosaic_0001>

<bundles_post_ra>
// kernel: t5_generation_forward.1
= control target key start
LH: loop header
LB: loop body
LE: loop exit
PB: predicated region body
PF: predicated region fallthrough
CT: control target
= control target key end

     0   :  { %s6374_s25 = smov 0   ;;  %s7557_s0 = inlined_call_operand.vmem [shape: f32[4,8,32], index: 0, kind: input, shape index: {}]   ;;  %s7558_s1 = inlined_call_operand.vmem [shape: f32[4,8,32], index: 1, kind: input, shape index: {}]   ;;  %s7559_s2 = inlined_call_operand.vmem [shape: s32[32,1], index: 2, kind: input, shape index: {}]   ;;  %s7560_s3 = inlined_call_operand.vmem [shape: f32[4,1,8], index: 3, kind: input, shape index: {}]   ;;  %s7561_s4 = inlined_call_operand.vmem [shape: f32[2,8,8], index: 4, kind: input, shape index: {}]   ;;  %s7562_s5 = inlined_call_operand.vmem [shape: f32[2,8,8], index: 5, kind: input, shape index: {}]   ;;  %s7563_s6 = inlined_call_operand.vmem [shape: bf16[32,64], index: 6, kind: input, shape index: {}]   ;;  %s7564_s7 = inlined_call_operand.vmem [shape: bf16[2,32,160], index: 7, kind: input, shape index: {}]   ;;  %s7565_s8 = inlined_call_operand.vmem [shape: bf16[2,96,32], index: 8, kind: input, shape index: {}]   ;;  %s7566_s9 = inlined_call_operand.vmem [shape: f32[5,32], index: 9, kind: input, shape index: {}]   ;;  %s7567_s10 = inlined_call_operand.vmem [shape: bf16[2,32,256], index: 10, kind: input, shape index: {}]   ;;  %s7568_s11 = inlined_call_operand.vmem [shape: bf16[2,128,32], index: 11, kind: input, shape index: {}]   ;;  %s7569_s12 = inlined_call_operand.vmem [shape: f32[7,32], index: 12, kind: input, shape index: {}]   ;;  %s7570_s13 = inlined_call_operand.vmem [shape: f32[2,1,2], index: 13, kind: output, shape index: {}]  }
   0x1 LB: > { %s6380_s26 = sadd.s32 4294967295, %s6292_s25   ;;  %p5195_p0 = scmp.ge.s32.totalorder %s6292_s25, 1  ;;  %s6292_s25 = sphi %s6374_s25, %s23_s25  }
   0x2   : > { %p420_p1 = scmp.lt.s32.totalorder %s6292_s25, 3 }
   0x4   : > { %p421_p2 = pnand %p5195_p0, %p420_p1 }
   0x5   : > { %s5196_s27 = sshll.u32 (!%p421_p2), %s6380_s26, 1  ;;  %vm587_vm0 = vcmask (!%p421_p2), 261120   ;;  %v6407_v6 = vld [vmem:[%s7564_s7] ss:$8 sps:$4 sm:$0xff] (!%p421_p2)   ;;  %v6294_v7 = vmov (!%p421_p2), 0.0   ;;  %vm6295_vm1 = vmmov (!%p421_p2), 0   ;;  %v603_v14 = vlaneseq (!%p421_p2) }
   0x6   : > { %424 = sbr.rel (%p421_p2) target bundleno = 15285 (0x3bb5), region = 72  ;;  %p477_p3 = scmp.lt.s32.totalorder (!%p421_p2), %s5196_s27, 3  ;;  %5537 = vmatprep.subr.bf16.mxu0 (!%p421_p2), %v6294_v7  ;;  %5541 = vmatprep.mubr.msk.bf16.mxu0 (!%p421_p2), %vm6295_vm1, %v6294_v7  ;;  %v6416_v8 = vld [vmem:[%s7564_s7 + $0x10] ss:$8 sps:$4 sm:$0xff] (!%p421_p2)   ;;  %v6431_v19 = vld [vmem:[%s7566_s9] sm:$0x1f] (!%p421_p2) }
   0x7   : > { %5538 = vmatpush3.bf16.msra.mxu0 (!%p421_p2), %v6407_v6  ;;  %5545 = vmatprep.subr.bf16.mxu1 (!%p421_p2), %v6294_v7  ;;  %v6425_v16 = vshrl.u32 (!%p421_p2), %v603_v14, 7  ;;  %s6296_s21 = smov (!%p421_p2), 96   ;;  %vm674_vm2 = vcmask (!%p421_p2), 130048   ;;  %v6470_v37 = vld [vmem:[%s7561_s4] sm:$0xff] (!%p421_p2)  ;;  %vm783_vm3 = vcmask (!%p421_p2), 64512   ;;  %vm815_vm4 = vcmask (!%p421_p2), 1043456  }
   0x8   : > { %5539 = vmatprep.subr.bf16.mxu0 (!%p421_p2), %v6294_v7  ;;  %5547 = vmatprep.mubr.msk.bf16.mxu1 (!%p421_p2), %vm6295_vm1, %v6294_v7  ;;  %s6299_s15 = smov (!%p421_p2), 112   ;;  %s6300_s18 = smov (!%p421_p2), 48   ;;  %vm1313_vm5 = vcmask (!%p421_p2), 523264   ;;  %vm5081_vm10 = vcmask (!%p421_p2), 7168   ;;  %vm5109_vm11 = vcmask (!%p421_p2), 8192  }
   0x9   : > { %v605_v17 = vsub.s32 (!%p421_p2), 0, %v6425_v16  ;;  %s7571_s29 = smov (!%p421_p2), 32   ;;  %s6302_s17 = smov (!%p421_p2), 16  }
   0xa   : > { %p499_p4 = scmp.lt.s32.totalorder (!%p421_p2), %s6380_s26, 1 }
   0xb   : > { %5540 = vmatpush3.bf16.msra.mxu0 (!%p421_p2), %v6416_v8  ;;  %v606_v21 = vrot.slane (!%p421_p2), %v6431_v19, %v605_v17 }
   0xc   : > { %5551 = vmatprep.subr.bf16.mxu0 (!%p421_p2), %v6294_v7 }
   0xd   : > { %s7575_s27 = smov (!%p477_p3, %s5196_s27), 3  ;;  %s7577_s26 = smov (!%p499_p4, %s6380_s26), 1 }
   0xe   : > { %s6388_s28 = sshll.u32 %s7575_s27, 3  ;;  %s6465_s24 = scalar_lea.vmem %s7560_s3, %s7575_s27 }
   0xf   : > { %s480_s14 = scalar_lea.vmem %s7557_s0, %s6388_s28  ;;  %v6473_v38 = vld [vmem:[%s6465_s24] ss:$0 sm:$0xff]  ;;  %v6478_v45 = vld [vmem:[%s6465_s24 + $0x1] ss:$0 sm:$0xff]  ;;  %s6297_s27 = smov 80  }
  0x10   : > { %v6394_v0 = vld [vmem:[%s480_s14] sm:$0xff]  ;;  %v6396_v1 = vld [vmem:[%s480_s14 + $0x8] sm:$0xff]  ;;  %s6298_s14 = smov 64   ;;  %s486_s22 = scalar_lea.vmem %s7558_s1, %s6388_s28 }
  0x11   : > { %v585_v2 = vmul.f32 %v6394_v0, %v6394_v0  ;;  %v586_v3 = vmul.f32 %v6396_v1, %v6396_v1  ;;  %s7523_s23 = scalar_lea.vmem %s7559_s2, %s6388_s28 }
  0x13   : > { %v588_v4 = vsel %vm587_vm0, %v585_v2, 0.0  ;;  %v591_v5 = vsel %vm587_vm0, %v586_v3, 0.0 }
  0x14   : > { %589 = vadd.xlane.f32.xlu0 %v588_v4 }
  0x18   : > { %592 = vadd.xlane.f32.xlu0 %v591_v5 }
  0xa1   : > { %v590_v9 = vpop.xlane.xlu0 %589 }
  0xa2   : > { %v595_v10 = vmul.f32 0.03125, %v590_v9 }
  0xa4   : > { %v597_v11 = vadd.f32 1e-06, %v595_v10 }
  0xa5   : > { %v593_v12 = vpop.xlane.xlu0 %592 }
  0xa6   : > { %6125 = vrsqrt.f32 %v597_v11  ;;  %v596_v13 = vmul.f32 0.03125, %v593_v12 }
  0xa8   : > { %v598_v15 = vadd.f32 1e-06, %v596_v13 }
  0xaa   : > { %6127 = vrsqrt.f32 %v598_v15 }
  0xb0   : > { %v6126_v18 = vpop.eup %6125 }
  0xb1   : > { %v601_v20 = vmul.f32 %v6126_v18, %v6394_v0 }
  0xb3   : > { %v607_v24 = vmul.f32 %v606_v21, %v601_v20 }
  0xb4   : > { %v6128_v22 = vpop.eup %6127 }
  0xb5   : > { %v602_v23 = vmul.f32 %v6128_v22, %v6396_v1 }
  0xb7   : > { %v608_v25 = vmul.f32 %v606_v21, %v602_v23 }
  0xb9   : > { %v609_v26 = vpack.c.bf16 %v608_v25, %v607_v24 }
  0xbb   : > { %5542 = vmatmul.mubr.msk.bf16.vlgmr.msra.gmra.mrb[0].mxu0 %vm587_vm0, %v609_v26 }
  0xbc   : > { %5553 = vmatprep.mubr.msk.bf16.mxu0 %vm6295_vm1, %v6294_v7 }
 0x18e   : > { %v659_v27 = vpop.f32.mrb[0].mxu0 }
 0x18f   : > { %v6441_v28 = vpack.c.bf16 %v659_v27, %v659_v27  ;;  %v5543_v29 = vpop.f32.mrb[1].mxu0 }
 0x190   : > { %v662_v30 = vpop.f32.mrb[2].mxu0 }
 0x191   : > { %672 = vrot.lane.b32.xlu1 %v6441_v28, %s6296_s21  ;;  %v5544_v31 = vpop.f32.mrb[3].mxu0  ;;  %v6445_v32 = vpack.c.bf16 %v662_v30, %v662_v30 }
 0x195   : > { %721 = vrot.lane.b32.xlu1 %v6445_v32, %s6296_s21 }
 0x203   : > { %v673_v33 = vpop.permute.xlu1 %672 }
 0x204   : > { %v679_v34 = vsel %vm674_vm2, %v673_v33, 0 }
 0x205   : > { %5546 = vmatpush3.bf16.xpose.msra.mxu1 %v679_v34 }
 0x206   : > { %5557 = vmatprep.subr.bf16.mxu1 %v6294_v7 }
 0x207   : > { %v722_v35 = vpop.permute.xlu1 %721 }
 0x208   : > { %v727_v36 = vsel %vm674_vm2, %v722_v35, 0 }
 0x209   : > { %5552 = vmatpush3.bf16.xpose.msra.mxu0 %v727_v36 }
 0x20a   : > { %5563 = vmatprep.subr.bf16.mxu0 %v6294_v7 }
 0x20c   : > { %5548 = vmatmul.mubr.msk.bf16.vlgmr.msra.gmra.mrb[0].mxu1 %vm674_vm2, %v6441_v28 }
 0x20d   : > { %5559 = vmatprep.mubr.msk.bf16.mxu1 %vm6295_vm1, %v6294_v7 }
 0x210   : > { %5554 = vmatmul.mubr.msk.bf16.vlgmr.msra.gmra.mrb[4].mxu0 %vm674_vm2, %v6445_v32 }
 0x211   : > { %5565 = vmatprep.mubr.msk.bf16.mxu0 %vm6295_vm1, %v6294_v7 }
 0x2df   : > { %v715_v39 = vpop.f32.mrb[0].mxu1 }
 0x2e0   : > { %v716_v40 = vadd.f32 %v715_v39, %v6470_v37  ;;  %v5549_v41 = vpop.f32.mrb[1].mxu1 }
 0x2e1   : > { %v718_v42 = vpop.f32.mrb[2].mxu1 }
 0x2e2   : > { %v5550_v43 = vpop.f32.mrb[3].mxu1  ;;  %v781_v44 = vadd.f32 %v6473_v38, %v716_v40  ;;  %v6525_v40 = vld [vmem:[%s7561_s4 + $0x8] sm:$0xff] }
 0x2e3   : > { %v763_v46 = vpop.f32.mrb[4].mxu0 }
 0x2e4   : > { %v764_v47 = vadd.f32 %v763_v46, %v6470_v37  ;;  %v5555_v48 = vpop.f32.mrb[5].mxu0  ;;  %v784_v49 = vsel %vm783_vm3, %v781_v44, -inf }
 0x2e5   : > { %785 = vmax.xlane.f32.xlu0 %v784_v49  ;;  %v766_v50 = vpop.f32.mrb[6].mxu0 }
 0x2e6   : > { %v5556_v51 = vpop.f32.mrb[7].mxu0  ;;  %v782_v52 = vadd.f32 %v6478_v45, %v764_v47 }
 0x2e8   : > { %v787_v53 = vsel %vm783_vm3, %v782_v52, -inf }
 0x2e9   : > { %788 = vmax.xlane.f32.xlu1 %v787_v53 }
 0x2fa   : > { %909 = vrot.lane.b32.xlu1 %v6441_v28, %s6297_s27 }
 0x2fb   : > { %810 = vrot.lane.b32.xlu0 %v6441_v28, %s6298_s14 }
 0x2ff   : > { %859 = vrot.lane.b32.xlu0 %v6445_v32, %s6298_s14 }
 0x372   : > { %v786_v54 = vpop.xlane.xlu0 %785 }
 0x373   : > { %v790_v55 = vsub.f32 %v781_v44, %v786_v54 }
 0x375   : > { %v792_v56 = vmul.f32 1.442695, %v790_v55 }
 0x376   : > { %v811_v57 = vpop.permute.xlu0 %810  ;;  %v789_v58 = vpop.xlane.xlu1 %788 }
 0x377   : > { %6129 = vpow2.f32 %v792_v56  ;;  %v817_v59 = vsel %vm815_vm4, %v811_v57, 0  ;;  %v791_v60 = vsub.f32 %v782_v52, %v789_v58 }
 0x378   : > { %5558 = vmatpush3.bf16.msra.mxu1 %v817_v59 }
 0x379   : > { %v794_v61 = vmul.f32 1.442695, %v791_v60  ;;  %5569 = vmatprep.subr.bf16.mxu1 %v6294_v7 }
 0x37a   : > { %v860_v62 = vpop.permute.xlu0 %859  ;;  %v910_v18 = vpop.permute.xlu1 %909 }
 0x37b   : > { %6131 = vpow2.f32 %v794_v61  ;;  %v865_v63 = vsel %vm815_vm4, %v860_v62, 0  ;;  %v915_v23 = vsel %vm674_vm2, %v910_v18, 0 }
 0x37c   : > { %5564 = vmatpush3.bf16.msra.mxu0 %v865_v63 }
 0x37d   : > { %5575 = vmatprep.subr.bf16.mxu0 %v6294_v7 }
 0x381   : > { %v6130_v2 = vpop.eup %6129 }
 0x382   : > { %v796_v3 = vsel %vm783_vm3, %v6130_v2, 0.0 }
 0x383   : > { %797 = vadd.xlane.f32.xlu0 %v796_v3 }
 0x385   : > { %v6132_v4 = vpop.eup %6131 }
 0x386   : > { %v799_v5 = vsel %vm783_vm3, %v6132_v4, 0.0 }
 0x387   : > { %800 = vadd.xlane.f32.xlu0 %v799_v5 }
 0x39d   : > { %959 = vrot.lane.b32.xlu0 %v6445_v32, %s6297_s27 }
 0x3a1   : > { %907 = vrot.lane.b32.xlu0 %v6441_v28, %s6299_s15 }
 0x3a5   : > { %957 = vrot.lane.b32.xlu0 %v6445_v32, %s6299_s15 }
 0x410   : > { %v798_v9 = vpop.xlane.xlu0 %797 }
 0x411   : > { %v802_v10 = vmax.f32 %v798_v9, 1e-09 }
 0x413   : > { %6133 = vrcp.f32 %v802_v10 }
 0x414   : > { %v801_v11 = vpop.xlane.xlu0 %800 }
 0x415   : > { %v803_v12 = vmax.f32 %v801_v11, 1e-09 }
 0x417   : > { %6135 = vrcp.f32 %v803_v12 }
 0x418   : > { %v960_v22 = vpop.permute.xlu0 %959 }
 0x419   : > { %v965_v26 = vsel %vm674_vm2, %v960_v22, 0 }
 0x41c   : > { %v908_v27 = vpop.permute.xlu0 %907 }
 0x41d   : > { %v6134_v13 = vpop.eup %6133 }
 0x41e   : > { %v806_v15 = vmul.f32 %v6134_v13, %v6130_v2 }
 0x420   : > { %v808_v20 = vpack.c.bf16 %v806_v15, %v806_v15  ;;  %v958_v29 = vpop.permute.xlu0 %957 }
 0x421   : > { %v6136_v21 = vpop.eup %6135 }
 0x422   : > { %5560 = vmatmul.mubr.msk.bf16.vlgmr.msra.gmra.mrb[4].mxu1 %vm783_vm3, %v808_v20  ;;  %v807_v24 = vmul.f32 %v6136_v21, %v6132_v4 }
 0x423   : > { %5570 = vmatpush3.bf16.xpose.msra.mxu1 %v915_v23  ;;  %5571 = vmatprep.mubr.msk.bf16.mxu1 %vm6295_vm1, %v6294_v7 }
 0x424   : > { %v809_v25 = vpack.c.bf16 %v807_v24, %v807_v24  ;;  %5581 = vmatprep.subr.bf16.mxu1 %v6294_v7  ;;  %v6084_v24 = vld [vmem:[%s7565_s8] sm:$0xff]  }
 0x426   : > { %5566 = vmatmul.mubr.msk.bf16.vlgmr.msra.gmra.mrb[8].mxu0 %vm783_vm3, %v809_v25  ;;  %v6085_v25 = vld [vmem:[%s7565_s8 + $0x8] sm:$0xff]  }
 0x427   : > { %5576 = vmatpush3.bf16.xpose.msra.mxu0 %v965_v26  ;;  %5577 = vmatprep.mubr.msk.bf16.mxu0 %vm6295_vm1, %v6294_v7 }
 0x428   : > { %5587 = vmatprep.subr.bf16.mxu0 %v6294_v7 }
 0x42a   : > { %5572 = vmatmul.mubr.msk.bf16.vlgmr.msra.gmra.mrb[8].mxu1 %vm674_vm2, %v908_v27 }
 0x42b   : > { %5583 = vmatprep.mubr.msk.bf16.mxu1 %vm6295_vm1, %v6294_v7 }
 0x42e   : > { %5578 = vmatmul.mubr.msk.bf16.vlgmr.msra.gmra.mrb[12].mxu0 %vm674_vm2, %v958_v29 }
 0x42f   : > { %5589 = vmatprep.mubr.msk.bf16.mxu0 %vm6295_vm1, %v6294_v7 }
 0x4f5   : > { %v6518_v30 = vpop.f32.mrb[4].mxu1 }
 0x4f6   : > { %v5561_v31 = vpop.f32.mrb[5].mxu1 }
 0x4f7   : > { %v856_v33 = vpop.f32.mrb[6].mxu1 }
 0x4f8   : > { %v5562_v34 = vpop.f32.mrb[7].mxu1 }
 0x4f9   : > { %v6520_v35 = vpop.f32.mrb[8].mxu0 }
 0x4fa   : > { %v5567_v36 = vpop.f32.mrb[9].mxu0 }
 0x4fb   : > { %v904_v39 = vpop.f32.mrb[10].mxu0 }
 0x4fc   : > { %v5568_v41 = vpop.f32.mrb[11].mxu0 }
 0x4fd   : > { %v951_v42 = vpop.f32.mrb[8].mxu1  ;;  %v6081_v41 = vld [vmem:[%s7564_s7 + $0x4] ss:$8 sps:$4 sm:$0xff]  }
 0x4fe   : > { %v952_v43 = vadd.f32 %v951_v42, %v6525_v40  ;;  %v5573_v44 = vpop.f32.mrb[9].mxu1 }
 0x4ff   : > { %v954_v46 = vpop.f32.mrb[10].mxu1 }
 0x500   : > { %v5574_v47 = vpop.f32.mrb[11].mxu1  ;;  %v1007_v48 = vadd.f32 %v6473_v38, %v952_v43 }
 0x501   : > { %v1001_v49 = vpop.f32.mrb[12].mxu0 }
 0x502   : > { %v1002_v50 = vadd.f32 %v1001_v49, %v6525_v40  ;;  %v5579_v51 = vpop.f32.mrb[13].mxu0  ;;  %v1009_v52 = vsel %vm783_vm3, %v1007_v48, -inf }
 0x503   : > { %1010 = vmax.xlane.f32.xlu0 %v1009_v52  ;;  %v1004_v53 = vpop.f32.mrb[14].mxu0 }
 0x504   : > { %v5580_v54 = vpop.f32.mrb[15].mxu0  ;;  %v1008_v55 = vadd.f32 %v6478_v45, %v1002_v50 }
 0x506   : > { %v1012_v56 = vsel %vm783_vm3, %v1008_v55, -inf }
 0x507   : > { %1013 = vmax.xlane.f32.xlu1 %v1012_v56 }
 0x518   : > { %1083 = vrot.lane.b32.xlu1 %v6445_v32, %s6300_s18 }
 0x590   : > { %v1011_v57 = vpop.xlane.xlu0 %1010 }
 0x591   : > { %v1015_v58 = vsub.f32 %v1007_v48, %v1011_v57 }
 0x593   : > { %v1017_v59 = vmul.f32 1.442695, %v1015_v58 }
 0x594   : > { %v1014_v60 = vpop.xlane.xlu1 %1013 }
 0x595   : > { %6137 = vpow2.f32 %v1017_v59  ;;  %v1016_v61 = vsub.f32 %v1008_v55, %v1014_v60  ;;  %v6088_v60 = vld [vmem:[%s7565_s8 + $0x18] sm:$0xff]  }
 0x597   : > { %v1019_v62 = vmul.f32 1.442695, %v1016_v61 }
 0x598   : > { %v1084_v63 = vpop.permute.xlu1 %1083 }
 0x599   : > { %6139 = vpow2.f32 %v1019_v62  ;;  %v1089_v2 = vsel %vm815_vm4, %v1084_v63, 0 }
 0x59a   : > { %5588 = vmatpush3.bf16.msra.mxu0 %v1089_v2 }
 0x59b   : > { %5601 = vmatprep.subr.bf16.mxu0 %v6294_v7 }
 0x59f   : > { %v6138_v3 = vpop.eup %6137 }
 0x5a0   : > { %v1021_v4 = vsel %vm783_vm3, %v6138_v3, 0.0 }
 0x5a1   : > { %1022 = vadd.xlane.f32.xlu0 %v1021_v4 }
 0x5a3   : > { %v6140_v5 = vpop.eup %6139 }
 0x5a4   : > { %v1024_v32 = vsel %vm783_vm3, %v6140_v5, 0.0 }
 0x5a5   : > { %1025 = vadd.xlane.f32.xlu0 %v1024_v32 }
 0x5bb   : > { %1035 = vrot.lane.b32.xlu0 %v6441_v28, %s6300_s18 }
 0x5bf   : > { %1229 = vrot.lane.b32.xlu0 %v6407_v6, %s7571_s29 }
 0x62e   : > { %v1023_v9 = vpop.xlane.xlu0 %1022 }
 0x62f   : > { %v1027_v10 = vmax.f32 %v1023_v9, 1e-09  ;;  %v1218_v9 = vsub.s32 1, %v6425_v16 }
 0x631   : > { %6141 = vrcp.f32 %v1027_v10 }
 0x632   : > { %v1026_v11 = vpop.xlane.xlu0 %1025 }
 0x633   : > { %v1028_v12 = vmax.f32 %v1026_v11, 1e-09 }
 0x635   : > { %6143 = vrcp.f32 %v1028_v12  ;;  %v1219_v12 = vrot.slane %v6431_v19, %v1218_v9 }
 0x636   : > { %v1036_v13 = vpop.permute.xlu0 %1035 }
 0x637   : > { %v1041_v15 = vsel %vm815_vm4, %v1036_v13, 0 }
 0x638   : > { %5582 = vmatpush3.bf16.msra.mxu1 %v1041_v15 }
 0x639   : > { %5593 = vmatprep.subr.bf16.mxu1 %v6294_v7 }
 0x63a   : > { %v1230_v49 = vpop.permute.xlu0 %1229 }
 0x63b   : > { %v6142_v18 = vpop.eup %6141 }
 0x63c   : > { %v1031_v20 = vmul.f32 %v6142_v18, %v6138_v3 }
 0x63e   : > { %v1033_v21 = vpack.c.bf16 %v1031_v20, %v1031_v20 }
 0x63f   : > { %v6144_v22 = vpop.eup %6143 }
 0x640   : > { %5584 = vmatmul.mubr.msk.bf16.vlgmr.msra.gmra.mrb[12].mxu1 %vm783_vm3, %v1033_v21  ;;  %v1032_v23 = vmul.f32 %v6144_v22, %v6140_v5  ;;  %v6089_v22 = vld [vmem:[%s7565_s8 + $0x20] sm:$0xff]  }
 0x641   : > { %5597 = vmatprep.mubr.msk.bf16.mxu1 %vm6295_vm1, %v6294_v7  ;;  %5594 = vmatpush3.bf16.msra.mxu1 %v6084_v24 }
 0x642   : > { %v1034_v28 = vpack.c.bf16 %v1032_v23, %v1032_v23  ;;  %5595 = vmatprep.subr.bf16.mxu1 %v6294_v7  ;;  %v6090_v23 = vld [vmem:[%s7565_s8 + $0x28] sm:$0xff]  }
 0x644   : > { %5590 = vmatmul.mubr.msk.bf16.vlgmr.msra.gmra.mrb[16].mxu0 %vm783_vm3, %v1034_v28 }
 0x645   : > { %5605 = vmatprep.mubr.msk.bf16.mxu0 %vm6295_vm1, %v6294_v7  ;;  %5596 = vmatpush3.bf16.msra.mxu1 %v6085_v25 }
 0x646   : > { %5609 = vmatprep.subr.bf16.mxu1 %v6294_v7 }
 0x713   : > { %v1077_v26 = vpop.f32.mrb[12].mxu1 }
 0x714   : > { %v5585_v27 = vpop.f32.mrb[13].mxu1 }
 0x715   : > { %v1080_v29 = vpop.f32.mrb[14].mxu1 }
 0x716   : > { %v5586_v31 = vpop.f32.mrb[15].mxu1 }
 0x717   : > { %v1125_v33 = vpop.f32.mrb[16].mxu0 }
 0x718   : > { %v6047_v34 = vpack.i.bf16 %v1125_v33, %v1077_v26  ;;  %v5591_v36 = vpop.f32.mrb[17].mxu0 }
 0x719   : > { %v1128_v39 = vpop.f32.mrb[18].mxu0 }
 0x71a   : > { %6048 = vrot.lane.b32.xlu1 %v6047_v34, %s6302_s17  ;;  %v5592_v42 = vpop.f32.mrb[19].mxu0 }
 0x71e   : > { %1231 = vrot.lane.b32.xlu1 %v6081_v41, %s7571_s29 }
 0x78c   : > { %v6049_v43 = vpop.permute.xlu1 %6048 }
 0x78d   : > { %v6051_v44 = vunpack.i.h.bf16 %v6049_v43  ;;  %v6050_v6 = vunpack.i.l.bf16 %v6049_v43 }
 0x78f   : > { %v1140_v46 = vsel %vm674_vm2, %v6520_v35, %v6051_v44  ;;  %v1139_v47 = vsel %vm674_vm2, %v6518_v30, %v6050_v6 }
 0x790   : > { %v1141_v48 = vpack.c.bf16 %v1140_v46, %v1139_v47  ;;  %v1232_v50 = vpop.permute.xlu1 %1231  ;;  %v6624_v47 = vld [vmem:[%s7564_s7 + $0x20] ss:$8 sps:$4 sm:$0xff]  }
 0x791   : > { %v1238_v51 = vsel %vm587_vm0, %v1230_v49, %v1232_v50 }
 0x792   : > { %5598 = vmatmul.mubr.msk.bf16.vlgmr.msra.gmra.mrb[16].mxu1 %vm587_vm0, %v1141_v48  ;;  %5602 = vmatpush3.bf16.msra.mxu0 %v1238_v51  ;;  %v6630_v48 = vld [vmem:[%s7564_s7 + $0x30] ss:$8 sps:$4 sm:$0xff]  }
 0x793   : > { %5617 = vmatprep.mubr.msk.bf16.mxu1 %vm6295_vm1, %v6294_v7  ;;  %5603 = vmatprep.subr.bf16.mxu0 %v6294_v7 }
 0x865   : > { %v1191_v52 = vpop.f32.mrb[16].mxu1 }
 0x866   : > { %v1198_v53 = vadd.f32 %v1191_v52, %v6394_v0  ;;  %v5599_v35 = vpop.f32.mrb[17].mxu1  ;;  %v6086_v0 = vld [vmem:[%s7564_s7 + $0x14] ss:$8 sps:$4 sm:$0xff]  }
 0x867   : > { %v1194_v54 = vpop.f32.mrb[18].mxu1 }
 0x868   : > { %v1199_v30 = vadd.f32 %v1194_v54, %v6396_v1  ;;  %v5600_v55 = vpop.f32.mrb[19].mxu1  ;;  %v1200_v56 = vmul.f32 %v1198_v53, %v1198_v53  ;;  %v6087_v1 = vld [vmem:[%s7565_s8 + $0x10] sm:$0xff]   ;;  %v1378_v54 = vsub.s32 2, %v6425_v16 }
 0x869   : > { %5610 = vmatpush3.bf16.msra.mxu1 %v6087_v1 }
 0x86a   : > { %v1202_v57 = vsel %vm587_vm0, %v1200_v56, 0.0  ;;  %v1201_v58 = vmul.f32 %v1199_v30, %v1199_v30  ;;  %5611 = vmatprep.subr.bf16.mxu1 %v6294_v7  ;;  %v1379_v56 = vrot.slane %v6431_v19, %v1378_v54 }
 0x86b   : > { %1203 = vadd.xlane.f32.xlu1 %v1202_v57 }
 0x86c   : > { %v1205_v59 = vsel %vm587_vm0, %v1201_v58, 0.0 }
 0x86d   : > { %1206 = vadd.xlane.f32.xlu0 %v1205_v59  ;;  %5612 = vmatpush3.bf16.msra.mxu1 %v6088_v60 }
 0x86e   : > { %5613 = vmatprep.subr.bf16.mxu1 %v6294_v7 }
 0x871   : > { %5614 = vmatpush3.bf16.msra.mxu1 %v6089_v22 }
 0x872   : > { %5615 = vmatprep.subr.bf16.mxu1 %v6294_v7 }
 0x875   : > { %5616 = vmatpush3.bf16.msra.mxu1 %v6090_v23 }
 0x876   : > { %5635 = vmatprep.subr.bf16.mxu1 %v6294_v7 }
 0x87c   : > { %1233 = vrot.lane.b32.xlu1 %v6416_v8, %s7571_s29 }
 0x883   : > { %1235 = vrot.lane.b32.xlu0 %v6086_v0, %s7571_s29 }
 0x8f8   : > { %v1204_v8 = vpop.xlane.xlu1 %1203 }
 0x8f9   : > { %v1208_v61 = vmul.f32 0.03125, %v1204_v8 }
 0x8fa   : > { %v1207_v62 = vpop.xlane.xlu0 %1206 }
 0x8fb   : > { %v1210_v63 = vadd.f32 1e-06, %v1208_v61  ;;  %v1209_v2 = vmul.f32 0.03125, %v1207_v62 }
 0x8fc   : > { %v1234_v3 = vpop.permute.xlu1 %1233 }
 0x8fd   : > { %6145 = vrsqrt.f32 %v1210_v63  ;;  %v1211_v4 = vadd.f32 1e-06, %v1209_v2 }
 0x8fe   : > { %v1236_v5 = vpop.permute.xlu0 %1235 }
 0x8ff   : > { %6147 = vrsqrt.f32 %v1211_v4  ;;  %v1239_v32 = vsel %vm587_vm0, %v1234_v3, %v1236_v5 }
 0x900   : > { %5604 = vmatpush3.bf16.msra.mxu0 %v1239_v32 }
 0x901   : > { %5621 = vmatprep.subr.bf16.mxu0 %v6294_v7 }
 0x907   : > { %v6146_v10 = vpop.eup %6145 }
 0x908   : > { %v1214_v11 = vmul.f32 %v6146_v10, %v1198_v53 }
 0x909   : > { %v6148_v13 = vpop.eup %6147 }
 0x90a   : > { %v1215_v15 = vmul.f32 %v6148_v13, %v1199_v30  ;;  %v1220_v18 = vmul.f32 %v1219_v12, %v1214_v11 }
 0x90c   : > { %v1221_v20 = vmul.f32 %v1219_v12, %v1215_v15 }
 0x90e   : > { %v1222_v21 = vpack.c.bf16 %v1221_v20, %v1220_v18 }
 0x910   : > { %5606 = vmatmul.mubr.msk.bf16.vlgmr.msra.gmra.mrb[20].mxu0 %vm587_vm0, %v1222_v21 }
 0x911   : > { %5625 = vmatprep.mubr.msk.bf16.mxu0 %vm6295_vm1, %v6294_v7  ;;  %5622 = vmatpush3.bf16.msra.mxu0 %v6624_v47 }
 0x912   : > { %5623 = vmatprep.subr.bf16.mxu0 %v6294_v7 }
 0x915   : > { %5624 = vmatpush3.bf16.msra.mxu0 %v6630_v48 }
 0x916   : > { %5629 = vmatprep.subr.bf16.mxu0 %v6294_v7 }
 0x9e3   : > { %v1279_v28 = vpop.f32.mrb[20].mxu0 }
 0x9e4   : > { %v5607_v24 = vpop.f32.mrb[21].mxu0  ;;  %v1286_v26 = vmax.f32 %v1279_v28, 0.0 }
 0x9e5   : > { %v1282_v25 = vpop.f32.mrb[22].mxu0 }
 0x9e6   : > { %v1287_v27 = vmax.f32 %v1282_v25, 0.0  ;;  %v5608_v29 = vpop.f32.mrb[23].mxu0 }
 0x9e8   : > { %v1288_v31 = vpack.c.bf16 %v1287_v27, %v1286_v26 }
 0x9ea   : > { %5618 = vmatmul.mubr.msk.bf16.vlgmr.msra.gmra.mrb[20].mxu1 %vm1313_vm5, %v1288_v31 }
 0x9eb   : > { %5637 = vmatprep.mubr.msk.bf16.mxu1 %vm6295_vm1, %v6294_v7 }
 0xabd   : > { %v1351_v33 = vpop.f32.mrb[20].mxu1 }
 0xabe   : > { %v6611_v34 = vadd.f32 %v1351_v33, %v1198_v53  ;;  %v5619_v36 = vpop.f32.mrb[21].mxu1 }
 0xabf   : > { %v1354_v39 = vpop.f32.mrb[22].mxu1 }
 0xac0   : > { %v6613_v41 = vadd.f32 %v1354_v39, %v1199_v30  ;;  %v5620_v42 = vpop.f32.mrb[23].mxu1  ;;  %v1360_v43 = vmul.f32 %v6611_v34, %v6611_v34 }
 0xac2   : > { %v1362_v44 = vsel %vm587_vm0, %v1360_v43, 0.0  ;;  %v1361_v6 = vmul.f32 %v6613_v41, %v6613_v41 }
 0xac3   : > { %1363 = vadd.xlane.f32.xlu1 %v1362_v44 }
 0xac4   : > { %v1365_v46 = vsel %vm587_vm0, %v1361_v6, 0.0 }
 0xac5   : > { %1366 = vadd.xlane.f32.xlu0 %v1365_v46 }
 0xb50   : > { %v1364_v49 = vpop.xlane.xlu1 %1363 }
 0xb51   : > { %v1368_v50 = vmul.f32 0.03125, %v1364_v49 }
 0xb52   : > { %v1367_v51 = vpop.xlane.xlu0 %1366 }
 0xb53   : > { %v1370_v52 = vadd.f32 1e-06, %v1368_v50  ;;  %v1369_v53 = vmul.f32 0.03125, %v1367_v51 }
 0xb55   : > { %6149 = vrsqrt.f32 %v1370_v52  ;;  %v1371_v35 = vadd.f32 1e-06, %v1369_v53 }
 0xb57   : > { %6151 = vrsqrt.f32 %v1371_v35 }
 0xb5f   : > { %v6150_v30 = vpop.eup %6149 }
 0xb60   : > { %v1374_v55 = vmul.f32 %v6150_v30, %v6611_v34 }
 0xb61   : > { %v6152_v57 = vpop.eup %6151 }
 0xb62   : > { %v1375_v58 = vmul.f32 %v6152_v57, %v6613_v41  ;;  %v1380_v59 = vmul.f32 %v1379_v56, %v1374_v55 }
 0xb64   : > { %v1381_v0 = vmul.f32 %v1379_v56, %v1375_v58 }
 0xb66   : > { %v1382_v1 = vpack.c.bf16 %v1381_v0, %v1380_v59 }
 0xb68   : > { %5626 = vmatmul.mubr.msk.bf16.vlgmr.msra.gmra.mrb[24].mxu0 %vm587_vm0, %v1382_v1 }
 0xb69   : > { %5631 = vmatprep.mubr.msk.bf16.mxu0 %vm6295_vm1, %v6294_v7 }
 0xc3b   : > { %v1432_v60 = vpop.f32.mrb[24].mxu0 }
 0xc3c   : > { %v6644_v8 = vpack.c.bf16 %v1432_v60, %v1432_v60  ;;  %v5627_v61 = vpop.f32.mrb[25].mxu0 }
 0xc3d   : > { %v1435_v62 = vpop.f32.mrb[26].mxu0 }
 0xc3e   : > { %v6646_v63 = vpack.c.bf16 %v1435_v62, %v1435_v62  ;;  %1445 = vrot.lane.b32.xlu0 %v6644_v8, %s6296_s21  ;;  %v5628_v19 = vpop.f32.mrb[27].mxu0 }
 0xc40   : > { %1493 = vrot.lane.b32.xlu1 %v6646_v63, %s6296_s21 }
 0xcb0   : > { %v1446_v2 = vpop.permute.xlu0 %1445 }
 0xcb1   : > { %v1451_v3 = vsel %vm674_vm2, %v1446_v2, 0 }
 0xcb2   : > { %5630 = vmatpush3.bf16.xpose.msra.mxu0 %v1451_v3  ;;  %v1494_v4 = vpop.permute.xlu1 %1493 }
 0xcb3   : > { %v1499_v5 = vsel %vm674_vm2, %v1494_v4, 0  ;;  %5641 = vmatprep.subr.bf16.mxu0 %v6294_v7 }
 0xcb4   : > { %5636 = vmatpush3.bf16.xpose.msra.mxu1 %v1499_v5 }
 0xcb5   : > { %5647 = vmatprep.subr.bf16.mxu1 %v6294_v7 }
 0xcb9   : > { %5632 = vmatmul.mubr.msk.bf16.vlgmr.msra.gmra.mrb[28].mxu0 %vm674_vm2, %v6644_v8 }
 0xcba   : > { %5643 = vmatprep.mubr.msk.bf16.mxu0 %vm6295_vm1, %v6294_v7 }
 0xcbb   : > { %5638 = vmatmul.mubr.msk.bf16.vlgmr.msra.gmra.mrb[24].mxu1 %vm674_vm2, %v6646_v63 }
 0xcbc   : > { %5649 = vmatprep.mubr.msk.bf16.mxu1 %vm6295_vm1, %v6294_v7 }
 0xd8c   : > { %v1487_v32 = vpop.f32.mrb[28].mxu0 }
 0xd8d   : > { %v1488_v10 = vadd.f32 %v1487_v32, %v6470_v37  ;;  %v5633_v11 = vpop.f32.mrb[29].mxu0 }
 0xd8e   : > { %v1490_v12 = vpop.f32.mrb[30].mxu0  ;;  %v1535_v13 = vpop.f32.mrb[24].mxu1 }
 0xd8f   : > { %v1536_v15 = vadd.f32 %v1535_v13, %v6470_v37  ;;  %v5634_v18 = vpop.f32.mrb[31].mxu0  ;;  %v5639_v20 = vpop.f32.mrb[25].mxu1  ;;  %v1541_v21 = vadd.f32 %v6473_v38, %v1488_v10 }
 0xd90   : > { %v1538_v22 = vpop.f32.mrb[26].mxu1 }
 0xd91   : > { %v5640_v23 = vpop.f32.mrb[27].mxu1  ;;  %v1543_v28 = vsel %vm783_vm3, %v1541_v21, -inf  ;;  %v1542_v24 = vadd.f32 %v6478_v45, %v1536_v15 }
 0xd92   : > { %1544 = vmax.xlane.f32.xlu1 %v1543_v28 }
 0xd93   : > { %v1546_v25 = vsel %vm783_vm3, %v1542_v24, -inf }
 0xd94   : > { %1547 = vmax.xlane.f32.xlu0 %v1546_v25 }
 0xda3   : > { %1569 = vrot.lane.b32.xlu1 %v6644_v8, %s6298_s14 }
 0xda7   : > { %1667 = vrot.lane.b32.xlu1 %v6644_v8, %s6297_s27 }
 0xdab   : > { %1717 = vrot.lane.b32.xlu1 %v6646_v63, %s6297_s27 }
 0xdaf   : > { %1665 = vrot.lane.b32.xlu1 %v6644_v8, %s6299_s15 }
 0xe1f   : > { %v1545_v37 = vpop.xlane.xlu1 %1544 }
 0xe20   : > { %v1549_v26 = vsub.f32 %v1541_v21, %v1545_v37 }
 0xe21   : > { %v1548_v27 = vpop.xlane.xlu0 %1547 }
 0xe22   : > { %v1551_v29 = vmul.f32 1.442695, %v1549_v26  ;;  %v1550_v31 = vsub.f32 %v1542_v24, %v1548_v27 }
 0xe23   : > { %v1570_v33 = vpop.permute.xlu1 %1569 }
 0xe24   : > { %6153 = vpow2.f32 %v1551_v29  ;;  %v1553_v36 = vmul.f32 1.442695, %v1550_v31  ;;  %v1575_v39 = vsel %vm815_vm4, %v1570_v33, 0 }
 0xe25   : > { %5642 = vmatpush3.bf16.msra.mxu0 %v1575_v39 }
 0xe26   : > { %6155 = vpow2.f32 %v1553_v36  ;;  %5653 = vmatprep.subr.bf16.mxu0 %v6294_v7 }
 0xe27   : > { %v1668_v30 = vpop.permute.xlu1 %1667 }
 0xe28   : > { %v1673_v58 = vsel %vm674_vm2, %v1668_v30, 0 }
 0xe2b   : > { %v1718_v0 = vpop.permute.xlu1 %1717 }
 0xe2c   : > { %v1723_v60 = vsel %vm674_vm2, %v1718_v0, 0 }
 0xe2e   : > { %v6154_v42 = vpop.eup %6153 }
 0xe2f   : > { %v1555_v43 = vsel %vm783_vm3, %v6154_v42, 0.0  ;;  %v1666_v61 = vpop.permute.xlu1 %1665 }
 0xe30   : > { %v6156_v44 = vpop.eup %6155  ;;  %1556 = vadd.xlane.f32.xlu0 %v1555_v43 }
 0xe31   : > { %v1558_v6 = vsel %vm783_vm3, %v6156_v44, 0.0 }
 0xe34   : > { %1559 = vadd.xlane.f32.xlu0 %v1558_v6 }
 0xe4a   : > { %1617 = vrot.lane.b32.xlu0 %v6646_v63, %s6298_s14 }
 0xe4e   : > { %1715 = vrot.lane.b32.xlu0 %v6646_v63, %s6299_s15 }
 0xebd   : > { %v1557_v46 = vpop.xlane.xlu0 %1556 }
 0xebe   : > { %v1561_v49 = vmax.f32 %v1557_v46, 1e-09 }
 0xec0   : > { %6157 = vrcp.f32 %v1561_v49 }
 0xec1   : > { %v1560_v50 = vpop.xlane.xlu0 %1559 }
 0xec2   : > { %v1562_v51 = vmax.f32 %v1560_v50, 1e-09 }
 0xec4   : > { %6159 = vrcp.f32 %v1562_v51 }
 0xec5   : > { %v1618_v52 = vpop.permute.xlu0 %1617 }
 0xec6   : > { %v1623_v53 = vsel %vm815_vm4, %v1618_v52, 0 }
 0xec7   : > { %5648 = vmatpush3.bf16.msra.mxu1 %v1623_v53 }
 0xec8   : > { %5659 = vmatprep.subr.bf16.mxu1 %v6294_v7 }
 0xec9   : > { %v1716_v62 = vpop.permute.xlu0 %1715 }
 0xeca   : > { %v6158_v35 = vpop.eup %6157 }
 0xecb   : > { %v1565_v55 = vmul.f32 %v6158_v35, %v6154_v42 }
 0xecd   : > { %v1567_v56 = vpack.c.bf16 %v1565_v55, %v1565_v55 }
 0xece   : > { %v6160_v57 = vpop.eup %6159 }
 0xecf   : > { %5644 = vmatmul.mubr.msk.bf16.vlgmr.msra.gmra.mrb[32].mxu0 %vm783_vm3, %v1567_v56  ;;  %v1566_v59 = vmul.f32 %v6160_v57, %v6156_v44  ;;  %v6095_v57 = vld [vmem:[%s7565_s8 + $0x30] sm:$0xff]  }
 0xed0   : > { %5654 = vmatpush3.bf16.xpose.msra.mxu0 %v1673_v58  ;;  %5655 = vmatprep.mubr.msk.bf16.mxu0 %vm6295_vm1, %v6294_v7  ;;  %v6096_v58 = vld [vmem:[%s7565_s8 + $0x38] sm:$0xff]  }
 0xed1   : > { %v1568_v1 = vpack.c.bf16 %v1566_v59, %v1566_v59  ;;  %5665 = vmatprep.subr.bf16.mxu0 %v6294_v7 }
 0xed3   : > { %5650 = vmatmul.mubr.msk.bf16.vlgmr.msra.gmra.mrb[28].mxu1 %vm783_vm3, %v1568_v1 }
 0xed4   : > { %5660 = vmatpush3.bf16.xpose.msra.mxu1 %v1723_v60  ;;  %5661 = vmatprep.mubr.msk.bf16.mxu1 %vm6295_vm1, %v6294_v7 }
 0xed5   : > { %5671 = vmatprep.subr.bf16.mxu1 %v6294_v7 }
 0xed7   : > { %5656 = vmatmul.mubr.msk.bf16.vlgmr.msra.gmra.mrb[36].mxu0 %vm674_vm2, %v1666_v61 }
 0xed8   : > { %5667 = vmatprep.mubr.msk.bf16.mxu0 %vm6295_vm1, %v6294_v7 }
 0xedb   : > { %5662 = vmatmul.mubr.msk.bf16.vlgmr.msra.gmra.mrb[32].mxu1 %vm674_vm2, %v1716_v62 }
 0xedc   : > { %5673 = vmatprep.mubr.msk.bf16.mxu1 %vm6295_vm1, %v6294_v7 }
 0xfa2   : > { %v6704_v19 = vpop.f32.mrb[32].mxu0 }
 0xfa3   : > { %v5645_v2 = vpop.f32.mrb[33].mxu0 }
 0xfa4   : > { %v1614_v3 = vpop.f32.mrb[34].mxu0 }
 0xfa5   : > { %v5646_v4 = vpop.f32.mrb[35].mxu0 }
 0xfa6   : > { %v6706_v5 = vpop.f32.mrb[28].mxu1 }
 0xfa7   : > { %v5651_v32 = vpop.f32.mrb[29].mxu1 }
 0xfa8   : > { %v1662_v10 = vpop.f32.mrb[30].mxu1 }
 0xfa9   : > { %v5652_v11 = vpop.f32.mrb[31].mxu1 }
 0xfaa   : > { %v1709_v12 = vpop.f32.mrb[36].mxu0 }
 0xfab   : > { %v1710_v13 = vadd.f32 %v1709_v12, %v6525_v40  ;;  %v5657_v15 = vpop.f32.mrb[37].mxu0 }
 0xfac   : > { %v1712_v18 = vpop.f32.mrb[38].mxu0 }
 0xfad   : > { %v5658_v20 = vpop.f32.mrb[39].mxu0  ;;  %v1765_v21 = vadd.f32 %v6473_v38, %v1710_v13  ;;  %v6750_v18 = vld [vmem:[%s486_s22 + $0x8] sm:$0xff] }
 0xfae   : > { %v1759_v22 = vpop.f32.mrb[32].mxu1  ;;  %v2142_v20 = vmul.f32 %v6750_v18, %v6750_v18 }
 0xfaf   : > { %v1760_v23 = vadd.f32 %v1759_v22, %v6525_v40  ;;  %v5663_v28 = vpop.f32.mrb[33].mxu1  ;;  %v1767_v24 = vsel %vm783_vm3, %v1765_v21, -inf }
 0xfb0   : > { %v1762_v25 = vpop.f32.mrb[34].mxu1  ;;  %1768 = vmax.xlane.f32.xlu1 %v1767_v24 }
 0xfb1   : > { %v5664_v37 = vpop.f32.mrb[35].mxu1  ;;  %v1766_v26 = vadd.f32 %v6478_v45, %v1760_v23 }
 0xfb3   : > { %v1770_v27 = vsel %vm783_vm3, %v1766_v26, -inf }
 0xfb4   : > { %1771 = vmax.xlane.f32.xlu0 %v1770_v27 }
 0xfc1   : > { %1793 = vrot.lane.b32.xlu1 %v6644_v8, %s6300_s18 }
0x103d   : > { %v1769_v29 = vpop.xlane.xlu1 %1768 }
0x103e   : > { %v1773_v31 = vsub.f32 %v1765_v21, %v1769_v29  ;;  %v6754_v21 = vld [vmem:[%s486_s22] sm:$0xff] }
0x1040   : > { %v1775_v38 = vmul.f32 1.442695, %v1773_v31 }
0x1041   : > { %v1772_v33 = vpop.xlane.xlu0 %1771  ;;  %v1794_v36 = vpop.permute.xlu1 %1793 }
0x1042   : > { %6161 = vpow2.f32 %v1775_v38  ;;  %v1774_v40 = vsub.f32 %v1766_v26, %v1772_v33  ;;  %v1799_v39 = vsel %vm815_vm4, %v1794_v36, 0  ;;  %v6101_v33 = vld [vmem:[%s7565_s8 + $0x40] sm:$0xff]   ;;  %v6102_v36 = vld [vmem:[%s7565_s8 + $0x48] sm:$0xff]  }
0x1043   : > { %5666 = vmatpush3.bf16.msra.mxu0 %v1799_v39 }
0x1044   : > { %v1777_v42 = vmul.f32 1.442695, %v1774_v40  ;;  %5677 = vmatprep.subr.bf16.mxu0 %v6294_v7 }
0x1046   : > { %6163 = vpow2.f32 %v1777_v42 }
0x104c   : > { %v6162_v45 = vpop.eup %6161 }
0x104d   : > { %v1779_v43 = vsel %vm783_vm3, %v6162_v45, 0.0 }
0x104e   : > { %1780 = vadd.xlane.f32.xlu0 %v1779_v43 }
0x1050   : > { %v6164_v44 = vpop.eup %6163 }
0x1051   : > { %v1782_v8 = vsel %vm783_vm3, %v6164_v44, 0.0 }
0x1052   : > { %1783 = vadd.xlane.f32.xlu0 %v1782_v8 }
0x1068   : > { %1841 = vrot.lane.b32.xlu0 %v6646_v63, %s6300_s18 }
0x10db   : > { %v1781_v6 = vpop.xlane.xlu0 %1780 }
0x10dc   : > { %v1785_v46 = vmax.f32 %v1781_v6, 1e-09 }
0x10de   : > { %6165 = vrcp.f32 %v1785_v46 }
0x10df   : > { %v1784_v49 = vpop.xlane.xlu0 %1783 }
0x10e0   : > { %v1786_v50 = vmax.f32 %v1784_v49, 1e-09 }
0x10e2   : > { %6167 = vrcp.f32 %v1786_v50 }
0x10e3   : > { %v1842_v51 = vpop.permute.xlu0 %1841 }
0x10e4   : > { %v1847_v52 = vsel %vm815_vm4, %v1842_v51, 0 }
0x10e5   : > { %5672 = vmatpush3.bf16.msra.mxu1 %v1847_v52 }
0x10e6   : > { %5685 = vmatprep.subr.bf16.mxu1 %v6294_v7 }
0x10e8   : > { %v6166_v53 = vpop.eup %6165 }
0x10e9   : > { %v1789_v35 = vmul.f32 %v6166_v53, %v6162_v45 }
0x10eb   : > { %v1791_v30 = vpack.c.bf16 %v1789_v35, %v1789_v35 }
0x10ec   : > { %v6168_v55 = vpop.eup %6167 }
0x10ed   : > { %5668 = vmatmul.mubr.msk.bf16.vlgmr.msra.gmra.mrb[40].mxu0 %vm783_vm3, %v1791_v30  ;;  %v1790_v56 = vmul.f32 %v6168_v55, %v6164_v44  ;;  %v1976_v30 = vsub.s32 3, %v6425_v16 }
0x10ee   : > { %5681 = vmatprep.mubr.msk.bf16.mxu0 %vm6295_vm1, %v6294_v7  ;;  %5678 = vmatpush3.bf16.msra.mxu0 %v6095_v57  ;;  %v6801_v57 = vld [vmem:[%s7566_s9] sm:$0x1f] }
0x10ef   : > { %v1792_v63 = vpack.c.bf16 %v1790_v56, %v1790_v56  ;;  %5679 = vmatprep.subr.bf16.mxu0 %v6294_v7 }
0x10f1   : > { %5674 = vmatmul.mubr.msk.bf16.vlgmr.msra.gmra.mrb[36].mxu1 %vm783_vm3, %v1792_v63 }
0x10f2   : > { %5689 = vmatprep.mubr.msk.bf16.mxu1 %vm6295_vm1, %v6294_v7  ;;  %5680 = vmatpush3.bf16.msra.mxu0 %v6096_v58  ;;  %v1977_v58 = vrot.slane %v6801_v57, %v1976_v30 }
0x10f3   : > { %5693 = vmatprep.subr.bf16.mxu0 %v6294_v7 }
0x11c0   : > { %v1835_v59 = vpop.f32.mrb[40].mxu0 }
0x11c1   : > { %v5669_v0 = vpop.f32.mrb[41].mxu0 }
0x11c2   : > { %v1838_v1 = vpop.f32.mrb[42].mxu0 }
0x11c3   : > { %v5670_v60 = vpop.f32.mrb[43].mxu0 }
0x11c4   : > { %v1883_v61 = vpop.f32.mrb[36].mxu1  ;;  %v6810_v60 = vld [vmem:[%s7567_s10] sm:$0xff] }
0x11c5   : > { %v6052_v62 = vpack.i.bf16 %v1883_v61, %v1835_v59  ;;  %v5675_v2 = vpop.f32.mrb[37].mxu1  ;;  %v6815_v61 = vld [vmem:[%s7567_s10 + $0x8] sm:$0xff] }
0x11c6   : > { %v1886_v3 = vpop.f32.mrb[38].mxu1  ;;  %v6820_v2 = vld [vmem:[%s7569_s12] sm:$0x7f] }
0x11c7   : > { %v5676_v4 = vpop.f32.mrb[39].mxu1  ;;  %6053 = vrot.lane.b32.xlu1 %v6052_v62, %s6302_s17 }
0x1239   : > { %v6054_v32 = vpop.permute.xlu1 %6053 }
0x123a   : > { %v6056_v10 = vunpack.i.h.bf16 %v6054_v32  ;;  %v6055_v11 = vunpack.i.l.bf16 %v6054_v32  ;;  %v6824_v32 = vcombine.low %v6810_v60, %v6815_v61 }
0x123c   : > { %v1898_v12 = vsel %vm674_vm2, %v6706_v5, %v6056_v10  ;;  %v1897_v13 = vsel %vm674_vm2, %v6704_v19, %v6055_v11  ;;  %v2146_v5 = vsel %vm587_vm0, %v2142_v20, 0.0  ;;  %v2141_v19 = vmul.f32 %v6754_v21, %v6754_v21  ;;  %v6839_v20 = vld [vmem:[%s7567_s10 + $0x18] sm:$0xff] }
0x123d   : > { %v1899_v15 = vpack.c.bf16 %v1898_v12, %v1897_v13  ;;  %2147 = vadd.xlane.f32.xlu1 %v2146_v5  ;;  %v2160_v10 = vrot.slane %v6820_v2, %v605_v17 }
0x123e   : > { %v2143_v22 = vsel %vm587_vm0, %v2141_v19, 0.0 }
0x123f   : > { %5682 = vmatmul.mubr.msk.bf16.vlgmr.msra.gmra.mrb[44].mxu0 %vm587_vm0, %v1899_v15  ;;  %2144 = vadd.xlane.f32.xlu0 %v2143_v22  ;;  %v6834_v15 = vld [vmem:[%s7567_s10 + $0x10] sm:$0xff] }
0x1240   : > { %5701 = vmatprep.mubr.msk.bf16.mxu0 %vm6295_vm1, %v6294_v7  ;;  %5694 = vmatpush3.bf16.msra.mxu0 %v6101_v33  ;;  %v6845_v17 = vcombine.low %v6834_v15, %v6839_v20 }
0x1241   : > { %5695 = vmatprep.subr.bf16.mxu0 %v6294_v7 }
0x1244   : > { %5696 = vmatpush3.bf16.msra.mxu0 %v6102_v36 }
0x1245   : > { %5697 = vmatprep.subr.bf16.mxu0 %v6294_v7 }
0x12cc   : > { %v2145_v40 = vpop.xlane.xlu0 %2144 }
0x12cd   : > { %v2149_v42 = vmul.f32 0.03125, %v2145_v40 }
0x12cf   : > { %v2151_v49 = vadd.f32 1e-06, %v2149_v42 }
0x1312   : > { %v1949_v23 = vpop.f32.mrb[44].mxu0 }
0x1313   : > { %v6761_v28 = vadd.f32 %v1949_v23, %v6611_v34  ;;  %v5683_v24 = vpop.f32.mrb[45].mxu0  ;;  %v6097_v34 = vld [vmem:[%s7564_s7 + $0x24] ss:$8 sps:$4 sm:$0xff]   ;;  %v6103_v23 = vld [vmem:[%s7565_s8 + $0x50] sm:$0xff]  }
0x1314   : > { %v1952_v25 = vpop.f32.mrb[46].mxu0  ;;  %5698 = vmatpush3.bf16.msra.mxu0 %v6103_v23  ;;  %v6104_v24 = vld [vmem:[%s7565_s8 + $0x58] sm:$0xff]  }
0x1315   : > { %v6764_v37 = vadd.f32 %v1952_v25, %v6613_v41  ;;  %v5684_v26 = vpop.f32.mrb[47].mxu0  ;;  %v1958_v27 = vmul.f32 %v6761_v28, %v6761_v28  ;;  %v6098_v41 = vld [vmem:[%s7564_s7 + $0x34] ss:$8 sps:$4 sm:$0xff]   ;;  %5699 = vmatprep.subr.bf16.mxu0 %v6294_v7 }
0x1317   : > { %v1960_v29 = vsel %vm587_vm0, %v1958_v27, 0.0  ;;  %v1959_v31 = vmul.f32 %v6764_v37, %v6764_v37 }
0x1318   : > { %1961 = vadd.xlane.f32.xlu1 %v1960_v29  ;;  %5700 = vmatpush3.bf16.msra.mxu0 %v6104_v24 }
0x1319   : > { %v1963_v38 = vsel %vm587_vm0, %v1959_v31, 0.0  ;;  %5719 = vmatprep.subr.bf16.mxu0 %v6294_v7 }
0x131a   : > { %1964 = vadd.xlane.f32.xlu0 %v1963_v38 }
0x1329   : > { %1989 = vrot.lane.b32.xlu1 %v6097_v34, %s7571_s29 }
0x132d   : > { %1991 = vrot.lane.b32.xlu1 %v6630_v48, %s7571_s29  ;;  %v2148_v48 = vpop.xlane.xlu1 %2147 }
0x132e   : > { %v2150_v39 = vmul.f32 0.03125, %v2148_v48 }
0x1330   : > { %1987 = vrot.lane.b32.xlu0 %v6624_v47, %s7571_s29  ;;  %v2152_v6 = vadd.f32 1e-06, %v2150_v39 }
0x1331   : > { %1993 = vrot.lane.b32.xlu1 %v6098_v41, %s7571_s29 }
0x13a5   : > { %v1962_v47 = vpop.xlane.xlu1 %1961 }
0x13a6   : > { %v1966_v45 = vmul.f32 0.03125, %v1962_v47 }
0x13a7   : > { %v1965_v43 = vpop.xlane.xlu0 %1964 }
0x13a8   : > { %v1968_v44 = vadd.f32 1e-06, %v1966_v45  ;;  %v1967_v8 = vmul.f32 0.03125, %v1965_v43 }
0x13a9   : > { %v1990_v46 = vpop.permute.xlu1 %1989 }
0x13aa   : > { %6169 = vrsqrt.f32 %v1968_v44  ;;  %v1969_v50 = vadd.f32 1e-06, %v1967_v8 }
0x13ab   : > { %v1988_v51 = vpop.permute.xlu0 %1987 }
0x13ac   : > { %6171 = vrsqrt.f32 %v1969_v50  ;;  %v1995_v52 = vsel %vm587_vm0, %v1988_v51, %v1990_v46 }
0x13ad   : > { %6173 = vrsqrt.f32 %v2152_v6  ;;  %v1992_v53 = vpop.permute.xlu1 %1991  ;;  %5686 = vmatpush3.bf16.msra.mxu1 %v1995_v52 }
0x13ae   : > { %6175 = vrsqrt.f32 %v2151_v49  ;;  %5687 = vmatprep.subr.bf16.mxu1 %v6294_v7  ;;  %v507_v49 = vld [vmem:[%s7562_s5] sm:$0xff] }
0x13b1   : > { %v1994_v35 = vpop.permute.xlu1 %1993 }
0x13b2   : > { %v1996_v55 = vsel %vm587_vm0, %v1992_v53, %v1994_v35 }
0x13b3   : > { %5688 = vmatpush3.bf16.msra.mxu1 %v1996_v55 }
0x13b4   : > { %v6170_v56 = vpop.eup %6169  ;;  %5705 = vmatprep.subr.bf16.mxu1 %v6294_v7 }
0x13b5   : > { %v1972_v63 = vmul.f32 %v6170_v56, %v6761_v28 }
0x13b6   : > { %v6172_v59 = vpop.eup %6171 }
0x13b7   : > { %v6174_v0 = vpop.eup %6173  ;;  %v1973_v1 = vmul.f32 %v6172_v59, %v6764_v37  ;;  %v1978_v3 = vmul.f32 %v1977_v58, %v1972_v63 }
0x13b8   : > { %v6176_v62 = vpop.eup %6175  ;;  %v2156_v11 = vmul.f32 %v6174_v0, %v6750_v18 }
0x13b9   : > { %v1979_v4 = vmul.f32 %v1977_v58, %v1973_v1  ;;  %v2155_v12 = vmul.f32 %v6176_v62, %v6754_v21 }
0x13ba   : > { %v2162_v19 = vmul.f32 %v2160_v10, %v2156_v11 }
0x13bb   : > { %v1980_v13 = vpack.c.bf16 %v1979_v4, %v1978_v3  ;;  %v2161_v5 = vmul.f32 %v2160_v10, %v2155_v12 }
0x13bd   : > { %5690 = vmatmul.mubr.msk.bf16.vlgmr.msra.gmra.mrb[40].mxu1 %vm587_vm0, %v1980_v13  ;;  %v2163_v22 = vpack.c.bf16 %v2162_v19, %v2161_v5 }
0x13be   : > { %5706 = vmatpush3.bf16.msra.mxu1 %v6824_v32  ;;  %5709 = vmatprep.mubr.msk.bf16.mxu1 %vm6295_vm1, %v6294_v7 }
0x13bf   : > { %5707 = vmatprep.subr.bf16.mxu1 %v6294_v7 }
0x13c2   : > { %5708 = vmatpush3.bf16.msra.mxu1 %v6845_v17 }
0x13c3   : > { %5713 = vmatprep.subr.bf16.mxu1 %v6294_v7 }
0x13c5   : > { %5710 = vmatmul.mubr.msk.bf16.vlgmr.msra.gmra.mrb[44].mxu1 %vm587_vm0, %v2163_v22 }
0x13c6   : > { %5715 = vmatprep.mubr.msk.bf16.mxu1 %vm6295_vm1, %v6294_v7 }
0x1490   : > { %v2036_v25 = vpop.f32.mrb[40].mxu1 }
0x1491   : > { %v5691_v26 = vpop.f32.mrb[41].mxu1  ;;  %v2043_v29 = vmax.f32 %v2036_v25, 0.0 }
0x1492   : > { %v2039_v27 = vpop.f32.mrb[42].mxu1 }
0x1493   : > { %v2044_v31 = vmax.f32 %v2039_v27, 0.0  ;;  %v5692_v38 = vpop.f32.mrb[43].mxu1 }
0x1495   : > { %v2045_v34 = vpack.c.bf16 %v2044_v31, %v2043_v29 }
0x1497   : > { %5702 = vmatmul.mubr.msk.bf16.vlgmr.msra.gmra.mrb[48].mxu0 %vm1313_vm5, %v2045_v34 }
0x1498   : > { %v2213_v41 = vpop.f32.mrb[44].mxu1  ;;  %5721 = vmatprep.mubr.msk.bf16.mxu0 %vm6295_vm1, %v6294_v7 }
0x1499   : > { %v6866_v33 = vpack.c.bf16 %v2213_v41, %v2213_v41  ;;  %v5711_v36 = vpop.f32.mrb[45].mxu1 }
0x149a   : > { %v2216_v48 = vpop.f32.mrb[46].mxu1 }
0x149b   : > { %v6868_v40 = vpack.c.bf16 %v2216_v48, %v2216_v48  ;;  %2226 = vrot.lane.b32.xlu0 %v6866_v33, %s6296_s21  ;;  %v5712_v39 = vpop.f32.mrb[47].mxu1 }
0x149d   : > { %2274 = vrot.lane.b32.xlu1 %v6868_v40, %s6296_s21 }
0x150d   : > { %v2227_v47 = vpop.permute.xlu0 %2226 }
0x150e   : > { %v2232_v42 = vsel %vm674_vm2, %v2227_v47, 0 }
0x150f   : > { %5714 = vmatpush3.bf16.xpose.msra.mxu1 %v2232_v42  ;;  %v2275_v45 = vpop.permute.xlu1 %2274 }
0x1510   : > { %v2280_v43 = vsel %vm674_vm2, %v2275_v45, 0  ;;  %5725 = vmatprep.subr.bf16.mxu1 %v6294_v7 }
0x1511   : > { %5720 = vmatpush3.bf16.xpose.msra.mxu0 %v2280_v43 }
0x1512   : > { %5731 = vmatprep.subr.bf16.mxu0 %v6294_v7 }
0x1516   : > { %5716 = vmatmul.mubr.msk.bf16.vlgmr.msra.gmra.mrb[48].mxu1 %vm674_vm2, %v6866_v33 }
0x1517   : > { %5727 = vmatprep.mubr.msk.bf16.mxu1 %vm6295_vm1, %v6294_v7 }
0x1518   : > { %5722 = vmatmul.mubr.msk.bf16.vlgmr.msra.gmra.mrb[52].mxu0 %vm674_vm2, %v6868_v40 }
0x1519   : > { %5733 = vmatprep.mubr.msk.bf16.mxu0 %vm6295_vm1, %v6294_v7 }
0x156a   : > { %v6886_v44 = vpop.f32.mrb[48].mxu0 }
0x156b   : > { %v5703_v8 = vpop.f32.mrb[49].mxu0 }
0x156c   : > { %v6888_v6 = vpop.f32.mrb[50].mxu0 }
0x156d   : > { %v5704_v46 = vpop.f32.mrb[51].mxu0 }
0x15e9   : > { %v2268_v50 = vpop.f32.mrb[48].mxu1 }
0x15ea   : > { %v2269_v51 = vadd.f32 %v2268_v50, %v507_v49  ;;  %v5717_v52 = vpop.f32.mrb[49].mxu1 }
0x15eb   : > { %v2271_v53 = vpop.f32.mrb[50].mxu1  ;;  %v2316_v35 = vpop.f32.mrb[52].mxu0 }
0x15ec   : > { %v2317_v55 = vadd.f32 %v2316_v35, %v507_v49  ;;  %v5718_v56 = vpop.f32.mrb[51].mxu1  ;;  %v5723_v63 = vpop.f32.mrb[53].mxu0  ;;  %v2322_v58 = vsel %vm783_vm3, %v2269_v51, -inf }
0x15ed   : > { %2323 = vmax.xlane.f32.xlu0 %v2322_v58  ;;  %v2319_v59 = vpop.f32.mrb[54].mxu0  ;;  %v508_v63 = vld [vmem:[%s7562_s5 + $0x8] sm:$0xff] }
0x15ee   : > { %v5724_v0 = vpop.f32.mrb[55].mxu0  ;;  %v2325_v1 = vsel %vm783_vm3, %v2317_v55, -inf }
0x15ef   : > { %2326 = vmax.xlane.f32.xlu1 %v2325_v1 }
0x1600   : > { %2396 = vrot.lane.b32.xlu1 %v6868_v40, %s6298_s14 }
0x1604   : > { %2446 = vrot.lane.b32.xlu1 %v6866_v33, %s6297_s27 }
0x1608   : > { %2496 = vrot.lane.b32.xlu1 %v6868_v40, %s6297_s27 }
0x160c   : > { %2494 = vrot.lane.b32.xlu1 %v6868_v40, %s6299_s15 }
0x167a   : > { %v2324_v62 = vpop.xlane.xlu0 %2323 }
0x167b   : > { %v2328_v3 = vsub.f32 %v2269_v51, %v2324_v62 }
0x167c   : > { %v2327_v4 = vpop.xlane.xlu1 %2326 }
0x167d   : > { %v2330_v10 = vmul.f32 1.442695, %v2328_v3  ;;  %v2329_v11 = vsub.f32 %v2317_v55, %v2327_v4 }
0x167f   : > { %6177 = vpow2.f32 %v2330_v10  ;;  %v2332_v12 = vmul.f32 1.442695, %v2329_v11 }
0x1680   : > { %v2397_v13 = vpop.permute.xlu1 %2396 }
0x1681   : > { %6179 = vpow2.f32 %v2332_v12  ;;  %v2402_v5 = vsel %vm815_vm4, %v2397_v13, 0 }
0x1682   : > { %5732 = vmatpush3.bf16.msra.mxu0 %v2402_v5 }
0x1683   : > { %5743 = vmatprep.subr.bf16.mxu0 %v6294_v7 }
0x1684   : > { %v2447_v41 = vpop.permute.xlu1 %2446 }
0x1685   : > { %v2452_v47 = vsel %vm674_vm2, %v2447_v41, 0 }
0x1688   : > { %v2497_v45 = vpop.permute.xlu1 %2496 }
0x1689   : > { %v6178_v19 = vpop.eup %6177  ;;  %v2502_v8 = vsel %vm674_vm2, %v2497_v45, 0 }
0x168a   : > { %v2334_v22 = vsel %vm783_vm3, %v6178_v19, 0.0 }
0x168b   : > { %v6180_v23 = vpop.eup %6179  ;;  %2335 = vadd.xlane.f32.xlu0 %v2334_v22 }
0x168c   : > { %v2337_v24 = vsel %vm783_vm3, %v6180_v23, 0.0  ;;  %v2495_v49 = vpop.permute.xlu1 %2494 }
0x168f   : > { %2338 = vadd.xlane.f32.xlu0 %v2337_v24 }
0x16a5   : > { %2348 = vrot.lane.b32.xlu0 %v6866_v33, %s6298_s14 }
0x16a9   : > { %2444 = vrot.lane.b32.xlu0 %v6866_v33, %s6299_s15 }
0x1718   : > { %v2336_v25 = vpop.xlane.xlu0 %2335 }
0x1719   : > { %v2340_v26 = vmax.f32 %v2336_v25, 1e-09 }
0x171b   : > { %6181 = vrcp.f32 %v2340_v26 }
0x171c   : > { %v2339_v27 = vpop.xlane.xlu0 %2338 }
0x171d   : > { %v2341_v29 = vmax.f32 %v2339_v27, 1e-09 }
0x171f   : > { %6183 = vrcp.f32 %v2341_v29 }
0x1720   : > { %v2349_v31 = vpop.permute.xlu0 %2348 }
0x1721   : > { %v2354_v38 = vsel %vm815_vm4, %v2349_v31, 0 }
0x1722   : > { %5726 = vmatpush3.bf16.msra.mxu1 %v2354_v38 }
0x1723   : > { %5737 = vmatprep.subr.bf16.mxu1 %v6294_v7 }
0x1724   : > { %v2445_v46 = vpop.permute.xlu0 %2444 }
0x1725   : > { %v6182_v34 = vpop.eup %6181 }
0x1726   : > { %v2344_v36 = vmul.f32 %v6182_v34, %v6178_v19 }
0x1728   : > { %v2346_v48 = vpack.c.bf16 %v2344_v36, %v2344_v36  ;;  %v6948_v36 = vadd.f32 %v6888_v6, %v6764_v37 }
0x1729   : > { %v6184_v39 = vpop.eup %6183 }
0x172a   : > { %5728 = vmatmul.mubr.msk.bf16.vlgmr.msra.gmra.mrb[52].mxu1 %vm783_vm3, %v2346_v48  ;;  %v2345_v42 = vmul.f32 %v6184_v39, %v6180_v23  ;;  %v2117_v48 = vmul.f32 %v6948_v36, %v6948_v36 }
0x172b   : > { %5738 = vmatpush3.bf16.xpose.msra.mxu1 %v2452_v47  ;;  %5739 = vmatprep.mubr.msk.bf16.mxu1 %vm6295_vm1, %v6294_v7 }
0x172c   : > { %v2347_v43 = vpack.c.bf16 %v2345_v42, %v2345_v42  ;;  %5749 = vmatprep.subr.bf16.mxu1 %v6294_v7  ;;  %v2121_v39 = vsel %vm587_vm0, %v2117_v48, 0.0 }
0x172e   : > { %5734 = vmatmul.mubr.msk.bf16.vlgmr.msra.gmra.mrb[56].mxu0 %vm783_vm3, %v2347_v43 }
0x172f   : > { %5744 = vmatpush3.bf16.xpose.msra.mxu0 %v2502_v8  ;;  %5745 = vmatprep.mubr.msk.bf16.mxu0 %vm6295_vm1, %v6294_v7 }
0x1730   : > { %5755 = vmatprep.subr.bf16.mxu0 %v6294_v7 }
0x1732   : > { %5740 = vmatmul.mubr.msk.bf16.vlgmr.msra.gmra.mrb[56].mxu1 %vm674_vm2, %v2445_v46 }
0x1733   : > { %5751 = vmatprep.mubr.msk.bf16.mxu1 %vm6295_vm1, %v6294_v7 }
0x1736   : > { %5746 = vmatmul.mubr.msk.bf16.vlgmr.msra.gmra.mrb[60].mxu0 %vm674_vm2, %v2495_v49 }
0x1737   : > { %5757 = vmatprep.mubr.msk.bf16.mxu0 %vm6295_vm1, %v6294_v7 }
0x17fd   : > { %v6929_v50 = vpop.f32.mrb[52].mxu1 }
0x17fe   : > { %v5729_v51 = vpop.f32.mrb[53].mxu1 }
0x17ff   : > { %v2393_v52 = vpop.f32.mrb[54].mxu1 }
0x1800   : > { %v5730_v53 = vpop.f32.mrb[55].mxu1 }
0x1801   : > { %v6931_v35 = vpop.f32.mrb[56].mxu0  ;;  %v6105_v53 = vld [vmem:[%s7568_s11] sm:$0xff]  }
0x1802   : > { %v5735_v55 = vpop.f32.mrb[57].mxu0 }
0x1803   : > { %v2441_v56 = vpop.f32.mrb[58].mxu0  ;;  %v6106_v55 = vld [vmem:[%s7568_s11 + $0x8] sm:$0xff]  }
0x1804   : > { %v5736_v58 = vpop.f32.mrb[59].mxu0 }
0x1805   : > { %v2488_v59 = vpop.f32.mrb[56].mxu1 }
0x1806   : > { %v2489_v0 = vadd.f32 %v2488_v59, %v508_v63  ;;  %v5741_v1 = vpop.f32.mrb[57].mxu1 }
0x1807   : > { %v2491_v62 = vpop.f32.mrb[58].mxu1 }
0x1808   : > { %v5742_v3 = vpop.f32.mrb[59].mxu1  ;;  %v2544_v4 = vsel %vm783_vm3, %v2489_v0, -inf }
0x1809   : > { %2545 = vmax.xlane.f32.xlu0 %v2544_v4  ;;  %v2538_v10 = vpop.f32.mrb[60].mxu0 }
0x180a   : > { %v2539_v11 = vadd.f32 %v2538_v10, %v508_v63  ;;  %v5747_v12 = vpop.f32.mrb[61].mxu0  ;;  %v2114_v10 = vadd.f32 %v6886_v44, %v6761_v28  ;;  %v2760_v44 = vrot.slane %v6834_v15, 4 }
0x180b   : > { %v2541_v13 = vpop.f32.mrb[62].mxu0 }
0x180c   : > { %v5748_v5 = vpop.f32.mrb[63].mxu0  ;;  %v2547_v19 = vsel %vm783_vm3, %v2539_v11, -inf  ;;  %v2758_v13 = vrot.slane %v6810_v60, 4 }
0x180d   : > { %2548 = vmax.xlane.f32.xlu1 %v2547_v19  ;;  %v2759_v5 = vrot.slane %v6815_v61, 4 }
0x181e   : > { %2618 = vrot.lane.b32.xlu1 %v6868_v40, %s6300_s18 }
0x1896   : > { %v2546_v22 = vpop.xlane.xlu0 %2545 }
0x1897   : > { %v2550_v23 = vsub.f32 %v2489_v0, %v2546_v22 }
0x1899   : > { %v2552_v24 = vmul.f32 1.442695, %v2550_v23 }
0x189a   : > { %v2549_v25 = vpop.xlane.xlu1 %2548 }
0x189b   : > { %6185 = vpow2.f32 %v2552_v24  ;;  %v2551_v26 = vsub.f32 %v2539_v11, %v2549_v25  ;;  %v2116_v11 = vmul.f32 %v2114_v10, %v2114_v10  ;;  %v5272_v24 = vcombine.low %v2758_v13, %v2759_v5 }
0x189c   : > { %v2754_v13 = vrot.slane %v6820_v2, %v1218_v9 }
0x189d   : > { %v2554_v27 = vmul.f32 1.442695, %v2551_v26  ;;  %v2118_v12 = vsel %vm587_vm0, %v2116_v11, 0.0  ;;  %v2761_v26 = vrot.slane %v6839_v20, 4 }
0x189e   : > { %v2619_v29 = vpop.permute.xlu1 %2618 }
0x189f   : > { %6187 = vpow2.f32 %v2554_v27  ;;  %v2624_v31 = vsel %vm815_vm4, %v2619_v29, 0 }
0x18a0   : > { %5756 = vmatpush3.bf16.msra.mxu0 %v2624_v31 }
0x18a1   : > { %5769 = vmatprep.subr.bf16.mxu0 %v6294_v7 }
0x18a5   : > { %v6186_v38 = vpop.eup %6185 }
0x18a6   : > { %v2556_v34 = vsel %vm783_vm3, %v6186_v38, 0.0 }
0x18a7   : > { %2557 = vadd.xlane.f32.xlu0 %v2556_v34 }
0x18a9   : > { %v6188_v41 = vpop.eup %6187 }
0x18aa   : > { %v2559_v40 = vsel %vm783_vm3, %v6188_v41, 0.0 }
0x18ab   : > { %2560 = vadd.xlane.f32.xlu0 %v2559_v40 }
0x18c1   : > { %2570 = vrot.lane.b32.xlu0 %v6866_v33, %s6300_s18 }
0x18e0   : > { %2122 = vadd.xlane.f32.xlu0 %v2121_v39 }
0x1934   : > { %v2558_v47 = vpop.xlane.xlu0 %2557 }
0x1935   : > { %v2562_v42 = vmax.f32 %v2558_v47, 1e-09 }
0x1937   : > { %6189 = vrcp.f32 %v2562_v42 }
0x1938   : > { %v2561_v45 = vpop.xlane.xlu0 %2560 }
0x1939   : > { %v2563_v43 = vmax.f32 %v2561_v45, 1e-09 }
0x193b   : > { %6191 = vrcp.f32 %v2563_v43 }
0x193c   : > { %v2571_v8 = vpop.permute.xlu0 %2570 }
0x193d   : > { %v2576_v46 = vsel %vm815_vm4, %v2571_v8, 0 }
0x193e   : > { %5750 = vmatpush3.bf16.msra.mxu1 %v2576_v46 }
0x193f   : > { %5761 = vmatprep.subr.bf16.mxu1 %v6294_v7 }
0x1941   : > { %v6190_v37 = vpop.eup %6189 }
0x1942   : > { %v2566_v33 = vmul.f32 %v6190_v37, %v6186_v38 }
0x1944   : > { %v2568_v6 = vpack.c.bf16 %v2566_v33, %v2566_v33 }
0x1945   : > { %v6192_v49 = vpop.eup %6191 }
0x1946   : > { %v2567_v51 = vmul.f32 %v6192_v49, %v6188_v41  ;;  %5752 = vmatmul.mubr.msk.bf16.vlgmr.msra.gmra.mrb[60].mxu1 %vm783_vm3, %v2568_v6  ;;  %v2134_v41 = vsub.s32 4, %v6425_v16 }
0x1947   : > { %5765 = vmatprep.mubr.msk.bf16.mxu1 %vm6295_vm1, %v6294_v7  ;;  %5762 = vmatpush3.bf16.msra.mxu1 %v6105_v53 }
0x1948   : > { %v2569_v52 = vpack.c.bf16 %v2567_v51, %v2567_v51  ;;  %5763 = vmatprep.subr.bf16.mxu1 %v6294_v7  ;;  %v2135_v39 = vrot.slane %v6801_v57, %v2134_v41 }
0x194a   : > { %5758 = vmatmul.mubr.msk.bf16.vlgmr.msra.gmra.mrb[64].mxu0 %vm783_vm3, %v2569_v52 }
0x194b   : > { %5773 = vmatprep.mubr.msk.bf16.mxu0 %vm6295_vm1, %v6294_v7  ;;  %5764 = vmatpush3.bf16.msra.mxu1 %v6106_v55 }
0x194c   : > { %5777 = vmatprep.subr.bf16.mxu1 %v6294_v7 }
0x1a19   : > { %v2612_v56 = vpop.f32.mrb[60].mxu1 }
0x1a1a   : > { %v5753_v63 = vpop.f32.mrb[61].mxu1 }
0x1a1b   : > { %v2615_v58 = vpop.f32.mrb[62].mxu1 }
0x1a1c   : > { %v5754_v59 = vpop.f32.mrb[63].mxu1 }
0x1a1d   : > { %v2660_v0 = vpop.f32.mrb[64].mxu0 }
0x1a1e   : > { %v6057_v1 = vpack.i.bf16 %v2660_v0, %v2612_v56  ;;  %v5759_v62 = vpop.f32.mrb[65].mxu0 }
0x1a1f   : > { %v2663_v3 = vpop.f32.mrb[66].mxu0 }
0x1a20   : > { %6058 = vrot.lane.b32.xlu1 %v6057_v1, %s6302_s17  ;;  %v5760_v4 = vpop.f32.mrb[67].mxu0 }
0x1a44   : > { %2119 = vadd.xlane.f32.xlu1 %v2118_v12 }
0x1a55   : > { %2762 = vrot.lane.b32.xlu1 %v6824_v32, %s7571_s29  ;;  %v5273_v32 = vcombine.low %v2760_v44, %v2761_v26 }
0x1a92   : > { %v6059_v19 = vpop.permute.xlu1 %6058 }
0x1a93   : > { %v6061_v22 = vunpack.i.h.bf16 %v6059_v19  ;;  %v6060_v23 = vunpack.i.l.bf16 %v6059_v19 }
0x1a95   : > { %v2675_v25 = vsel %vm674_vm2, %v6931_v35, %v6061_v22  ;;  %v2674_v28 = vsel %vm674_vm2, %v6929_v50, %v6060_v23  ;;  %v2123_v35 = vpop.xlane.xlu0 %2122 }
0x1a96   : > { %v2676_v27 = vpack.c.bf16 %v2675_v25, %v2674_v28  ;;  %v2125_v29 = vmul.f32 0.03125, %v2123_v35 }
0x1a98   : > { %5766 = vmatmul.mubr.msk.bf16.vlgmr.msra.gmra.mrb[64].mxu1 %vm587_vm0, %v2676_v27  ;;  %v2127_v50 = vadd.f32 1e-06, %v2125_v29  ;;  %v7040_v29 = vld [vmem:[%s6465_s24] ss:$0 sm:$0xff] }
0x1a99   : > { %5778 = vmatpush3.bf16.msra.mxu1 %v5272_v24  ;;  %5781 = vmatprep.mubr.msk.bf16.mxu1 %vm6295_vm1, %v6294_v7 }
0x1a9a   : > { %5779 = vmatprep.subr.bf16.mxu1 %v6294_v7  ;;  %6193 = vrsqrt.f32 %v2127_v50 }
0x1a9d   : > { %5780 = vmatpush3.bf16.msra.mxu1 %v5273_v32 }
0x1a9e   : > { %5791 = vmatprep.subr.bf16.mxu1 %v6294_v7 }
0x1aa4   : > { %v6194_v40 = vpop.eup %6193 }
0x1aa5   : > { %v2131_v48 = vmul.f32 %v6194_v40, %v6948_v36  ;;  %v7044_v40 = vld [vmem:[%s6465_s24 + $0x1] ss:$0 sm:$0xff] }
0x1aa7   : > { %v2137_v43 = vmul.f32 %v2135_v39, %v2131_v48 }
0x1ad1   : > { %v2120_v31 = vpop.xlane.xlu1 %2119 }
0x1ad2   : > { %v2124_v38 = vmul.f32 0.03125, %v2120_v31 }
0x1ad4   : > { %v2126_v34 = vadd.f32 1e-06, %v2124_v38 }
0x1ad6   : > { %6195 = vrsqrt.f32 %v2126_v34 }
0x1ae0   : > { %v6196_v47 = vpop.eup %6195 }
0x1ae1   : > { %v2130_v42 = vmul.f32 %v6196_v47, %v2114_v10 }
0x1ae3   : > { %v2136_v45 = vmul.f32 %v2135_v39, %v2130_v42 }
0x1ae5   : > { %v6993_v8 = vpack.c.bf16 %v2137_v43, %v2136_v45 }
0x1ae7   : > { %5782 = vmatmul.mubr.msk.bf16.vlgmr.msra.gmra.mrb[68].mxu1 %vm587_vm0, %v6993_v8 }
0x1ae8   : > { %5793 = vmatprep.mubr.msk.bf16.mxu1 %vm6295_vm1, %v6294_v7 }
0x1b6b   : > { %v2726_v46 = vpop.f32.mrb[64].mxu1 }
0x1b6c   : > { %v7000_v37 = vadd.f32 %v2726_v46, %v6754_v21  ;;  %v5767_v36 = vpop.f32.mrb[65].mxu1  ;;  %v2763_v21 = vpop.permute.xlu1 %2762 }
0x1b6d   : > { %v2729_v33 = vpop.f32.mrb[66].mxu1  ;;  %5770 = vmatpush3.bf16.msra.mxu0 %v2763_v21 }
0x1b6e   : > { %v7003_v57 = vadd.f32 %v2729_v33, %v6750_v18  ;;  %v5768_v6 = vpop.f32.mrb[67].mxu1  ;;  %v2735_v49 = vmul.f32 %v7000_v37, %v7000_v37  ;;  %5771 = vmatprep.subr.bf16.mxu0 %v6294_v7 }
0x1b70   : > { %v2737_v51 = vsel %vm587_vm0, %v2735_v49, 0.0  ;;  %v2736_v52 = vmul.f32 %v7003_v57, %v7003_v57 }
0x1b71   : > { %2738 = vadd.xlane.f32.xlu0 %v2737_v51 }
0x1b72   : > { %v2740_v53 = vsel %vm587_vm0, %v2736_v52, 0.0 }
0x1b75   : > { %2741 = vadd.xlane.f32.xlu0 %v2740_v53 }
0x1b8b   : > { %2764 = vrot.lane.b32.xlu0 %v6845_v17, %s7571_s29  ;;  %s7573_s29 = smov 32  }
0x1bba   : > { %v2863_v18 = vpop.f32.mrb[68].mxu1 }
0x1bbb   : > { %v5783_v55 = vpop.f32.mrb[69].mxu1  ;;  %v7025_v22 = vpack.c.bf16 %v2863_v18, %v2863_v18 }
0x1bbc   : > { %v2866_v56 = vpop.f32.mrb[70].mxu1 }
0x1bbd   : > { %v7014_v63 = vpack.c.bf16 %v2866_v56, %v2866_v56  ;;  %v5784_v58 = vpop.f32.mrb[71].mxu1  ;;  %v2880_v28 = vsel %vm674_vm2, %v7025_v22, 0 }
0x1bbf   : > { %v2926_v59 = vsel %vm674_vm2, %v7014_v63, 0 }
0x1bc0   : > { %5792 = vmatpush3.bf16.xpose.msra.mxu1 %v2926_v59 }
0x1bc1   : > { %5803 = vmatprep.subr.bf16.mxu1 %v6294_v7 }
0x1bfe   : > { %v2739_v0 = vpop.xlane.xlu0 %2738 }
0x1bff   : > { %v2743_v1 = vmul.f32 0.03125, %v2739_v0 }
0x1c01   : > { %v2745_v62 = vadd.f32 1e-06, %v2743_v1 }
0x1c02   : > { %v2742_v17 = vpop.xlane.xlu0 %2741 }
0x1c03   : > { %6197 = vrsqrt.f32 %v2745_v62  ;;  %v2744_v3 = vmul.f32 0.03125, %v2742_v17 }
0x1c05   : > { %v2746_v4 = vadd.f32 1e-06, %v2744_v3 }
0x1c06   : > { %v2765_v10 = vpop.permute.xlu0 %2764 }
0x1c07   : > { %6199 = vrsqrt.f32 %v2746_v4  ;;  %5772 = vmatpush3.bf16.msra.mxu0 %v2765_v10 }
0x1c08   : > { %5785 = vmatprep.subr.bf16.mxu0 %v6294_v7 }
0x1c0d   : > { %v6198_v11 = vpop.eup %6197 }
0x1c0e   : > { %v2749_v12 = vmul.f32 %v6198_v11, %v7000_v37 }
0x1c10   : > { %v2755_v23 = vmul.f32 %v2754_v13, %v2749_v12 }
0x1c11   : > { %v6200_v5 = vpop.eup %6199 }
0x1c12   : > { %v2750_v19 = vmul.f32 %v6200_v5, %v7003_v57 }
0x1c14   : > { %v2756_v24 = vmul.f32 %v2754_v13, %v2750_v19 }
0x1c16   : > { %v2757_v25 = vpack.c.bf16 %v2756_v24, %v2755_v23 }
0x1c18   : > { %5774 = vmatmul.mubr.msk.bf16.vlgmr.msra.gmra.mrb[68].mxu0 %vm587_vm0, %v2757_v25 }
0x1c19   : > { %5786 = vmatpush3.bf16.xpose.msra.mxu0 %v2880_v28  ;;  %5787 = vmatprep.mubr.msk.bf16.mxu0 %vm6295_vm1, %v6294_v7 }
0x1c1a   : > { %5797 = vmatprep.subr.bf16.mxu0 %v6294_v7 }
0x1ceb   : > { %v2805_v9 = vpop.f32.mrb[68].mxu0 }
0x1cec   : > { %v5354_v2 = vpack.c.bf16 %v2805_v9, %v2805_v9  ;;  %v5775_v44 = vpop.f32.mrb[69].mxu0 }
0x1ced   : > { %v2808_v26 = vpop.f32.mrb[70].mxu0 }
0x1cee   : > { %v5355_v27 = vpack.c.bf16 %v2808_v26, %v2808_v26  ;;  %v5776_v32 = vpop.f32.mrb[71].mxu0  ;;  %5788 = vmatmul.mubr.msk.bf16.vlgmr.msra.gmra.mrb[72].mxu0 %vm674_vm2, %v5354_v2 }
0x1cef   : > { %5799 = vmatprep.mubr.msk.bf16.mxu0 %vm6295_vm1, %v6294_v7 }
0x1cf0   : > { %5794 = vmatmul.mubr.msk.bf16.vlgmr.msra.gmra.mrb[72].mxu1 %vm674_vm2, %v5355_v27 }
0x1cf1   : > { %5805 = vmatprep.mubr.msk.bf16.mxu1 %vm6295_vm1, %v6294_v7 }
0x1dc1   : > { %v2916_v35 = vpop.f32.mrb[72].mxu0 }
0x1dc2   : > { %v2917_v50 = vadd.f32 %v7040_v29, %v2916_v35  ;;  %v5789_v31 = vpop.f32.mrb[73].mxu0 }
0x1dc3   : > { %v2919_v38 = vpop.f32.mrb[74].mxu0  ;;  %v2962_v34 = vpop.f32.mrb[72].mxu1 }
0x1dc4   : > { %v2963_v48 = vadd.f32 %v7044_v40, %v2962_v34  ;;  %v5790_v39 = vpop.f32.mrb[75].mxu0  ;;  %v5795_v47 = vpop.f32.mrb[73].mxu1  ;;  %v2968_v42 = vsel %vm783_vm3, %v2917_v50, -inf }
0x1dc5   : > { %v2965_v45 = vpop.f32.mrb[74].mxu1  ;;  %2969 = vmax.xlane.f32.xlu1 %v2968_v42 }
0x1dc6   : > { %v5796_v43 = vpop.f32.mrb[75].mxu1  ;;  %v2971_v46 = vsel %vm783_vm3, %v2963_v48, -inf }
0x1dc7   : > { %2972 = vmax.xlane.f32.xlu0 %v2971_v46 }
0x1dd6   : > { %2994 = vrot.lane.b32.xlu1 %v7025_v22, %s6296_s21 }
0x1e52   : > { %v2970_v36 = vpop.xlane.xlu1 %2969 }
0x1e53   : > { %v2974_v33 = vsub.f32 %v2917_v50, %v2970_v36 }
0x1e54   : > { %v2973_v6 = vpop.xlane.xlu0 %2972 }
0x1e55   : > { %v2976_v49 = vmul.f32 1.442695, %v2974_v33  ;;  %v2975_v51 = vsub.f32 %v2963_v48, %v2973_v6 }
0x1e56   : > { %v2995_v52 = vpop.permute.xlu1 %2994 }
0x1e57   : > { %6201 = vpow2.f32 %v2976_v49  ;;  %v2978_v53 = vmul.f32 1.442695, %v2975_v51  ;;  %v3000_v21 = vsel %vm815_vm4, %v2995_v52, 0 }
0x1e58   : > { %5798 = vmatpush3.bf16.msra.mxu0 %v3000_v21 }
0x1e59   : > { %6203 = vpow2.f32 %v2978_v53  ;;  %5809 = vmatprep.subr.bf16.mxu0 %v6294_v7 }
0x1e61   : > { %v6202_v18 = vpop.eup %6201 }
0x1e62   : > { %v2980_v55 = vsel %vm783_vm3, %v6202_v18, 0.0 }
0x1e63   : > { %v6204_v56 = vpop.eup %6203  ;;  %2981 = vadd.xlane.f32.xlu1 %v2980_v55 }
0x1e64   : > { %v2983_v58 = vsel %vm783_vm3, %v6204_v56, 0.0 }
0x1e65   : > { %2984 = vadd.xlane.f32.xlu0 %v2983_v58 }
0x1e74   : > { %3092 = vrot.lane.b32.xlu1 %v7025_v22, %s6299_s15 }
0x1e78   : > { %3142 = vrot.lane.b32.xlu1 %v7014_v63, %s6299_s15 }
0x1e7b   : > { %3042 = vrot.lane.b32.xlu0 %v7014_v63, %s6296_s21 }
0x1e7c   : > { %3090 = vrot.lane.b32.xlu1 %v5354_v2, %s6299_s15 }
0x1e7f   : > { %3140 = vrot.lane.b32.xlu0 %v5355_v27, %s6299_s15 }
0x1ef0   : > { %v2982_v59 = vpop.xlane.xlu1 %2981 }
0x1ef1   : > { %v2986_v0 = vmax.f32 %v2982_v59, 1e-09 }
0x1ef2   : > { %v2985_v1 = vpop.xlane.xlu0 %2984 }
0x1ef3   : > { %6205 = vrcp.f32 %v2986_v0  ;;  %v2987_v62 = vmax.f32 %v2985_v1, 1e-09 }
0x1ef4   : > { %v3093_v4 = vpop.permute.xlu1 %3092 }
0x1ef5   : > { %6207 = vrcp.f32 %v2987_v62  ;;  %v3098_v23 = vsel %vm674_vm2, %v3093_v4, 0 }
0x1ef6   : > { %v3043_v17 = vpop.permute.xlu0 %3042 }
0x1ef7   : > { %v3048_v3 = vsel %vm815_vm4, %v3043_v17, 0 }
0x1ef8   : > { %5804 = vmatpush3.bf16.msra.mxu1 %v3048_v3  ;;  %v3143_v19 = vpop.permute.xlu1 %3142 }
0x1ef9   : > { %5815 = vmatprep.subr.bf16.mxu1 %v6294_v7  ;;  %v3148_v25 = vsel %vm674_vm2, %v3143_v19, 0  ;;  %v6108_v19 = vld [vmem:[%s7568_s11 + $0x18] sm:$0xff]  }
0x1efa   : > { %v3141_v9 = vpop.permute.xlu0 %3140 }
0x1efc   : > { %v3091_v28 = vpop.permute.xlu1 %3090 }
0x1efd   : > { %v6206_v10 = vpop.eup %6205 }
0x1efe   : > { %v2990_v11 = vmul.f32 %v6206_v10, %v6202_v18 }
0x1eff   : > { %v6208_v12 = vpop.eup %6207 }
0x1f00   : > { %v2991_v13 = vmul.f32 %v6208_v12, %v6204_v56  ;;  %v2992_v5 = vpack.c.bf16 %v2990_v11, %v2990_v11 }
0x1f02   : > { %5800 = vmatmul.mubr.msk.bf16.vlgmr.msra.gmra.mrb[76].mxu0 %vm783_vm3, %v2992_v5  ;;  %v2993_v24 = vpack.c.bf16 %v2991_v13, %v2991_v13  ;;  %v6107_v5 = vld [vmem:[%s7568_s11 + $0x10] sm:$0xff]  }
0x1f03   : > { %5810 = vmatpush3.bf16.xpose.msra.mxu0 %v3098_v23  ;;  %5811 = vmatprep.mubr.msk.bf16.mxu0 %vm6295_vm1, %v6294_v7 }
0x1f04   : > { %5806 = vmatmul.mubr.msk.bf16.vlgmr.msra.gmra.mrb[76].mxu1 %vm783_vm3, %v2993_v24  ;;  %5821 = vmatprep.subr.bf16.mxu0 %v6294_v7 }
0x1f05   : > { %5816 = vmatpush3.bf16.xpose.msra.mxu1 %v3148_v25  ;;  %5817 = vmatprep.mubr.msk.bf16.mxu1 %vm6295_vm1, %v6294_v7 }
0x1f06   : > { %5827 = vmatprep.subr.bf16.mxu1 %v6294_v7 }
0x1f0a   : > { %5812 = vmatmul.mubr.msk.bf16.vlgmr.msra.gmra.mrb[80].mxu0 %vm674_vm2, %v3091_v28 }
0x1f0b   : > { %5823 = vmatprep.mubr.msk.bf16.mxu0 %vm6295_vm1, %v6294_v7 }
0x1f0c   : > { %5818 = vmatmul.mubr.msk.bf16.vlgmr.msra.gmra.mrb[80].mxu1 %vm674_vm2, %v3141_v9 }
0x1f0d   : > { %5829 = vmatprep.mubr.msk.bf16.mxu1 %vm6295_vm1, %v6294_v7 }
0x1fd5   : > { %v7081_v2 = vpop.f32.mrb[76].mxu0 }
0x1fd6   : > { %v5801_v44 = vpop.f32.mrb[77].mxu0 }
0x1fd7   : > { %v3039_v26 = vpop.f32.mrb[78].mxu0  ;;  %v7083_v27 = vpop.f32.mrb[76].mxu1 }
0x1fd8   : > { %v5802_v32 = vpop.f32.mrb[79].mxu0  ;;  %v5807_v35 = vpop.f32.mrb[77].mxu1 }
0x1fd9   : > { %v3087_v50 = vpop.f32.mrb[78].mxu1 }
0x1fda   : > { %v5808_v31 = vpop.f32.mrb[79].mxu1 }
0x1fdd   : > { %v3134_v38 = vpop.f32.mrb[80].mxu0 }
0x1fde   : > { %v3135_v34 = vadd.f32 %v7040_v29, %v3134_v38  ;;  %v5813_v48 = vpop.f32.mrb[81].mxu0 }
0x1fdf   : > { %v3137_v39 = vpop.f32.mrb[82].mxu0  ;;  %v3184_v47 = vpop.f32.mrb[80].mxu1 }
0x1fe0   : > { %v3185_v42 = vadd.f32 %v7044_v40, %v3184_v47  ;;  %v5814_v45 = vpop.f32.mrb[83].mxu0  ;;  %v5819_v43 = vpop.f32.mrb[81].mxu1  ;;  %v3190_v46 = vsel %vm783_vm3, %v3135_v34, -inf }
0x1fe1   : > { %v3187_v36 = vpop.f32.mrb[82].mxu1  ;;  %3191 = vmax.xlane.f32.xlu1 %v3190_v46 }
0x1fe2   : > { %v5820_v33 = vpop.f32.mrb[83].mxu1  ;;  %v3193_v6 = vsel %vm783_vm3, %v3185_v42, -inf }
0x1fe3   : > { %3194 = vmax.xlane.f32.xlu0 %v3193_v6 }
0x1ff2   : > { %3216 = vrot.lane.b32.xlu1 %v7025_v22, %s6297_s27 }
0x206e   : > { %v3192_v49 = vpop.xlane.xlu1 %3191 }
0x206f   : > { %v3196_v29 = vsub.f32 %v3135_v34, %v3192_v49 }
0x2070   : > { %v3195_v51 = vpop.xlane.xlu0 %3194 }
0x2071   : > { %v3198_v52 = vmul.f32 1.442695, %v3196_v29  ;;  %v3197_v53 = vsub.f32 %v3185_v42, %v3195_v51 }
0x2072   : > { %v3217_v21 = vpop.permute.xlu1 %3216 }
0x2073   : > { %6209 = vpow2.f32 %v3198_v52  ;;  %v3200_v40 = vmul.f32 1.442695, %v3197_v53  ;;  %v3222_v18 = vsel %vm815_vm4, %v3217_v21, 0 }
0x2074   : > { %5822 = vmatpush3.bf16.msra.mxu0 %v3222_v18 }
0x2075   : > { %6211 = vpow2.f32 %v3200_v40  ;;  %5833 = vmatprep.subr.bf16.mxu0 %v6294_v7 }
0x207d   : > { %v6210_v55 = vpop.eup %6209 }
0x207e   : > { %v3202_v56 = vsel %vm783_vm3, %v6210_v55, 0.0 }
0x207f   : > { %v6212_v58 = vpop.eup %6211  ;;  %3203 = vadd.xlane.f32.xlu0 %v3202_v56 }
0x2080   : > { %v3205_v22 = vsel %vm783_vm3, %v6212_v58, 0.0 }
0x2083   : > { %3206 = vadd.xlane.f32.xlu0 %v3205_v22 }
0x2099   : > { %3264 = vrot.lane.b32.xlu0 %v7014_v63, %s6297_s27 }
0x210c   : > { %v3204_v59 = vpop.xlane.xlu0 %3203 }
0x210d   : > { %v3208_v0 = vmax.f32 %v3204_v59, 1e-09 }
0x210f   : > { %6213 = vrcp.f32 %v3208_v0 }
0x2110   : > { %v3207_v1 = vpop.xlane.xlu0 %3206 }
0x2111   : > { %v3209_v62 = vmax.f32 %v3207_v1, 1e-09  ;;  %v7154_v1 = vld [vmem:[%s7569_s12] sm:$0x7f] }
0x2113   : > { %6215 = vrcp.f32 %v3209_v62  ;;  %v3400_v62 = vrot.slane %v7154_v1, %v1378_v54  ;;  %v6112_v54 = vld [vmem:[%s7568_s11 + $0x38] sm:$0xff]  }
0x2114   : > { %v3265_v17 = vpop.permute.xlu0 %3264 }
0x2115   : > { %v3270_v3 = vsel %vm815_vm4, %v3265_v17, 0 }
0x2116   : > { %5828 = vmatpush3.bf16.msra.mxu1 %v3270_v3 }
0x2117   : > { %5841 = vmatprep.subr.bf16.mxu1 %v6294_v7 }
0x2119   : > { %v6214_v4 = vpop.eup %6213 }
0x211a   : > { %v3212_v10 = vmul.f32 %v6214_v4, %v6210_v55 }
0x211c   : > { %v3214_v11 = vpack.c.bf16 %v3212_v10, %v3212_v10 }
0x211d   : > { %v6216_v12 = vpop.eup %6215 }
0x211e   : > { %v3213_v13 = vmul.f32 %v6216_v12, %v6212_v58  ;;  %5824 = vmatmul.mubr.msk.bf16.vlgmr.msra.gmra.mrb[84].mxu0 %vm783_vm3, %v3214_v11  ;;  %v6111_v12 = vld [vmem:[%s7568_s11 + $0x30] sm:$0xff]  }
0x211f   : > { %5837 = vmatprep.mubr.msk.bf16.mxu0 %vm6295_vm1, %v6294_v7  ;;  %5834 = vmatpush3.bf16.msra.mxu0 %v6107_v5 }
0x2120   : > { %v3215_v63 = vpack.c.bf16 %v3213_v13, %v3213_v13  ;;  %5835 = vmatprep.subr.bf16.mxu0 %v6294_v7 }
0x2122   : > { %5830 = vmatmul.mubr.msk.bf16.vlgmr.msra.gmra.mrb[84].mxu1 %vm783_vm3, %v3215_v63 }
0x2123   : > { %5845 = vmatprep.mubr.msk.bf16.mxu1 %vm6295_vm1, %v6294_v7  ;;  %5836 = vmatpush3.bf16.msra.mxu0 %v6108_v19 }
0x2124   : > { %5849 = vmatprep.subr.bf16.mxu0 %v6294_v7 }
0x21f1   : > { %v3258_v23 = vpop.f32.mrb[84].mxu0 }
0x21f2   : > { %v5825_v24 = vpop.f32.mrb[85].mxu0 }
0x21f3   : > { %v3261_v25 = vpop.f32.mrb[86].mxu0 }
0x21f4   : > { %v5826_v28 = vpop.f32.mrb[87].mxu0 }
0x21f5   : > { %v3306_v9 = vpop.f32.mrb[84].mxu1 }
0x21f6   : > { %v6062_v44 = vpack.i.bf16 %v3306_v9, %v3258_v23  ;;  %v5831_v26 = vpop.f32.mrb[85].mxu1 }
0x21f7   : > { %v3309_v32 = vpop.f32.mrb[86].mxu1 }
0x21f8   : > { %v5832_v35 = vpop.f32.mrb[87].mxu1  ;;  %6063 = vrot.lane.b32.xlu1 %v6062_v44, %s6302_s17 }
0x226a   : > { %v6064_v50 = vpop.permute.xlu1 %6063 }
0x226b   : > { %v6066_v31 = vunpack.i.h.bf16 %v6064_v50  ;;  %v6065_v38 = vunpack.i.l.bf16 %v6064_v50 }
0x226d   : > { %v3321_v34 = vsel %vm674_vm2, %v7083_v27, %v6066_v31  ;;  %v3320_v48 = vsel %vm674_vm2, %v7081_v2, %v6065_v38 }
0x226e   : > { %v3322_v39 = vpack.c.bf16 %v3321_v34, %v3320_v48  ;;  %v7190_v48 = vld [vmem:[%s7567_s10 + $0x20] sm:$0xff] }
0x2270   : > { %5838 = vmatmul.mubr.msk.bf16.vlgmr.msra.gmra.mrb[88].mxu0 %vm587_vm0, %v3322_v39  ;;  %v7195_v39 = vld [vmem:[%s7567_s10 + $0x28] sm:$0xff] }
0x2271   : > { %5857 = vmatprep.mubr.msk.bf16.mxu0 %vm6295_vm1, %v6294_v7 }
0x2343   : > { %v3372_v47 = vpop.f32.mrb[88].mxu0 }
0x2344   : > { %v7122_v42 = vadd.f32 %v3372_v47, %v7000_v37  ;;  %v5839_v45 = vpop.f32.mrb[89].mxu0  ;;  %v6109_v37 = vld [vmem:[%s7568_s11 + $0x20] sm:$0xff]   ;;  %v7199_v47 = vcombine.low %v7190_v48, %v7195_v39 }
0x2345   : > { %v3375_v43 = vpop.f32.mrb[90].mxu0  ;;  %5850 = vmatpush3.bf16.msra.mxu0 %v6109_v37  ;;  %v7210_v45 = vld [vmem:[%s7567_s10 + $0x38] sm:$0xff] }
0x2346   : > { %v7125_v46 = vadd.f32 %v3375_v43, %v7003_v57  ;;  %v5840_v36 = vpop.f32.mrb[91].mxu0  ;;  %v3381_v27 = vmul.f32 %v7122_v42, %v7122_v42  ;;  %v6110_v57 = vld [vmem:[%s7568_s11 + $0x28] sm:$0xff]   ;;  %5851 = vmatprep.subr.bf16.mxu0 %v6294_v7 }
0x2348   : > { %v3383_v2 = vsel %vm587_vm0, %v3381_v27, 0.0  ;;  %v3382_v33 = vmul.f32 %v7125_v46, %v7125_v46 }
0x2349   : > { %3384 = vadd.xlane.f32.xlu1 %v3383_v2  ;;  %5852 = vmatpush3.bf16.msra.mxu0 %v6110_v57 }
0x234a   : > { %v3386_v6 = vsel %vm587_vm0, %v3382_v33, 0.0  ;;  %5853 = vmatprep.subr.bf16.mxu0 %v6294_v7 }
0x234b   : > { %3387 = vadd.xlane.f32.xlu0 %v3386_v6 }
0x234d   : > { %5854 = vmatpush3.bf16.msra.mxu0 %v6111_v12 }
0x234e   : > { %5855 = vmatprep.subr.bf16.mxu0 %v6294_v7 }
0x2351   : > { %5856 = vmatpush3.bf16.msra.mxu0 %v6112_v54 }
0x2352   : > { %5875 = vmatprep.subr.bf16.mxu0 %v6294_v7 }
0x235a   : > { %3406 = vrot.lane.b32.xlu1 %v6815_v61, %s6298_s14 }
0x235e   : > { %3408 = vrot.lane.b32.xlu1 %v6834_v15, %s6298_s14 }
0x2361   : > { %3404 = vrot.lane.b32.xlu0 %v6810_v60, %s6298_s14 }
0x2362   : > { %3410 = vrot.lane.b32.xlu1 %v6839_v20, %s6298_s14 }
0x23d6   : > { %v3385_v61 = vpop.xlane.xlu1 %3384 }
0x23d7   : > { %v3389_v15 = vmul.f32 0.03125, %v3385_v61  ;;  %v3560_v61 = vrot.slane %v7154_v1, %v1976_v30 }
0x23d8   : > { %v3388_v60 = vpop.xlane.xlu0 %3387 }
0x23d9   : > { %v3391_v49 = vadd.f32 1e-06, %v3389_v15  ;;  %v3390_v29 = vmul.f32 0.03125, %v3388_v60 }
0x23da   : > { %v3407_v20 = vpop.permute.xlu1 %3406 }
0x23db   : > { %6217 = vrsqrt.f32 %v3391_v49  ;;  %v3392_v51 = vadd.f32 1e-06, %v3390_v29  ;;  %v3413_v52 = vrot.slane %v3407_v20, 4 }
0x23dc   : > { %v3405_v53 = vpop.permute.xlu0 %3404 }
0x23dd   : > { %6219 = vrsqrt.f32 %v3392_v51  ;;  %v3412_v21 = vrot.slane %v3405_v53, 4 }
0x23de   : > { %v3409_v40 = vpop.permute.xlu1 %3408 }
0x23df   : > { %v5288_v18 = vcombine.low %v3412_v21, %v3413_v52  ;;  %v3414_v55 = vrot.slane %v3409_v40, 4 }
0x23e1   : > { %5842 = vmatpush3.bf16.msra.mxu1 %v5288_v18 }
0x23e2   : > { %v3411_v56 = vpop.permute.xlu1 %3410  ;;  %5843 = vmatprep.subr.bf16.mxu1 %v6294_v7 }
0x23e3   : > { %v3415_v58 = vrot.slane %v3411_v56, 4 }
0x23e5   : > { %v6218_v22 = vpop.eup %6217  ;;  %v5289_v59 = vcombine.low %v3414_v55, %v3415_v58 }
0x23e6   : > { %v3395_v0 = vmul.f32 %v6218_v22, %v7122_v42 }
0x23e7   : > { %v6220_v17 = vpop.eup %6219  ;;  %5844 = vmatpush3.bf16.msra.mxu1 %v5289_v59  ;;  %v6281_v59 = vld [vmem:[%s7562_s5] sm:$0xff] }
0x23e8   : > { %v3396_v3 = vmul.f32 %v6220_v17, %v7125_v46  ;;  %5861 = vmatprep.subr.bf16.mxu1 %v6294_v7  ;;  %v3401_v4 = vmul.f32 %v3400_v62, %v3395_v0 }
0x23ea   : > { %v3402_v10 = vmul.f32 %v3400_v62, %v3396_v3 }
0x23ec   : > { %v3403_v11 = vpack.c.bf16 %v3402_v10, %v3401_v4 }
0x23ee   : > { %5846 = vmatmul.mubr.msk.bf16.vlgmr.msra.gmra.mrb[88].mxu1 %vm587_vm0, %v3403_v11 }
0x23ef   : > { %5865 = vmatprep.mubr.msk.bf16.mxu1 %vm6295_vm1, %v6294_v7  ;;  %5862 = vmatpush3.bf16.msra.mxu1 %v7199_v47 }
0x23f0   : > { %5863 = vmatprep.subr.bf16.mxu1 %v6294_v7 }
0x24c1   : > { %v3461_v13 = vpop.f32.mrb[88].mxu1 }
0x24c2   : > { %v5847_v63 = vpop.f32.mrb[89].mxu1  ;;  %v3468_v19 = vmax.f32 %v3461_v13, 0.0 }
0x24c3   : > { %v3464_v5 = vpop.f32.mrb[90].mxu1 }
0x24c4   : > { %v3469_v23 = vmax.f32 %v3464_v5, 0.0  ;;  %v5848_v24 = vpop.f32.mrb[91].mxu1 }
0x24c6   : > { %v3470_v25 = vpack.c.bf16 %v3469_v23, %v3468_v19 }
0x24c8   : > { %5858 = vmatmul.mubr.msk.bf16.vlgmr.msra.gmra.mrb[92].mxu0 %vm1313_vm5, %v3470_v25 }
0x24c9   : > { %5877 = vmatprep.mubr.msk.bf16.mxu0 %vm6295_vm1, %v6294_v7 }
0x259b   : > { %v3532_v28 = vpop.f32.mrb[92].mxu0 }
0x259c   : > { %v7176_v9 = vadd.f32 %v3532_v28, %v7122_v42  ;;  %v5859_v44 = vpop.f32.mrb[93].mxu0  ;;  %v7205_v42 = vld [vmem:[%s7567_s10 + $0x30] sm:$0xff] }
0x259d   : > { %v3535_v26 = vpop.f32.mrb[94].mxu0  ;;  %v7215_v43 = vcombine.low %v7205_v42, %v7210_v45 }
0x259e   : > { %v7179_v32 = vadd.f32 %v3535_v26, %v7125_v46  ;;  %v5860_v35 = vpop.f32.mrb[95].mxu0  ;;  %v3541_v50 = vmul.f32 %v7176_v9, %v7176_v9 }
0x259f   : > { %5864 = vmatpush3.bf16.msra.mxu1 %v7215_v43 }
0x25a0   : > { %v3543_v31 = vsel %vm587_vm0, %v3541_v50, 0.0  ;;  %v3542_v38 = vmul.f32 %v7179_v32, %v7179_v32  ;;  %5869 = vmatprep.subr.bf16.mxu1 %v6294_v7 }
0x25a1   : > { %3544 = vadd.xlane.f32.xlu0 %v3543_v31 }
0x25a2   : > { %v3546_v34 = vsel %vm587_vm0, %v3542_v38, 0.0 }
0x25a3   : > { %3547 = vadd.xlane.f32.xlu1 %v3546_v34 }
0x262e   : > { %v3545_v46 = vpop.xlane.xlu0 %3544 }
0x262f   : > { %v3549_v36 = vmul.f32 0.03125, %v3545_v46 }
0x2630   : > { %v3548_v27 = vpop.xlane.xlu1 %3547 }
0x2631   : > { %v3551_v2 = vadd.f32 1e-06, %v3549_v36  ;;  %v3550_v33 = vmul.f32 0.03125, %v3548_v27 }
0x2633   : > { %6221 = vrsqrt.f32 %v3551_v2  ;;  %v3552_v6 = vadd.f32 1e-06, %v3550_v33 }
0x2635   : > { %6223 = vrsqrt.f32 %v3552_v6 }
0x263d   : > { %v6222_v37 = vpop.eup %6221 }
0x263e   : > { %v3555_v57 = vmul.f32 %v6222_v37, %v7176_v9 }
0x263f   : > { %v6224_v15 = vpop.eup %6223 }
0x2640   : > { %v3556_v60 = vmul.f32 %v6224_v15, %v7179_v32  ;;  %v3561_v49 = vmul.f32 %v3560_v61, %v3555_v57 }
0x2642   : > { %v3562_v29 = vmul.f32 %v3560_v61, %v3556_v60 }
0x2644   : > { %v3563_v20 = vpack.c.bf16 %v3562_v29, %v3561_v49 }
0x2646   : > { %5866 = vmatmul.mubr.msk.bf16.vlgmr.msra.gmra.mrb[92].mxu1 %vm587_vm0, %v3563_v20 }
0x2647   : > { %5871 = vmatprep.mubr.msk.bf16.mxu1 %vm6295_vm1, %v6294_v7 }
0x2719   : > { %v3613_v51 = vpop.f32.mrb[92].mxu1 }
0x271a   : > { %v7227_v52 = vpack.c.bf16 %v3613_v51, %v3613_v51  ;;  %v5867_v53 = vpop.f32.mrb[93].mxu1 }
0x271b   : > { %v3616_v21 = vpop.f32.mrb[94].mxu1 }
0x271c   : > { %v7229_v40 = vpack.c.bf16 %v3616_v21, %v3616_v21  ;;  %3626 = vrot.lane.b32.xlu0 %v7227_v52, %s6296_s21  ;;  %v5868_v30 = vpop.f32.mrb[95].mxu1 }
0x271e   : > { %3674 = vrot.lane.b32.xlu1 %v7229_v40, %s6296_s21 }
0x278e   : > { %v3627_v18 = vpop.permute.xlu0 %3626 }
0x278f   : > { %v3632_v55 = vsel %vm674_vm2, %v3627_v18, 0 }
0x2790   : > { %5870 = vmatpush3.bf16.xpose.msra.mxu1 %v3632_v55  ;;  %v3675_v56 = vpop.permute.xlu1 %3674 }
0x2791   : > { %v3680_v58 = vsel %vm674_vm2, %v3675_v56, 0  ;;  %5881 = vmatprep.subr.bf16.mxu1 %v6294_v7 }
0x2792   : > { %5876 = vmatpush3.bf16.xpose.msra.mxu0 %v3680_v58 }
0x2793   : > { %5887 = vmatprep.subr.bf16.mxu0 %v6294_v7 }
0x2797   : > { %5872 = vmatmul.mubr.msk.bf16.vlgmr.msra.gmra.mrb[96].mxu1 %vm674_vm2, %v7227_v52 }
0x2798   : > { %5883 = vmatprep.mubr.msk.bf16.mxu1 %vm6295_vm1, %v6294_v7 }
0x2799   : > { %5878 = vmatmul.mubr.msk.bf16.vlgmr.msra.gmra.mrb[96].mxu0 %vm674_vm2, %v7229_v40 }
0x279a   : > { %5889 = vmatprep.mubr.msk.bf16.mxu0 %vm6295_vm1, %v6294_v7 }
0x286a   : > { %v3668_v22 = vpop.f32.mrb[96].mxu1 }
0x286b   : > { %v3669_v0 = vadd.f32 %v6281_v59, %v3668_v22  ;;  %v5873_v62 = vpop.f32.mrb[97].mxu1 }
0x286c   : > { %v3671_v17 = vpop.f32.mrb[98].mxu1  ;;  %v3716_v3 = vpop.f32.mrb[96].mxu0 }
0x286d   : > { %v3717_v4 = vadd.f32 %v6281_v59, %v3716_v3  ;;  %v5874_v10 = vpop.f32.mrb[99].mxu1  ;;  %v5879_v11 = vpop.f32.mrb[97].mxu0  ;;  %v3722_v12 = vsel %vm783_vm3, %v3669_v0, -inf  ;;  %v6282_v17 = vld [vmem:[%s7562_s5 + $0x8] sm:$0xff] }
0x286e   : > { %3723 = vmax.xlane.f32.xlu0 %v3722_v12  ;;  %v3719_v54 = vpop.f32.mrb[98].mxu0 }
0x286f   : > { %v5880_v13 = vpop.f32.mrb[99].mxu0  ;;  %v3725_v63 = vsel %vm783_vm3, %v3717_v4, -inf }
0x2870   : > { %3726 = vmax.xlane.f32.xlu1 %v3725_v63 }
0x2881   : > { %3796 = vrot.lane.b32.xlu1 %v7229_v40, %s6298_s14 }
0x2885   : > { %3846 = vrot.lane.b32.xlu1 %v7227_v52, %s6297_s27 }
0x2889   : > { %3896 = vrot.lane.b32.xlu1 %v7229_v40, %s6297_s27 }
0x288d   : > { %3894 = vrot.lane.b32.xlu1 %v7229_v40, %s6299_s15 }
0x28fb   : > { %v3724_v5 = vpop.xlane.xlu0 %3723 }
0x28fc   : > { %v3728_v19 = vsub.f32 %v3669_v0, %v3724_v5 }
0x28fd   : > { %v3727_v23 = vpop.xlane.xlu1 %3726 }
0x28fe   : > { %v3730_v24 = vmul.f32 1.442695, %v3728_v19  ;;  %v3729_v25 = vsub.f32 %v3717_v4, %v3727_v23 }
0x2900   : > { %6225 = vpow2.f32 %v3730_v24  ;;  %v3732_v28 = vmul.f32 1.442695, %v3729_v25 }
0x2901   : > { %v3797_v44 = vpop.permute.xlu1 %3796 }
0x2902   : > { %6227 = vpow2.f32 %v3732_v28  ;;  %v3802_v26 = vsel %vm815_vm4, %v3797_v44, 0 }
0x2903   : > { %5888 = vmatpush3.bf16.msra.mxu0 %v3802_v26 }
0x2904   : > { %5899 = vmatprep.subr.bf16.mxu0 %v6294_v7 }
0x2905   : > { %v3847_v37 = vpop.permute.xlu1 %3846 }
0x2906   : > { %v3852_v60 = vsel %vm674_vm2, %v3847_v37, 0 }
0x2909   : > { %v3897_v29 = vpop.permute.xlu1 %3896 }
0x290a   : > { %v6226_v35 = vpop.eup %6225  ;;  %v3902_v51 = vsel %vm674_vm2, %v3897_v29, 0  ;;  %v6115_v29 = vld [vmem:[%s7568_s11 + $0x40] sm:$0xff]  }
0x290b   : > { %v3734_v50 = vsel %vm783_vm3, %v6226_v35, 0.0 }
0x290c   : > { %v6228_v31 = vpop.eup %6227  ;;  %3735 = vadd.xlane.f32.xlu0 %v3734_v50 }
0x290d   : > { %v3737_v38 = vsel %vm783_vm3, %v6228_v31, 0.0  ;;  %v3895_v21 = vpop.permute.xlu1 %3894 }
0x2910   : > { %3738 = vadd.xlane.f32.xlu0 %v3737_v38 }
0x2926   : > { %3748 = vrot.lane.b32.xlu0 %v7227_v52, %s6298_s14 }
0x292a   : > { %3844 = vrot.lane.b32.xlu0 %v7227_v52, %s6299_s15 }
0x2999   : > { %v3736_v34 = vpop.xlane.xlu0 %3735 }
0x299a   : > { %v3740_v46 = vmax.f32 %v3736_v34, 1e-09 }
0x299c   : > { %6229 = vrcp.f32 %v3740_v46 }
0x299d   : > { %v3739_v36 = vpop.xlane.xlu0 %3738 }
0x299e   : > { %v3741_v27 = vmax.f32 %v3739_v36, 1e-09 }
0x29a0   : > { %6231 = vrcp.f32 %v3741_v27 }
0x29a1   : > { %v3749_v2 = vpop.permute.xlu0 %3748 }
0x29a2   : > { %v3754_v33 = vsel %vm815_vm4, %v3749_v2, 0 }
0x29a3   : > { %5882 = vmatpush3.bf16.msra.mxu1 %v3754_v33 }
0x29a4   : > { %5893 = vmatprep.subr.bf16.mxu1 %v6294_v7 }
0x29a5   : > { %v3845_v53 = vpop.permute.xlu0 %3844 }
0x29a6   : > { %v6230_v6 = vpop.eup %6229 }
0x29a7   : > { %v3744_v57 = vmul.f32 %v6230_v6, %v6226_v35 }
0x29a9   : > { %v3746_v61 = vpack.c.bf16 %v3744_v57, %v3744_v57 }
0x29aa   : > { %v6232_v15 = vpop.eup %6231 }
0x29ab   : > { %v3745_v49 = vmul.f32 %v6232_v15, %v6228_v31  ;;  %5884 = vmatmul.mubr.msk.bf16.vlgmr.msra.gmra.mrb[100].mxu1 %vm783_vm3, %v3746_v61 }
0x29ac   : > { %5894 = vmatpush3.bf16.xpose.msra.mxu1 %v3852_v60  ;;  %5895 = vmatprep.mubr.msk.bf16.mxu1 %vm6295_vm1, %v6294_v7 }
0x29ad   : > { %v3747_v20 = vpack.c.bf16 %v3745_v49, %v3745_v49  ;;  %5905 = vmatprep.subr.bf16.mxu1 %v6294_v7 }
0x29af   : > { %5890 = vmatmul.mubr.msk.bf16.vlgmr.msra.gmra.mrb[100].mxu0 %vm783_vm3, %v3747_v20  ;;  %v6116_v20 = vld [vmem:[%s7568_s11 + $0x48] sm:$0xff]  }
0x29b0   : > { %5900 = vmatpush3.bf16.xpose.msra.mxu0 %v3902_v51  ;;  %5901 = vmatprep.mubr.msk.bf16.mxu0 %vm6295_vm1, %v6294_v7 }
0x29b1   : > { %5911 = vmatprep.subr.bf16.mxu0 %v6294_v7 }
0x29b3   : > { %5896 = vmatmul.mubr.msk.bf16.vlgmr.msra.gmra.mrb[104].mxu1 %vm674_vm2, %v3845_v53 }
0x29b4   : > { %5907 = vmatprep.mubr.msk.bf16.mxu1 %vm6295_vm1, %v6294_v7 }
0x29b7   : > { %5902 = vmatmul.mubr.msk.bf16.vlgmr.msra.gmra.mrb[104].mxu0 %vm674_vm2, %v3895_v21 }
0x29b8   : > { %5913 = vmatprep.mubr.msk.bf16.mxu0 %vm6295_vm1, %v6294_v7 }
0x2a7e   : > { %v7286_v30 = vpop.f32.mrb[100].mxu1 }
0x2a7f   : > { %v5885_v18 = vpop.f32.mrb[101].mxu1 }
0x2a80   : > { %v3793_v55 = vpop.f32.mrb[102].mxu1 }
0x2a81   : > { %v5886_v56 = vpop.f32.mrb[103].mxu1 }
0x2a82   : > { %v7288_v58 = vpop.f32.mrb[100].mxu0 }
0x2a83   : > { %v5891_v22 = vpop.f32.mrb[101].mxu0 }
0x2a84   : > { %v3841_v59 = vpop.f32.mrb[102].mxu0 }
0x2a85   : > { %v5892_v0 = vpop.f32.mrb[103].mxu0 }
0x2a86   : > { %v3888_v62 = vpop.f32.mrb[104].mxu1 }
0x2a87   : > { %v3889_v3 = vadd.f32 %v6282_v17, %v3888_v62  ;;  %v5897_v4 = vpop.f32.mrb[105].mxu1  ;;  %v4158_v62 = vrot.slane %v7190_v48, 4 }
0x2a88   : > { %v3891_v10 = vpop.f32.mrb[106].mxu1 }
0x2a89   : > { %v5898_v11 = vpop.f32.mrb[107].mxu1  ;;  %v3944_v12 = vsel %vm783_vm3, %v3889_v3, -inf }
0x2a8a   : > { %3945 = vmax.xlane.f32.xlu0 %v3944_v12  ;;  %v3938_v54 = vpop.f32.mrb[104].mxu0 }
0x2a8b   : > { %v3939_v13 = vadd.f32 %v6282_v17, %v3938_v54  ;;  %v5903_v63 = vpop.f32.mrb[105].mxu0  ;;  %v4159_v17 = vrot.slane %v7195_v39, 4 }
0x2a8c   : > { %v3941_v5 = vpop.f32.mrb[106].mxu0  ;;  %v4161_v63 = vrot.slane %v7210_v45, 4 }
0x2a8d   : > { %v5904_v19 = vpop.f32.mrb[107].mxu0  ;;  %v3947_v23 = vsel %vm783_vm3, %v3939_v13, -inf  ;;  %v5315_v11 = vcombine.low %v4158_v62, %v4159_v17  ;;  %v7384_v17 = vld [vmem:[%s6465_s24 + $0x1] ss:$0 sm:$0xff] }
0x2a8e   : > { %3948 = vmax.xlane.f32.xlu1 %v3947_v23 }
0x2a9f   : > { %4018 = vrot.lane.b32.xlu1 %v7229_v40, %s6300_s18 }
0x2b17   : > { %v3946_v24 = vpop.xlane.xlu0 %3945 }
0x2b18   : > { %v3950_v25 = vsub.f32 %v3889_v3, %v3946_v24 }
0x2b1a   : > { %v3952_v28 = vmul.f32 1.442695, %v3950_v25 }
0x2b1b   : > { %v3949_v44 = vpop.xlane.xlu1 %3948 }
0x2b1c   : > { %6233 = vpow2.f32 %v3952_v28  ;;  %v3951_v26 = vsub.f32 %v3939_v13, %v3949_v44  ;;  %v4160_v13 = vrot.slane %v7205_v42, 4 }
0x2b1e   : > { %v3954_v35 = vmul.f32 1.442695, %v3951_v26  ;;  %v5316_v19 = vcombine.low %v4160_v13, %v4161_v63 }
0x2b1f   : > { %v4019_v50 = vpop.permute.xlu1 %4018 }
0x2b20   : > { %6235 = vpow2.f32 %v3954_v35  ;;  %v4024_v31 = vsel %vm815_vm4, %v4019_v50, 0 }
0x2b21   : > { %5912 = vmatpush3.bf16.msra.mxu0 %v4024_v31 }
0x2b22   : > { %5925 = vmatprep.subr.bf16.mxu0 %v6294_v7 }
0x2b26   : > { %v6234_v38 = vpop.eup %6233 }
0x2b27   : > { %v3956_v34 = vsel %vm783_vm3, %v6234_v38, 0.0 }
0x2b28   : > { %3957 = vadd.xlane.f32.xlu0 %v3956_v34 }
0x2b2a   : > { %v6236_v46 = vpop.eup %6235 }
0x2b2b   : > { %v3959_v40 = vsel %vm783_vm3, %v6236_v46, 0.0 }
0x2b2c   : > { %3960 = vadd.xlane.f32.xlu0 %v3959_v40 }
0x2b42   : > { %3970 = vrot.lane.b32.xlu0 %v7227_v52, %s6300_s18  ;;  %s501_s18 = scalar_lea.vmem %s7570_s13, %s7577_s26 }
0x2bb5   : > { %v3958_v36 = vpop.xlane.xlu0 %3957 }
0x2bb6   : > { %v3962_v27 = vmax.f32 %v3958_v36, 1e-09 }
0x2bb8   : > { %6237 = vrcp.f32 %v3962_v27 }
0x2bb9   : > { %v3961_v2 = vpop.xlane.xlu0 %3960 }
0x2bba   : > { %v3963_v33 = vmax.f32 %v3961_v2, 1e-09 }
0x2bbc   : > { %6239 = vrcp.f32 %v3963_v33 }
0x2bbd   : > { %v3971_v6 = vpop.permute.xlu0 %3970 }
0x2bbe   : > { %v3976_v37 = vsel %vm815_vm4, %v3971_v6, 0 }
0x2bbf   : > { %5906 = vmatpush3.bf16.msra.mxu1 %v3976_v37 }
0x2bc0   : > { %5917 = vmatprep.subr.bf16.mxu1 %v6294_v7 }
0x2bc2   : > { %v6238_v57 = vpop.eup %6237 }
0x2bc3   : > { %v3966_v61 = vmul.f32 %v6238_v57, %v6234_v38 }
0x2bc5   : > { %v3968_v15 = vpack.c.bf16 %v3966_v61, %v3966_v61 }
0x2bc6   : > { %v6240_v60 = vpop.eup %6239 }
0x2bc7   : > { %v3967_v49 = vmul.f32 %v6240_v60, %v6236_v46  ;;  %5908 = vmatmul.mubr.msk.bf16.vlgmr.msra.gmra.mrb[108].mxu1 %vm783_vm3, %v3968_v15 }
0x2bc8   : > { %5921 = vmatprep.mubr.msk.bf16.mxu1 %vm6295_vm1, %v6294_v7  ;;  %5918 = vmatpush3.bf16.msra.mxu1 %v6115_v29 }
0x2bc9   : > { %v3969_v52 = vpack.c.bf16 %v3967_v49, %v3967_v49  ;;  %5919 = vmatprep.subr.bf16.mxu1 %v6294_v7 }
0x2bcb   : > { %5914 = vmatmul.mubr.msk.bf16.vlgmr.msra.gmra.mrb[108].mxu0 %vm783_vm3, %v3969_v52 }
0x2bcc   : > { %5929 = vmatprep.mubr.msk.bf16.mxu0 %vm6295_vm1, %v6294_v7  ;;  %5920 = vmatpush3.bf16.msra.mxu1 %v6116_v20 }
0x2bcd   : > { %5933 = vmatprep.subr.bf16.mxu1 %v6294_v7 }
0x2c9a   : > { %v4012_v51 = vpop.f32.mrb[108].mxu1 }
0x2c9b   : > { %v5909_v53 = vpop.f32.mrb[109].mxu1 }
0x2c9c   : > { %v4015_v21 = vpop.f32.mrb[110].mxu1 }
0x2c9d   : > { %v5910_v18 = vpop.f32.mrb[111].mxu1 }
0x2c9e   : > { %v4060_v55 = vpop.f32.mrb[108].mxu0 }
0x2c9f   : > { %v6067_v56 = vpack.i.bf16 %v4060_v55, %v4012_v51  ;;  %v5915_v22 = vpop.f32.mrb[109].mxu0 }
0x2ca0   : > { %v4063_v59 = vpop.f32.mrb[110].mxu0 }
0x2ca1   : > { %6068 = vrot.lane.b32.xlu1 %v6067_v56, %s6302_s17  ;;  %v5916_v0 = vpop.f32.mrb[111].mxu0  ;;  %v7380_v56 = vld [vmem:[%s6465_s24] ss:$0 sm:$0xff] }
0x2d13   : > { %v6069_v3 = vpop.permute.xlu1 %6068 }
0x2d14   : > { %v6071_v4 = vunpack.i.h.bf16 %v6069_v3  ;;  %v6070_v10 = vunpack.i.l.bf16 %v6069_v3 }
0x2d16   : > { %v4075_v12 = vsel %vm674_vm2, %v7288_v58, %v6071_v4  ;;  %v4074_v54 = vsel %vm674_vm2, %v7286_v30, %v6070_v10 }
0x2d17   : > { %v4076_v5 = vpack.c.bf16 %v4075_v12, %v4074_v54 }
0x2d19   : > { %5922 = vmatmul.mubr.msk.bf16.vlgmr.msra.gmra.mrb[112].mxu1 %vm587_vm0, %v4076_v5 }
0x2d1a   : > { %5934 = vmatpush3.bf16.msra.mxu1 %v5315_v11  ;;  %5937 = vmatprep.mubr.msk.bf16.mxu1 %vm6295_vm1, %v6294_v7 }
0x2d1b   : > { %5935 = vmatprep.subr.bf16.mxu1 %v6294_v7 }
0x2d1e   : > { %5936 = vmatpush3.bf16.msra.mxu1 %v5316_v19 }
0x2d1f   : > { %5947 = vmatprep.subr.bf16.mxu1 %v6294_v7 }
0x2d21   : > { %5938 = vmatmul.mubr.msk.bf16.vlgmr.msra.gmra.mrb[116].mxu1 %vm587_vm0, %v6993_v8 }
0x2d22   : > { %5949 = vmatprep.mubr.msk.bf16.mxu1 %vm6295_vm1, %v6294_v7 }
0x2dec   : > { %v4126_v30 = vpop.f32.mrb[112].mxu1 }
0x2ded   : > { %v7338_v58 = vadd.f32 %v4126_v30, %v7176_v9  ;;  %v5923_v23 = vpop.f32.mrb[113].mxu1 }
0x2dee   : > { %v4129_v24 = vpop.f32.mrb[114].mxu1 }
0x2def   : > { %v7341_v25 = vadd.f32 %v4129_v24, %v7179_v32  ;;  %v5924_v28 = vpop.f32.mrb[115].mxu1  ;;  %v4135_v44 = vmul.f32 %v7338_v58, %v7338_v58 }
0x2df1   : > { %v4137_v26 = vsel %vm587_vm0, %v4135_v44, 0.0  ;;  %v4136_v8 = vmul.f32 %v7341_v25, %v7341_v25 }
0x2df2   : > { %4138 = vadd.xlane.f32.xlu1 %v4137_v26 }
0x2df3   : > { %v4140_v35 = vsel %vm587_vm0, %v4136_v8, 0.0 }
0x2df4   : > { %4141 = vadd.xlane.f32.xlu0 %v4140_v35  ;;  %v4260_v9 = vpop.f32.mrb[116].mxu1 }
0x2df5   : > { %v5939_v50 = vpop.f32.mrb[117].mxu1  ;;  %v7365_v60 = vpack.c.bf16 %v4260_v9, %v4260_v9 }
0x2df6   : > { %v4263_v31 = vpop.f32.mrb[118].mxu1 }
0x2df7   : > { %v7349_v38 = vpack.c.bf16 %v4263_v31, %v4263_v31  ;;  %v5940_v32 = vpop.f32.mrb[119].mxu1  ;;  %v4277_v20 = vsel %vm674_vm2, %v7365_v60, 0 }
0x2df9   : > { %v4323_v34 = vsel %vm674_vm2, %v7349_v38, 0 }
0x2dfa   : > { %5948 = vmatpush3.bf16.xpose.msra.mxu1 %v4323_v34 }
0x2dfb   : > { %5959 = vmatprep.subr.bf16.mxu1 %v6294_v7 }
0x2e03   : > { %4164 = vrot.lane.b32.xlu1 %v7215_v43, %s7573_s29 }
0x2e0a   : > { %4162 = vrot.lane.b32.xlu0 %v7199_v47, %s7573_s29  ;;  %v4154_v47 = vrot.slane %v7154_v1, %v2134_v41 }
0x2e7f   : > { %v4139_v46 = vpop.xlane.xlu1 %4138 }
0x2e80   : > { %v4143_v40 = vmul.f32 0.03125, %v4139_v46 }
0x2e81   : > { %v4142_v36 = vpop.xlane.xlu0 %4141 }
0x2e82   : > { %v4145_v27 = vadd.f32 1e-06, %v4143_v40  ;;  %v4144_v2 = vmul.f32 0.03125, %v4142_v36 }
0x2e83   : > { %v4165_v37 = vpop.permute.xlu1 %4164 }
0x2e84   : > { %6241 = vrsqrt.f32 %v4145_v27  ;;  %v4146_v33 = vadd.f32 1e-06, %v4144_v2 }
0x2e85   : > { %v4163_v6 = vpop.permute.xlu0 %4162 }
0x2e86   : > { %6243 = vrsqrt.f32 %v4146_v33  ;;  %5926 = vmatpush3.bf16.msra.mxu0 %v4163_v6 }
0x2e87   : > { %5927 = vmatprep.subr.bf16.mxu0 %v6294_v7 }
0x2e8a   : > { %5928 = vmatpush3.bf16.msra.mxu0 %v4165_v37 }
0x2e8b   : > { %5941 = vmatprep.subr.bf16.mxu0 %v6294_v7 }
0x2e8e   : > { %v6242_v43 = vpop.eup %6241 }
0x2e8f   : > { %v4149_v57 = vmul.f32 %v6242_v43, %v7338_v58 }
0x2e90   : > { %v6244_v61 = vpop.eup %6243 }
0x2e91   : > { %v4150_v15 = vmul.f32 %v6244_v61, %v7341_v25  ;;  %v4155_v49 = vmul.f32 %v4154_v47, %v4149_v57 }
0x2e93   : > { %v4156_v52 = vmul.f32 %v4154_v47, %v4150_v15 }
0x2e95   : > { %v4157_v29 = vpack.c.bf16 %v4156_v52, %v4155_v49 }
0x2e97   : > { %5930 = vmatmul.mubr.msk.bf16.vlgmr.msra.gmra.mrb[112].mxu0 %vm587_vm0, %v4157_v29 }
0x2e98   : > { %5942 = vmatpush3.bf16.xpose.msra.mxu0 %v4277_v20  ;;  %5943 = vmatprep.mubr.msk.bf16.mxu0 %vm6295_vm1, %v6294_v7 }
0x2e99   : > { %5953 = vmatprep.subr.bf16.mxu0 %v6294_v7 }
0x2f6a   : > { %v4205_v41 = vpop.f32.mrb[112].mxu0 }
0x2f6b   : > { %v5360_v1 = vpack.c.bf16 %v4205_v41, %v4205_v41  ;;  %v5931_v51 = vpop.f32.mrb[113].mxu0 }
0x2f6c   : > { %v4208_v53 = vpop.f32.mrb[114].mxu0 }
0x2f6d   : > { %v5361_v21 = vpack.c.bf16 %v4208_v53, %v4208_v53  ;;  %v5932_v18 = vpop.f32.mrb[115].mxu0  ;;  %5944 = vmatmul.mubr.msk.bf16.vlgmr.msra.gmra.mrb[116].mxu0 %vm674_vm2, %v5360_v1 }
0x2f6e   : > { %5955 = vmatprep.mubr.msk.bf16.mxu0 %vm6295_vm1, %v6294_v7 }
0x2f6f   : > { %5950 = vmatmul.mubr.msk.bf16.vlgmr.msra.gmra.mrb[120].mxu1 %vm674_vm2, %v5361_v21 }
0x2f70   : > { %5961 = vmatprep.mubr.msk.bf16.mxu1 %vm6295_vm1, %v6294_v7 }
0x3040   : > { %v4313_v55 = vpop.f32.mrb[116].mxu0 }
0x3041   : > { %v4314_v22 = vadd.f32 %v7380_v56, %v4313_v55  ;;  %v5945_v59 = vpop.f32.mrb[117].mxu0 }
0x3042   : > { %v4316_v0 = vpop.f32.mrb[118].mxu0  ;;  %v4359_v62 = vpop.f32.mrb[120].mxu1 }
0x3043   : > { %v4360_v3 = vadd.f32 %v7384_v17, %v4359_v62  ;;  %v5946_v4 = vpop.f32.mrb[119].mxu0  ;;  %v5951_v10 = vpop.f32.mrb[121].mxu1  ;;  %v4365_v11 = vsel %vm783_vm3, %v4314_v22, -inf }
0x3044   : > { %v4362_v12 = vpop.f32.mrb[122].mxu1  ;;  %4366 = vmax.xlane.f32.xlu1 %v4365_v11 }
0x3045   : > { %v5952_v54 = vpop.f32.mrb[123].mxu1  ;;  %v4368_v13 = vsel %vm783_vm3, %v4360_v3, -inf }
0x3046   : > { %4369 = vmax.xlane.f32.xlu0 %v4368_v13 }
0x3055   : > { %4391 = vrot.lane.b32.xlu1 %v7365_v60, %s6296_s21 }
0x3059   : > { %4489 = vrot.lane.b32.xlu1 %v7365_v60, %s6299_s15 }
0x305d   : > { %4539 = vrot.lane.b32.xlu1 %v7349_v38, %s6299_s15 }
0x3061   : > { %4487 = vrot.lane.b32.xlu1 %v5360_v1, %s6299_s15 }
0x30d1   : > { %v4367_v63 = vpop.xlane.xlu1 %4366 }
0x30d2   : > { %v4371_v5 = vsub.f32 %v4314_v22, %v4367_v63 }
0x30d3   : > { %v4370_v19 = vpop.xlane.xlu0 %4369 }
0x30d4   : > { %v4373_v30 = vmul.f32 1.442695, %v4371_v5  ;;  %v4372_v23 = vsub.f32 %v4360_v3, %v4370_v19 }
0x30d5   : > { %v4392_v24 = vpop.permute.xlu1 %4391 }
0x30d6   : > { %6245 = vpow2.f32 %v4373_v30  ;;  %v4375_v28 = vmul.f32 1.442695, %v4372_v23  ;;  %v4397_v44 = vsel %vm815_vm4, %v4392_v24, 0 }
0x30d7   : > { %5954 = vmatpush3.bf16.msra.mxu0 %v4397_v44 }
0x30d8   : > { %6247 = vpow2.f32 %v4375_v28  ;;  %5965 = vmatprep.subr.bf16.mxu0 %v6294_v7 }
0x30d9   : > { %v4490_v27 = vpop.permute.xlu1 %4489 }
0x30da   : > { %v4495_v37 = vsel %vm674_vm2, %v4490_v27, 0  ;;  %v6117_v27 = vld [vmem:[%s7568_s11 + $0x50] sm:$0xff]  }
0x30dd   : > { %v4540_v57 = vpop.permute.xlu1 %4539 }
0x30de   : > { %v4545_v61 = vsel %vm674_vm2, %v4540_v57, 0 }
0x30e0   : > { %v6246_v26 = vpop.eup %6245 }
0x30e1   : > { %v4377_v8 = vsel %vm783_vm3, %v6246_v26, 0.0  ;;  %v4488_v15 = vpop.permute.xlu1 %4487 }
0x30e2   : > { %v6248_v35 = vpop.eup %6247  ;;  %4378 = vadd.xlane.f32.xlu0 %v4377_v8 }
0x30e3   : > { %v4380_v9 = vsel %vm783_vm3, %v6248_v35, 0.0 }
0x30e6   : > { %4381 = vadd.xlane.f32.xlu0 %v4380_v9 }
0x30fc   : > { %4439 = vrot.lane.b32.xlu0 %v7349_v38, %s6296_s21 }
0x3100   : > { %4537 = vrot.lane.b32.xlu0 %v5361_v21, %s6299_s15 }
0x316f   : > { %v4379_v50 = vpop.xlane.xlu0 %4378 }
0x3170   : > { %v4383_v31 = vmax.f32 %v4379_v50, 1e-09 }
0x3172   : > { %6249 = vrcp.f32 %v4383_v31 }
0x3173   : > { %v4382_v32 = vpop.xlane.xlu0 %4381 }
0x3174   : > { %v4384_v34 = vmax.f32 %v4382_v32, 1e-09 }
0x3176   : > { %6251 = vrcp.f32 %v4384_v34 }
0x3177   : > { %v4440_v46 = vpop.permute.xlu0 %4439 }
0x3178   : > { %v4445_v40 = vsel %vm815_vm4, %v4440_v46, 0 }
0x3179   : > { %5960 = vmatpush3.bf16.msra.mxu1 %v4445_v40 }
0x317a   : > { %5971 = vmatprep.subr.bf16.mxu1 %v6294_v7 }
0x317b   : > { %v4538_v49 = vpop.permute.xlu0 %4537 }
0x317c   : > { %v6250_v36 = vpop.eup %6249 }
0x317d   : > { %v4387_v2 = vmul.f32 %v6250_v36, %v6246_v26 }
0x317f   : > { %v4389_v33 = vpack.c.bf16 %v4387_v2, %v4387_v2  ;;  %v6118_v2 = vld [vmem:[%s7568_s11 + $0x58] sm:$0xff]  }
0x3180   : > { %v6252_v6 = vpop.eup %6251 }
0x3181   : > { %v4388_v43 = vmul.f32 %v6252_v6, %v6248_v35  ;;  %5956 = vmatmul.mubr.msk.bf16.vlgmr.msra.gmra.mrb[120].mxu0 %vm783_vm3, %v4389_v33 }
0x3182   : > { %5966 = vmatpush3.bf16.xpose.msra.mxu0 %v4495_v37  ;;  %5967 = vmatprep.mubr.msk.bf16.mxu0 %vm6295_vm1, %v6294_v7 }
0x3183   : > { %v4390_v47 = vpack.c.bf16 %v4388_v43, %v4388_v43  ;;  %5977 = vmatprep.subr.bf16.mxu0 %v6294_v7 }
0x3185   : > { %5962 = vmatmul.mubr.msk.bf16.vlgmr.msra.gmra.mrb[124].mxu1 %vm783_vm3, %v4390_v47 }
0x3186   : > { %5972 = vmatpush3.bf16.xpose.msra.mxu1 %v4545_v61  ;;  %5973 = vmatprep.mubr.msk.bf16.mxu1 %vm6295_vm1, %v6294_v7 }
0x3187   : > { %5983 = vmatprep.subr.bf16.mxu1 %v6294_v7 }
0x3189   : > { %5968 = vmatmul.mubr.msk.bf16.vlgmr.msra.gmra.mrb[124].mxu0 %vm674_vm2, %v4488_v15 }
0x318a   : > { %5979 = vmatprep.mubr.msk.bf16.mxu0 %vm6295_vm1, %v6294_v7 }
0x318d   : > { %5974 = vmatmul.mubr.msk.bf16.vlgmr.msra.gmra.mrb[128].mxu1 %vm674_vm2, %v4538_v49 }
0x318e   : > { %5985 = vmatprep.mubr.msk.bf16.mxu1 %vm6295_vm1, %v6294_v7 }
0x3254   : > { %v7421_v52 = vpop.f32.mrb[120].mxu0 }
0x3255   : > { %v5957_v29 = vpop.f32.mrb[121].mxu0 }
0x3256   : > { %v4436_v20 = vpop.f32.mrb[122].mxu0 }
0x3257   : > { %v5958_v41 = vpop.f32.mrb[123].mxu0 }
0x3258   : > { %v7423_v1 = vpop.f32.mrb[124].mxu1 }
0x3259   : > { %v5963_v51 = vpop.f32.mrb[125].mxu1 }
0x325a   : > { %v4484_v53 = vpop.f32.mrb[126].mxu1 }
0x325b   : > { %v5964_v21 = vpop.f32.mrb[127].mxu1 }
0x325c   : > { %v4531_v18 = vpop.f32.mrb[124].mxu0 }
0x325d   : > { %v4532_v55 = vadd.f32 %v7380_v56, %v4531_v18  ;;  %v5969_v22 = vpop.f32.mrb[125].mxu0 }
0x325e   : > { %v4534_v59 = vpop.f32.mrb[126].mxu0 }
0x325f   : > { %v5970_v0 = vpop.f32.mrb[127].mxu0  ;;  %v4587_v62 = vsel %vm783_vm3, %v4532_v55, -inf }
0x3260   : > { %v4581_v3 = vpop.f32.mrb[128].mxu1  ;;  %4588 = vmax.xlane.f32.xlu1 %v4587_v62 }
0x3261   : > { %v4582_v4 = vadd.f32 %v7384_v17, %v4581_v3  ;;  %v5975_v10 = vpop.f32.mrb[129].mxu1 }
0x3262   : > { %v4584_v11 = vpop.f32.mrb[130].mxu1 }
0x3263   : > { %v5976_v12 = vpop.f32.mrb[131].mxu1  ;;  %v4590_v54 = vsel %vm783_vm3, %v4582_v4, -inf }
0x3264   : > { %4591 = vmax.xlane.f32.xlu0 %v4590_v54 }
0x3271   : > { %4613 = vrot.lane.b32.xlu1 %v7365_v60, %s6297_s27 }
0x32ed   : > { %v4589_v13 = vpop.xlane.xlu1 %4588 }
0x32ee   : > { %v4593_v56 = vsub.f32 %v4532_v55, %v4589_v13 }
0x32f0   : > { %v4595_v63 = vmul.f32 1.442695, %v4593_v56 }
0x32f1   : > { %v4592_v5 = vpop.xlane.xlu0 %4591  ;;  %v4614_v19 = vpop.permute.xlu1 %4613 }
0x32f2   : > { %6253 = vpow2.f32 %v4595_v63  ;;  %v4594_v30 = vsub.f32 %v4582_v4, %v4592_v5  ;;  %v4619_v23 = vsel %vm815_vm4, %v4614_v19, 0 }
0x32f3   : > { %5978 = vmatpush3.bf16.msra.mxu0 %v4619_v23  ;;  %v4796_v23 = vsub.s32 5, %v6425_v16 }
0x32f4   : > { %v4597_v17 = vmul.f32 1.442695, %v4594_v30  ;;  %5989 = vmatprep.subr.bf16.mxu0 %v6294_v7 }
0x32f6   : > { %6255 = vpow2.f32 %v4597_v17 }
0x32fc   : > { %v6254_v24 = vpop.eup %6253 }
0x32fd   : > { %v4599_v28 = vsel %vm783_vm3, %v6254_v24, 0.0 }
0x32fe   : > { %4600 = vadd.xlane.f32.xlu0 %v4599_v28 }
0x3300   : > { %v6256_v44 = vpop.eup %6255 }
0x3301   : > { %v4602_v60 = vsel %vm783_vm3, %v6256_v44, 0.0 }
0x3302   : > { %4603 = vadd.xlane.f32.xlu0 %v4602_v60  ;;  %v6285_v60 = vld [vmem:[%s7569_s12] sm:$0x7f] }
0x3318   : > { %4661 = vrot.lane.b32.xlu0 %v7349_v38, %s6297_s27 }
0x338b   : > { %v4601_v26 = vpop.xlane.xlu0 %4600 }
0x338c   : > { %v4605_v8 = vmax.f32 %v4601_v26, 1e-09  ;;  %v4797_v26 = vrot.slane %v6285_v60, %v4796_v23 }
0x338e   : > { %6257 = vrcp.f32 %v4605_v8 }
0x338f   : > { %v4604_v35 = vpop.xlane.xlu0 %4603 }
0x3390   : > { %v4606_v9 = vmax.f32 %v4604_v35, 1e-09 }
0x3392   : > { %6259 = vrcp.f32 %v4606_v9 }
0x3393   : > { %v4662_v50 = vpop.permute.xlu0 %4661 }
0x3394   : > { %v4667_v31 = vsel %vm815_vm4, %v4662_v50, 0 }
0x3395   : > { %5984 = vmatpush3.bf16.msra.mxu1 %v4667_v31 }
0x3396   : > { %5997 = vmatprep.subr.bf16.mxu1 %v6294_v7 }
0x3398   : > { %v6258_v32 = vpop.eup %6257 }
0x3399   : > { %v4609_v34 = vmul.f32 %v6258_v32, %v6254_v24  ;;  %v6121_v32 = vld [vmem:[%s7568_s11 + $0x70] sm:$0xff]  }
0x339b   : > { %v4611_v46 = vpack.c.bf16 %v4609_v34, %v4609_v34  ;;  %v6122_v34 = vld [vmem:[%s7568_s11 + $0x78] sm:$0xff]  }
0x339c   : > { %v6260_v40 = vpop.eup %6259 }
0x339d   : > { %v4610_v36 = vmul.f32 %v6260_v40, %v6256_v44  ;;  %5980 = vmatmul.mubr.msk.bf16.vlgmr.msra.gmra.mrb[128].mxu0 %vm783_vm3, %v4611_v46 }
0x339e   : > { %5993 = vmatprep.mubr.msk.bf16.mxu0 %vm6295_vm1, %v6294_v7  ;;  %5990 = vmatpush3.bf16.msra.mxu0 %v6117_v27 }
0x339f   : > { %v4612_v38 = vpack.c.bf16 %v4610_v36, %v4610_v36  ;;  %5991 = vmatprep.subr.bf16.mxu0 %v6294_v7 }
0x33a1   : > { %5986 = vmatmul.mubr.msk.bf16.vlgmr.msra.gmra.mrb[132].mxu1 %vm783_vm3, %v4612_v38 }
0x33a2   : > { %6001 = vmatprep.mubr.msk.bf16.mxu1 %vm6295_vm1, %v6294_v7  ;;  %5992 = vmatpush3.bf16.msra.mxu0 %v6118_v2 }
0x33a3   : > { %6005 = vmatprep.subr.bf16.mxu0 %v6294_v7 }
0x3470   : > { %v4655_v33 = vpop.f32.mrb[128].mxu0 }
0x3471   : > { %v5981_v6 = vpop.f32.mrb[129].mxu0 }
0x3472   : > { %v4658_v37 = vpop.f32.mrb[130].mxu0 }
0x3473   : > { %v5982_v43 = vpop.f32.mrb[131].mxu0 }
0x3474   : > { %v4703_v57 = vpop.f32.mrb[132].mxu1 }
0x3475   : > { %v6072_v47 = vpack.i.bf16 %v4703_v57, %v4655_v33  ;;  %v5987_v61 = vpop.f32.mrb[133].mxu1 }
0x3476   : > { %v4706_v15 = vpop.f32.mrb[134].mxu1 }
0x3477   : > { %v5988_v49 = vpop.f32.mrb[135].mxu1  ;;  %6073 = vrot.lane.b32.xlu1 %v6072_v47, %s6302_s17 }
0x34e9   : > { %v6074_v29 = vpop.permute.xlu1 %6073 }
0x34ea   : > { %v6076_v20 = vunpack.i.h.bf16 %v6074_v29  ;;  %v6075_v41 = vunpack.i.l.bf16 %v6074_v29 }
0x34ec   : > { %v4718_v51 = vsel %vm674_vm2, %v7423_v1, %v6076_v20  ;;  %v4717_v53 = vsel %vm674_vm2, %v7421_v52, %v6075_v41  ;;  %v6123_v41 = vld [vmem:[%s7563_s6] sm:$0xff]  }
0x34ed   : > { %v4719_v21 = vpack.c.bf16 %v4718_v51, %v4717_v53  ;;  %v6124_v51 = vld [vmem:[%s7563_s6 + $0x8] sm:$0xff]   ;;  %v6303_v53 = vmov 0  }
0x34ee   : > { %6078 = vset.pattern.permute.xlu1 %v6303_v53  ;;  %6077 = vset.pattern.permute.xlu0 %v6303_v53 }
0x34ef   : > { %5994 = vmatmul.mubr.msk.bf16.vlgmr.msra.gmra.mrb[132].mxu0 %vm587_vm0, %v4719_v21  ;;  %v7526_v21 = vld [vmem:[%s7523_s23 + $0x8] sm:$0xff] }
0x34f0   : > { %6013 = vmatprep.mubr.msk.bf16.mxu0 %vm6295_vm1, %v6294_v7  ;;  %vm5072_vm9 = vcmp.ne.s32.totalorder %v7526_v21, 4294967196 }
0x35c2   : > { %v4769_v18 = vpop.f32.mrb[132].mxu0 }
0x35c3   : > { %v7462_v55 = vadd.f32 %v4769_v18, %v7338_v58  ;;  %v5995_v22 = vpop.f32.mrb[133].mxu0  ;;  %v6119_v58 = vld [vmem:[%s7568_s11 + $0x60] sm:$0xff]  }
0x35c4   : > { %v4772_v59 = vpop.f32.mrb[134].mxu0  ;;  %6006 = vmatpush3.bf16.msra.mxu0 %v6119_v58 }
0x35c5   : > { %v7465_v0 = vadd.f32 %v4772_v59, %v7341_v25  ;;  %v5996_v62 = vpop.f32.mrb[135].mxu0  ;;  %v4778_v1 = vmul.f32 %v7462_v55, %v7462_v55  ;;  %v6120_v25 = vld [vmem:[%s7568_s11 + $0x68] sm:$0xff]   ;;  %6007 = vmatprep.subr.bf16.mxu0 %v6294_v7 }
0x35c7   : > { %v4780_v52 = vsel %vm587_vm0, %v4778_v1, 0.0  ;;  %v4779_v3 = vmul.f32 %v7465_v0, %v7465_v0  ;;  %v4956_v1 = vsub.s32 6, %v6425_v16 }
0x35c8   : > { %4781 = vadd.xlane.f32.xlu1 %v4780_v52  ;;  %6008 = vmatpush3.bf16.msra.mxu0 %v6120_v25 }
0x35c9   : > { %v4783_v4 = vsel %vm587_vm0, %v4779_v3, 0.0  ;;  %6009 = vmatprep.subr.bf16.mxu0 %v6294_v7  ;;  %v4957_v52 = vrot.slane %v6285_v60, %v4956_v1 }
0x35ca   : > { %4784 = vadd.xlane.f32.xlu0 %v4783_v4 }
0x35cc   : > { %6010 = vmatpush3.bf16.msra.mxu0 %v6121_v32 }
0x35cd   : > { %6011 = vmatprep.subr.bf16.mxu0 %v6294_v7 }
0x35d0   : > { %6012 = vmatpush3.bf16.msra.mxu0 %v6122_v34 }
0x35d9   : > { %4803 = vrot.lane.b32.xlu1 %v7195_v39, %s6298_s14 }
0x35dd   : > { %4805 = vrot.lane.b32.xlu1 %v7205_v42, %s6298_s14 }
0x35e0   : > { %4801 = vrot.lane.b32.xlu0 %v7190_v48, %s6298_s14 }
0x35e1   : > { %4807 = vrot.lane.b32.xlu1 %v7210_v45, %s6298_s14 }
0x3655   : > { %v4782_v39 = vpop.xlane.xlu1 %4781 }
0x3656   : > { %v4786_v42 = vmul.f32 0.03125, %v4782_v39 }
0x3657   : > { %v4785_v48 = vpop.xlane.xlu0 %4784 }
0x3658   : > { %v4788_v10 = vadd.f32 1e-06, %v4786_v42  ;;  %v4787_v11 = vmul.f32 0.03125, %v4785_v48 }
0x3659   : > { %v4804_v45 = vpop.permute.xlu1 %4803 }
0x365a   : > { %6261 = vrsqrt.f32 %v4788_v10  ;;  %v4789_v12 = vadd.f32 1e-06, %v4787_v11  ;;  %v4810_v54 = vrot.slane %v4804_v45, 4 }
0x365b   : > { %v4802_v13 = vpop.permute.xlu0 %4801 }
0x365c   : > { %6263 = vrsqrt.f32 %v4789_v12  ;;  %v4809_v56 = vrot.slane %v4802_v13, 4 }
0x365d   : > { %v4806_v63 = vpop.permute.xlu1 %4805 }
0x365e   : > { %v5331_v5 = vcombine.low %v4809_v56, %v4810_v54  ;;  %v4811_v19 = vrot.slane %v4806_v63, 4  ;;  %v5023_v63 = vld [vmem:[%s7523_s23] sm:$0xff] }
0x365f   : > { %vm5071_vm8 = vcmp.ne.s32.totalorder %v5023_v63, 4294967196 }
0x3660   : > { %5998 = vmatpush3.bf16.msra.mxu1 %v5331_v5 }
0x3661   : > { %v4808_v30 = vpop.permute.xlu1 %4807  ;;  %5999 = vmatprep.subr.bf16.mxu1 %v6294_v7 }
0x3662   : > { %v4812_v17 = vrot.slane %v4808_v30, 4 }
0x3664   : > { %v6262_v24 = vpop.eup %6261  ;;  %v5332_v28 = vcombine.low %v4811_v19, %v4812_v17 }
0x3665   : > { %v4792_v44 = vmul.f32 %v6262_v24, %v7462_v55 }
0x3666   : > { %v6264_v8 = vpop.eup %6263  ;;  %6000 = vmatpush3.bf16.msra.mxu1 %v5332_v28  ;;  %v5050_v28 = vand.u32 127, %v603_v14 }
0x3667   : > { %v4793_v35 = vmul.f32 %v6264_v8, %v7465_v0  ;;  %6017 = vmatprep.subr.bf16.mxu1 %v6294_v7  ;;  %v4798_v9 = vmul.f32 %v4797_v26, %v4792_v44 }
0x3669   : > { %v4799_v50 = vmul.f32 %v4797_v26, %v4793_v35 }
0x366b   : > { %v4800_v31 = vpack.c.bf16 %v4799_v50, %v4798_v9 }
0x366d   : > { %6002 = vmatmul.mubr.msk.bf16.vlgmr.msra.gmra.mrb[136].mxu1 %vm587_vm0, %v4800_v31 }
0x366e   : > { %6021 = vmatprep.mubr.msk.bf16.mxu1 %vm6295_vm1, %v6294_v7  ;;  %6018 = vmatpush3.bf16.msra.mxu1 %v6123_v41 }
0x366f   : > { %6019 = vmatprep.subr.bf16.mxu1 %v6294_v7 }
0x3672   : > { %6020 = vmatpush3.bf16.msra.mxu1 %v6124_v51 }
0x3740   : > { %v4858_v46 = vpop.f32.mrb[136].mxu1 }
0x3741   : > { %v6003_v40 = vpop.f32.mrb[137].mxu1  ;;  %v4865_v38 = vmax.f32 %v4858_v46, 0.0 }
0x3742   : > { %v4861_v36 = vpop.f32.mrb[138].mxu1 }
0x3743   : > { %v4866_v27 = vmax.f32 %v4861_v36, 0.0  ;;  %v6004_v2 = vpop.f32.mrb[139].mxu1 }
0x3745   : > { %v4867_v33 = vpack.c.bf16 %v4866_v27, %v4865_v38 }
0x3747   : > { %6014 = vmatmul.mubr.msk.bf16.vlgmr.msra.gmra.mrb[136].mxu0 %vm1313_vm5, %v4867_v33 }
0x381a   : > { %v4929_v6 = vpop.f32.mrb[136].mxu0 }
0x381b   : > { %v4936_v37 = vadd.f32 %v4929_v6, %v7462_v55  ;;  %v6015_v43 = vpop.f32.mrb[137].mxu0 }
0x381c   : > { %v4932_v57 = vpop.f32.mrb[138].mxu0 }
0x381d   : > { %v4938_v47 = vmul.f32 %v4936_v37, %v4936_v37  ;;  %v4937_v61 = vadd.f32 %v4932_v57, %v7465_v0  ;;  %v6016_v15 = vpop.f32.mrb[139].mxu0  ;;  %v5344_v57 = vsel %vm5071_vm8, 1.0, %v6294_v7 }
0x381e   : > { %v5095_v41 = vsel %vm5081_vm10, %v5344_v57, 0.0 }
0x381f   : > { %v4939_v49 = vmul.f32 %v4937_v61, %v4937_v61  ;;  %v4940_v29 = vsel %vm587_vm0, %v4938_v47, 0.0 }
0x3820   : > { %4941 = vadd.xlane.f32.xlu0 %v4940_v29 }
0x3821   : > { %v4943_v20 = vsel %vm587_vm0, %v4939_v49, 0.0 }
0x3822   : > { %4944 = vadd.xlane.f32.xlu1 %v4943_v20 }
0x3833   : > { %5055 = vperm.xlu1 %6078, %v7526_v21  }
0x38ad   : > { %v4942_v18 = vpop.xlane.xlu0 %4941 }
0x38ae   : > { %v4946_v55 = vmul.f32 0.03125, %v4942_v18 }
0x38af   : > { %v4945_v22 = vpop.xlane.xlu1 %4944 }
0x38b0   : > { %v4948_v59 = vadd.f32 1e-06, %v4946_v55  ;;  %v4947_v0 = vmul.f32 0.03125, %v4945_v22 }
0x38b2   : > { %6265 = vrsqrt.f32 %v4948_v59  ;;  %v4949_v62 = vadd.f32 1e-06, %v4947_v0 }
0x38b3   : > { %v5056_v44 = vpop.permute.xlu1 %5055 }
0x38b4   : > { %6267 = vrsqrt.f32 %v4949_v62  ;;  %vm5058_vm7 = vcmp.eq.s32.totalorder %v5050_v28, %v5056_v44 }
0x38b5   : > { %v5343_v50 = vsel %vm5058_vm7, 1.0, %v6294_v7 }
0x38bc   : > { %v6266_v3 = vpop.eup %6265 }
0x38bd   : > { %v4952_v4 = vmul.f32 %v6266_v3, %v4936_v37 }
0x38be   : > { %v6268_v58 = vpop.eup %6267 }
0x38bf   : > { %v4953_v25 = vmul.f32 %v6268_v58, %v4937_v61  ;;  %v4958_v39 = vmul.f32 %v4957_v52, %v4952_v4  ;;  %v5345_v61 = vsel %vm5072_vm9, 1.0, %v6294_v7 }
0x38c0   : > { %v5096_v53 = vsel %vm5081_vm10, %v5345_v61, 0.0 }
0x38c1   : > { %v4959_v42 = vmul.f32 %v4957_v52, %v4953_v25  ;;  %v4960_v48 = vmul.f32 0.17677669, %v4958_v39  ;;  %v5097_v21 = vadd.f32 %v5096_v53, %v5095_v41 }
0x38c3   : > { %v4961_v10 = vmul.f32 0.17677669, %v4959_v42 }
0x38c5   : > { %v4962_v11 = vpack.c.bf16 %v4961_v10, %v4960_v48 }
0x38c7   : > { %6022 = vmatmul.mubr.msk.bf16.vlgmr.msra.gmra.mrb[140].mxu1 %vm587_vm0, %v4962_v11 }
0x399a   : > { %v5016_v45 = vpop.f32.mrb[140].mxu1 }
0x399b   : > { %v6023_v12 = vpop.f32.mrb[141].mxu1  ;;  %v5025_v54 = vsel %vm1313_vm5, %v5016_v45, -inf }
0x399c   : > { %5026 = vmax.xlane.f32.xlu0 %v5025_v54  ;;  %v5019_v13 = vpop.f32.mrb[142].mxu1 }
0x399d   : > { %v6024_v16 = vpop.f32.mrb[143].mxu1  ;;  %v5028_v56 = vsel %vm1313_vm5, %v5019_v13, -inf  ;;  %v5064_v32 = vmul.f32 %v5343_v50, %v5019_v13 }
0x399f   : > { %v5068_v14 = vsel %vm1313_vm5, %v5064_v32, 0.0 }
0x39a0   : > { %5029 = vmax.xlane.f32.xlu0 %v5028_v56 }
0x39b6   : > { %5052 = vperm.xlu0 %6077, %v5023_v63  }
0x3a29   : > { %v5027_v5 = vpop.xlane.xlu0 %5026 }
0x3a2a   : > { %v5031_v19 = vsub.f32 %v5016_v45, %v5027_v5 }
0x3a2c   : > { %v5033_v30 = vmul.f32 1.442695, %v5031_v19 }
0x3a2d   : > { %v5030_v23 = vpop.xlane.xlu0 %5029 }
0x3a2e   : > { %6269 = vpow2.f32 %v5033_v30  ;;  %v5032_v17 = vsub.f32 %v5019_v13, %v5030_v23 }
0x3a30   : > { %v5035_v24 = vmul.f32 1.442695, %v5032_v17 }
0x3a32   : > { %6271 = vpow2.f32 %v5035_v24 }
0x3a35   : > { %v5053_v60 = vpop.permute.xlu0 %5052 }
0x3a36   : > { %vm5057_vm6 = vcmp.eq.s32.totalorder %v5050_v28, %v5053_v60 }
0x3a37   : > { %v5342_v26 = vsel %vm5057_vm6, 1.0, %v6294_v7 }
0x3a38   : > { %v6270_v8 = vpop.eup %6269  ;;  %v5063_v35 = vmul.f32 %v5342_v26, %v5016_v45 }
0x3a39   : > { %v5037_v9 = vsel %vm1313_vm5, %v6270_v8, 0.0 }
0x3a3a   : > { %5038 = vadd.xlane.f32.xlu1 %v5037_v9  ;;  %v5065_v46 = vsel %vm1313_vm5, %v5063_v35, 0.0 }
0x3a3c   : > { %v6272_v31 = vpop.eup %6271 }
0x3a3d   : > { %v5040_v34 = vsel %vm1313_vm5, %v6272_v31, 0.0 }
0x3a3e   : > { %5041 = vadd.xlane.f32.xlu0 %v5040_v34  ;;  %5066 = vadd.xlane.f32.xlu1 %v5065_v46 }
0x3a42   : > { %5069 = vadd.xlane.f32.xlu1 %v5068_v14 }
0x3ac7   : > { %v5039_v40 = vpop.xlane.xlu1 %5038 }
0x3ac8   : > { %6273 = vlog2.f32 %v5039_v40 }
0x3acb   : > { %v5042_v36 = vpop.xlane.xlu0 %5041  ;;  %v5067_v2 = vpop.xlane.xlu1 %5066 }
0x3acc   : > { %6275 = vlog2.f32 %v5042_v36 }
0x3acf   : > { %v5070_v15 = vpop.xlane.xlu1 %5069 }
0x3ad2   : > { %v6274_v38 = vpop.eup %6273 }
0x3ad3   : > { %v5044_v27 = vmul.f32 0.6931472, %v6274_v38 }
0x3ad5   : > { %v5047_v33 = vadd.f32 %v5044_v27, %v5027_v5 }
0x3ad6   : > { %v6276_v6 = vpop.eup %6275 }
0x3ad7   : > { %v5046_v37 = vmul.f32 0.6931472, %v6276_v6  ;;  %v5077_v43 = vsub.f32 %v5047_v33, %v5067_v2 }
0x3ad9   : > { %v5048_v47 = vadd.f32 %v5046_v37, %v5030_v23  ;;  %v5079_v49 = vmul.f32 %v5344_v57, %v5077_v43 }
0x3adb   : > { %v5078_v29 = vsub.f32 %v5048_v47, %v5070_v15  ;;  %v5082_v51 = vsel %vm5081_vm10, %v5079_v49, 0.0 }
0x3add   : > { %v5080_v20 = vmul.f32 %v5345_v61, %v5078_v29 }
0x3adf   : > { %v5083_v18 = vsel %vm5081_vm10, %v5080_v20, 0.0 }
0x3ae0   : > { %v5084_v55 = vadd.f32 %v5083_v18, %v5082_v51 }
0x3ae2   : > { %5085 = vadd.xlane.f32.xlu1 %v5084_v55 }
0x3ae6   : > { %5098 = vadd.xlane.f32.xlu1 %v5097_v21 }
0x3b6f   : > { %v5086_v22 = vpop.xlane.xlu1 %5085 }
0x3b70   : > { %v5087_v7 = vrot.slane %v5086_v22, 4 }
0x3b72   : > { %v5088_v59 = vadd.f32 %v5087_v7, %v5086_v22 }
0x3b73   : > { %v5099_v0 = vpop.xlane.xlu1 %5098 }
0x3b74   : > { %v5089_v62 = vrot.slane %v5088_v59, 2  ;;  %v5100_v1 = vrot.slane %v5099_v0, 4 }
0x3b76   : > { %v5101_v52 = vadd.f32 %v5100_v1, %v5099_v0  ;;  %v5090_v3 = vadd.f32 %v5089_v62, %v5088_v59 }
0x3b78   : > { %v5102_v4 = vrot.slane %v5101_v52, 2  ;;  %v5091_v58 = vrot.slane %v5090_v3, 1 }
0x3b7a   : > { %v5103_v25 = vadd.f32 %v5102_v4, %v5101_v52  ;;  %v5092_v39 = vadd.f32 %v5091_v58, %v5090_v3 }
0x3b7c   : > { %6025 = vpush %v5092_v39  ;;  %v5104_v42 = vrot.slane %v5103_v25, 1 }
0x3b7e   : > { %v5105_v48 = vadd.f32 %v5104_v42, %v5103_v25 }
0x3b80   : > { %6027 = vpush %v5105_v48 }
0x3bad   : > { %s6026_s28 = spop %6025 }
0x3bae   : > { %v5094_v10 = vstv %s6026_s28 }
0x3bb1   : > { %s6028_s16 = spop %6027 }
0x3bb2   : > { %v5107_v11 = vstv %s6028_s16 }
0x3bb3   : > { %v5108_v45 = vsel %vm5081_vm10, %v5094_v10, %v5107_v11 }
0x3bb4   : > { %5110 = vst.msk [vmem:[%s501_s18] sm:$0x1] %vm5109_vm11, %v5108_v45 }
0x3bb5 PF: > { %s23_s25 = sadd.s32 1, %s6292_s25  }
0x3bb6   : > { %p20_p5 = scmp.ge.s32.totalorder %s23_s25, 4  }
0x3bb8   :  { %22 = sbr.rel (!%p20_p5) target bundleno = 1 (0x1), region = 111 }

</bundles_post_ra>
